<compile_context>
chip_gen: v7x
topology: tpu7x:2x2x1
jax: 0.10.0
libtpu: 0.0.40
codegen_flags: <defaults>
</compile_context>

<pallas_src>
import jax
import jax.numpy as jnp
from jax.experimental import pallas as pl
from jax.experimental.pallas import tpu as pltpu

# ---------------- small config (shapes consistent with ViTModel(ViTConfig)) --------------
IMAGE_SIZE = 32
PATCH = 16
CHANNELS = 3
NUM_PATCHES = (IMAGE_SIZE // PATCH) ** 2          # 4
SEQ = NUM_PATCHES + 1                             # 5 (with CLS)
HIDDEN = 32
HEADS = 2
HEAD_DIM = HIDDEN // HEADS                        # 16
LAYERS = 2
INTERMEDIATE = 64
OUT_DIM = 16
LN_EPS = 1e-12                                    # ViTConfig.layer_norm_eps default
BATCH = 2
PATCH_K = CHANNELS * PATCH * PATCH                # 768


# ------------------------------- kernel helpers ------------------------------------------
def _layer_norm(x, gamma, beta):
    mean = jnp.mean(x, axis=-1, keepdims=True)
    var = jnp.mean(jnp.square(x - mean), axis=-1, keepdims=True)
    return (x - mean) * jax.lax.rsqrt(var + LN_EPS) * gamma + beta


# ------------------------------- fused Pallas kernel --------------------------------------
def vit_fused_kernel(patches_ref,      # (B*P, K)
                     patch_w_ref,      # (K, H)
                     embed_add_ref,    # (S, H): row0 = cls+pos_cls, rows1.. = patch_b+pos
                     wq_ref,           # (L, HEADS, H, D)
                     wk_ref,           # (L, HEADS, H, D)
                     wv_ref,           # (L, HEADS, H, D)
                     wo_ref,           # (L, HEADS, D, H)
                     qkvb_ref,         # (L, 3*HEADS, D)  rows: bq per head, bk per head, bv per head
                     w1_ref,           # (L, H, I)
                     b1_ref,           # (L, 1, I)
                     w2_ref,           # (L, I, H)
                     vecs_ref,         # (L, 6, H) rows: ln1_g, ln1_b, bo, ln2_g, ln2_b, b2
                     fc1_w_ref,        # (H, H)
                     fc2_w_ref,        # (H, OUT)
                     head_vecs_ref,    # (3, H) rows: final_ln_g, final_ln_b, fc1_b
                     fc2_b_ref,        # (1, OUT)
                     out_ref):         # (B, OUT)
    # ---------- patch embedding (conv rewritten as one matmul over flattened patches) -----
    pe = jnp.dot(patches_ref[...], patch_w_ref[...],
                 preferred_element_type=jnp.float32)                    # (B*P, H)

    rows = []
    for b in range(BATCH):                                              # static, B=2
        rows.append(embed_add_ref[0:1, :])                              # CLS row (+pos)
        rows.append(pe[b * NUM_PATCHES:(b + 1) * NUM_PATCHES, :]
                    + embed_add_ref[1:, :])                             # patch rows (+b+pos)
    x = jnp.concatenate(rows, axis=0)                                   # (B*S, H) = (10, 32)

    scale = 1.0 / (HEAD_DIM ** 0.5)
    for l in range(LAYERS):                                             # static unrolled
        lvec = vecs_ref[l]                                              # (6, H)
        qkvb = qkvb_ref[l]                                              # (3*HEADS, D)

        # ----- multi-head self attention (pre-norm) -----
        h = _layer_norm(x, lvec[0:1, :], lvec[1:2, :])                  # (B*S, H)
        attn = jnp.zeros((BATCH * SEQ, HIDDEN), jnp.float32)
        for n in range(HEADS):                                          # static, per-head
            # weights already split per head on the host -> no lane slicing here
            q = jnp.dot(h, wq_ref[l, n], preferred_element_type=jnp.float32) \
                + qkvb[n:n + 1, :]
            k = jnp.dot(h, wk_ref[l, n], preferred_element_type=jnp.float32) \
                + qkvb[HEADS + n:HEADS + n + 1, :]
            v = jnp.dot(h, wv_ref[l, n], preferred_element_type=jnp.float32) \
                + qkvb[2 * HEADS + n:2 * HEADS + n + 1, :]
            q3 = q.reshape(BATCH, SEQ, HEAD_DIM)
            k3 = k.reshape(BATCH, SEQ, HEAD_DIM)
            v3 = v.reshape(BATCH, SEQ, HEAD_DIM)
            s = jnp.einsum('bqd,bkd->bqk', q3, k3,
                           preferred_element_type=jnp.float32) * scale   # (B, S, S)
            s = s - jnp.max(s, axis=-1, keepdims=True)
            p = jnp.exp(s)
            p = p * pl.reciprocal(jnp.sum(p, axis=-1, keepdims=True), approx=True)
            ctx = jnp.einsum('bqk,bkd->bqd', p, v3,
                             preferred_element_type=jnp.float32)         # (B, S, D)
            attn = attn + jnp.dot(ctx.reshape(BATCH * SEQ, HEAD_DIM), wo_ref[l, n],
                                  preferred_element_type=jnp.float32)
        x = x + attn + lvec[2:3, :]                                      # residual 1 (+ bo once)

        # ----- MLP (pre-norm) -----
        h2 = _layer_norm(x, lvec[3:4, :], lvec[4:5, :])
        m = jnp.dot(h2, w1_ref[l], preferred_element_type=jnp.float32) + b1_ref[l]
        # TODO(synk): HF ViT uses exact (erf) GELU; tanh approximation used here for EUP lowering.
        m = jax.nn.gelu(m, approximate=True)
        m = jnp.dot(m, w2_ref[l], preferred_element_type=jnp.float32) + lvec[5:6, :]
        x = x + m                                                        # residual 2

    # ----- final LN on the CLS rows (per-token op, so exact) + SimCLR projection head -----
    hv = head_vecs_ref[...]                                              # (3, H)
    cls = jnp.concatenate([x[b * SEQ:b * SEQ + 1, :] for b in range(BATCH)], axis=0)  # (B, H)
    cls = _layer_norm(cls, hv[0:1, :], hv[1:2, :])
    z = jnp.dot(cls, fc1_w_ref[...], preferred_element_type=jnp.float32) + hv[2:3, :]
    z = jnp.maximum(z, 0.0)
    out_ref[...] = jnp.dot(z, fc2_w_ref[...], preferred_element_type=jnp.float32) + fc2_b_ref[...]


# ------------------------------- pallas_call wrapper ---------------------------------------
def _full_spec(a):
    nd = a.ndim
    return pl.BlockSpec(a.shape, lambda i, _nd=nd: (0,) * _nd)


@jax.jit
def vit_simclr_forward(x, packed):
    patches = extract_patches(x).reshape(BATCH * NUM_PATCHES, PATCH_K)   # (B*P, K)
    args = (patches, packed["patch_w"], packed["embed_add"],
            packed["wq"], packed["wk"], packed["wv"], packed["wo"], packed["qkvb"],
            packed["w1"], packed["b1"], packed["w2"], packed["vecs"],
            packed["fc1_w"], packed["fc2_w"], packed["head_vecs"], packed["fc2_b"])
    return pl.pallas_call(
        vit_fused_kernel,
        out_shape=jax.ShapeDtypeStruct((BATCH, OUT_DIM), jnp.float32),
        grid=(1,),                                    # single step: whole model in VMEM
        in_specs=[_full_spec(a) for a in args],
        out_specs=pl.BlockSpec((BATCH, OUT_DIM), lambda i: (0, 0)),
        compiler_params=pltpu.CompilerParams(dimension_semantics=("arbitrary",)),
    )(*args)


# ------------------------------- glue (plain JAX, host-side) -------------------------------
def extract_patches(x):
    # x: (B, C, H, W) NCHW -> (B, num_patches, C*p*p), flattened in (C, ph, pw) order,
    # matching a Conv2d weight (hidden, C, p, p) reshaped to (hidden, C*p*p).
    B, C, H, W = x.shape
    nh, nw = H // PATCH, W // PATCH
    x = x.reshape(B, C, nh, PATCH, nw, PATCH)
    x = x.transpose(0, 2, 4, 1, 3, 5)                 # (B, nh, nw, C, p, p)
    return x.reshape(B, nh * nw, C * PATCH * PATCH)


def init_params(key):
    cnt = [0]

    def w(shape, std=0.02):
        cnt[0] += 1
        return jax.random.normal(jax.random.fold_in(key, cnt[0]), shape, jnp.float32) * std

    params = {}
    # patch embedding conv: (hidden, C, p, p) -> matmul weight (C*p*p, hidden)
    conv_w = w((HIDDEN, CHANNELS, PATCH, PATCH)).reshape(HIDDEN, PATCH_K).T
    params["patch_w"] = conv_w
    params["patch_b"] = jnp.zeros((1, HIDDEN), jnp.float32)
    params["cls_token"] = w((1, HIDDEN))
    pos = w((SEQ, HIDDEN))
    params["pos_cls"] = pos[:1]                       # (1, H)
    params["pos_patch"] = pos[1:]                     # (P, H)

    layers = []
    for _ in range(LAYERS):
        lp = (
            jnp.ones((1, HIDDEN), jnp.float32), jnp.zeros((1, HIDDEN), jnp.float32),   # ln1 g, b
            w((HIDDEN, HIDDEN)), jnp.zeros((1, HIDDEN), jnp.float32),                  # Wq, bq
            w((HIDDEN, HIDDEN)), jnp.zeros((1, HIDDEN), jnp.float32),                  # Wk, bk
            w((HIDDEN, HIDDEN)), jnp.zeros((1, HIDDEN), jnp.float32),                  # Wv, bv
            w((HIDDEN, HIDDEN)), jnp.zeros((1, HIDDEN), jnp.float32),                  # Wo, bo
            jnp.ones((1, HIDDEN), jnp.float32), jnp.zeros((1, HIDDEN), jnp.float32),   # ln2 g, b
            w((HIDDEN, INTERMEDIATE)), jnp.zeros((1, INTERMEDIATE), jnp.float32),      # W1, b1
            w((INTERMEDIATE, HIDDEN)), jnp.zeros((1, HIDDEN), jnp.float32),            # W2, b2
        )
        layers.append(lp)
    params["layers"] = layers

    params["head"] = (
        jnp.ones((1, HIDDEN), jnp.float32), jnp.zeros((1, HIDDEN), jnp.float32),       # final LN
        w((HIDDEN, HIDDEN)), jnp.zeros((1, HIDDEN), jnp.float32),                      # fc1
        w((HIDDEN, OUT_DIM)), jnp.zeros((1, OUT_DIM), jnp.float32),                    # fc2
    )
    return params


def pack_params(params):
    """Host-side re-layout: per-head weight blocks + packed per-layer vectors."""
    packed = {"patch_w": params["patch_w"]}
    packed["embed_add"] = jnp.concatenate(
        [params["cls_token"] + params["pos_cls"],              # CLS row
         params["patch_b"] + params["pos_patch"]], axis=0)     # patch rows -> (S, H)

    wq, wk, wv, wo, qkvb, w1, b1, w2, vecs = [], [], [], [], [], [], [], [], []
    for lp in params["layers"]:
        (ln1_g, ln1_b, Wq, bq, Wk, bk, Wv, bv, Wo, bo,
         ln2_g, ln2_b, W1, B1, W2, B2) = lp
        wq.append(Wq.reshape(HIDDEN, HEADS, HEAD_DIM).transpose(1, 0, 2))   # (HEADS, H, D)
        wk.append(Wk.reshape(HIDDEN, HEADS, HEAD_DIM).transpose(1, 0, 2))
        wv.append(Wv.reshape(HIDDEN, HEADS, HEAD_DIM).transpose(1, 0, 2))
        wo.append(Wo.reshape(HEADS, HEAD_DIM, HIDDEN))                      # (HEADS, D, H)
        qkvb.append(jnp.concatenate([bq.reshape(HEADS, HEAD_DIM),
                                     bk.reshape(HEADS, HEAD_DIM),
                                     bv.reshape(HEADS, HEAD_DIM)], axis=0)) # (3*HEADS, D)
        w1.append(W1)
        b1.append(B1.reshape(1, INTERMEDIATE))
        w2.append(W2)
        vecs.append(jnp.concatenate([ln1_g, ln1_b, bo, ln2_g, ln2_b, B2], axis=0))  # (6, H)

    packed["wq"] = jnp.stack(wq)          # (L, HEADS, H, D)
    packed["wk"] = jnp.stack(wk)
    packed["wv"] = jnp.stack(wv)
    packed["wo"] = jnp.stack(wo)          # (L, HEADS, D, H)
    packed["qkvb"] = jnp.stack(qkvb)      # (L, 3*HEADS, D)
    packed["w1"] = jnp.stack(w1)          # (L, H, I)
    packed["b1"] = jnp.stack(b1)          # (L, 1, I)
    packed["w2"] = jnp.stack(w2)          # (L, I, H)
    packed["vecs"] = jnp.stack(vecs)      # (L, 6, H)

    fl_g, fl_b, FC1, fc1_b, FC2, fc2_b = params["head"]
    packed["head_vecs"] = jnp.concatenate([fl_g, fl_b, fc1_b], axis=0)      # (3, H)
    packed["fc1_w"] = FC1
    packed["fc2_w"] = FC2
    packed["fc2_b"] = fc2_b               # (1, OUT)
    return packed


if __name__ == "__main__":
    key = jax.random.PRNGKey(0)
    x = jax.random.normal(key, (BATCH, CHANNELS, IMAGE_SIZE, IMAGE_SIZE), jnp.float32)
    params = init_params(jax.random.PRNGKey(42))
    packed = pack_params(params)
    out = vit_simclr_forward(x, packed)
    jax.block_until_ready(out)
    assert out.shape == (BATCH, OUT_DIM)
    print("KERNEL_OK")
</pallas_src>

<mosaic_0001>
module attributes {stable_mosaic.version = 11 : i64} {
  func.func @vit_fused_kernel(%arg0: i32, %arg1: memref<8x768xf32, #tpu.memory_space<vmem>>, %arg2: memref<768x32xf32, #tpu.memory_space<vmem>>, %arg3: memref<5x32xf32, #tpu.memory_space<vmem>>, %arg4: memref<2x2x32x16xf32, #tpu.memory_space<vmem>>, %arg5: memref<2x2x32x16xf32, #tpu.memory_space<vmem>>, %arg6: memref<2x2x32x16xf32, #tpu.memory_space<vmem>>, %arg7: memref<2x2x16x32xf32, #tpu.memory_space<vmem>>, %arg8: memref<2x6x16xf32, #tpu.memory_space<vmem>>, %arg9: memref<2x32x64xf32, #tpu.memory_space<vmem>>, %arg10: memref<2x1x64xf32, #tpu.memory_space<vmem>>, %arg11: memref<2x64x32xf32, #tpu.memory_space<vmem>>, %arg12: memref<2x6x32xf32, #tpu.memory_space<vmem>>, %arg13: memref<32x32xf32, #tpu.memory_space<vmem>>, %arg14: memref<32x16xf32, #tpu.memory_space<vmem>>, %arg15: memref<3x32xf32, #tpu.memory_space<vmem>>, %arg16: memref<1x16xf32, #tpu.memory_space<vmem>>, %arg17: memref<2x16xf32, #tpu.memory_space<vmem>>) attributes {dimension_semantics = [#tpu.dimension_semantics<arbitrary>], iteration_bounds = array<i64: 1>, scalar_prefetch = 0 : i64, scratch_operands = 0 : i64, tpu.core_type = #tpu.core_type<tc>, window_params = [{pipeline_mode = #tpu.pipeline_mode<synchronous>, transform_indices = @transform_0, window_bounds = array<i64: 8, 768>}, {pipeline_mode = #tpu.pipeline_mode<synchronous>, transform_indices = @transform_1, window_bounds = array<i64: 768, 32>}, {pipeline_mode = #tpu.pipeline_mode<synchronous>, transform_indices = @transform_2, window_bounds = array<i64: 5, 32>}, {pipeline_mode = #tpu.pipeline_mode<synchronous>, transform_indices = @transform_3, window_bounds = array<i64: 2, 2, 32, 16>}, {pipeline_mode = #tpu.pipeline_mode<synchronous>, transform_indices = @transform_4, window_bounds = array<i64: 2, 2, 32, 16>}, {pipeline_mode = #tpu.pipeline_mode<synchronous>, transform_indices = @transform_5, window_bounds = array<i64: 2, 2, 32, 16>}, {pipeline_mode = #tpu.pipeline_mode<synchronous>, transform_indices = @transform_6, window_bounds = array<i64: 2, 2, 16, 32>}, {pipeline_mode = #tpu.pipeline_mode<synchronous>, transform_indices = @transform_7, window_bounds = array<i64: 2, 6, 16>}, {pipeline_mode = #tpu.pipeline_mode<synchronous>, transform_indices = @transform_8, window_bounds = array<i64: 2, 32, 64>}, {pipeline_mode = #tpu.pipeline_mode<synchronous>, transform_indices = @transform_9, window_bounds = array<i64: 2, 1, 64>}, {pipeline_mode = #tpu.pipeline_mode<synchronous>, transform_indices = @transform_10, window_bounds = array<i64: 2, 64, 32>}, {pipeline_mode = #tpu.pipeline_mode<synchronous>, transform_indices = @transform_11, window_bounds = array<i64: 2, 6, 32>}, {pipeline_mode = #tpu.pipeline_mode<synchronous>, transform_indices = @transform_12, window_bounds = array<i64: 32, 32>}, {pipeline_mode = #tpu.pipeline_mode<synchronous>, transform_indices = @transform_13, window_bounds = array<i64: 32, 16>}, {pipeline_mode = #tpu.pipeline_mode<synchronous>, transform_indices = @transform_14, window_bounds = array<i64: 3, 32>}, {pipeline_mode = #tpu.pipeline_mode<synchronous>, transform_indices = @transform_15, window_bounds = array<i64: 1, 16>}, {pipeline_mode = #tpu.pipeline_mode<synchronous>, transform_indices = @transform_16, window_bounds = array<i64: 2, 16>}]} {
    %c0 = arith.constant 0 : index
    %c0_0 = arith.constant 0 : index
    %0 = vector.load %arg1[%c0, %c0_0] : memref<8x768xf32, #tpu.memory_space<vmem>>, vector<8x768xf32>
    %c0_1 = arith.constant 0 : index
    %c0_2 = arith.constant 0 : index
    %1 = vector.load %arg2[%c0_1, %c0_2] : memref<768x32xf32, #tpu.memory_space<vmem>>, vector<768x32xf32>
    %cst = arith.constant dense<0.000000e+00> : vector<8x32xf32>
    %2 = tpu.matmul %0, %1, %cst {dimension_numbers = #tpu.dot_dimension_numbers<[1], [0], [0], [1], [0, 0, 1, 1], [], []>} : vector<8x768xf32>, vector<768x32xf32>, vector<8x32xf32> -> vector<8x32xf32>
    %c0_3 = arith.constant 0 : index
    %c0_4 = arith.constant 0 : index
    %3 = vector.load %arg3[%c0_3, %c0_4] : memref<5x32xf32, #tpu.memory_space<vmem>>, vector<1x32xf32>
    %4 = vector.extract_strided_slice %2 {offsets = [0, 0], sizes = [4, 32], strides = [1, 1]} : vector<8x32xf32> to vector<4x32xf32>
    %c1 = arith.constant 1 : index
    %c0_5 = arith.constant 0 : index
    %5 = vector.load %arg3[%c1, %c0_5] : memref<5x32xf32, #tpu.memory_space<vmem>>, vector<4x32xf32>
    %6 = arith.addf %4, %5 : vector<4x32xf32>
    %c0_6 = arith.constant 0 : index
    %c0_7 = arith.constant 0 : index
    %7 = vector.load %arg3[%c0_6, %c0_7] : memref<5x32xf32, #tpu.memory_space<vmem>>, vector<1x32xf32>
    %8 = vector.extract_strided_slice %2 {offsets = [4, 0], sizes = [4, 32], strides = [1, 1]} : vector<8x32xf32> to vector<4x32xf32>
    %c1_8 = arith.constant 1 : index
    %c0_9 = arith.constant 0 : index
    %9 = vector.load %arg3[%c1_8, %c0_9] : memref<5x32xf32, #tpu.memory_space<vmem>>, vector<4x32xf32>
    %10 = arith.addf %8, %9 : vector<4x32xf32>
    %11 = tpu.concatenate %3, %6, %7, %10 in 0 : vector<1x32xf32>, vector<4x32xf32>, vector<1x32xf32>, vector<4x32xf32> -> vector<10x32xf32>
    %c0_10 = arith.constant 0 : index
    %c0_11 = arith.constant 0 : index
    %c0_12 = arith.constant 0 : index
    %12 = vector.load %arg12[%c0_10, %c0_11, %c0_12] : memref<2x6x32xf32, #tpu.memory_space<vmem>>, vector<1x6x32xf32>
    %13 = vector.shape_cast %12 : vector<1x6x32xf32> to vector<6x32xf32>
    %c0_13 = arith.constant 0 : index
    %c0_14 = arith.constant 0 : index
    %c0_15 = arith.constant 0 : index
    %14 = vector.load %arg8[%c0_13, %c0_14, %c0_15] : memref<2x6x16xf32, #tpu.memory_space<vmem>>, vector<1x6x16xf32>
    %15 = vector.shape_cast %14 : vector<1x6x16xf32> to vector<6x16xf32>
    %16 = vector.extract_strided_slice %13 {offsets = [0, 0], sizes = [1, 32], strides = [1, 1]} : vector<6x32xf32> to vector<1x32xf32>
    %17 = vector.extract_strided_slice %13 {offsets = [1, 0], sizes = [1, 32], strides = [1, 1]} : vector<6x32xf32> to vector<1x32xf32>
    %cst_16 = arith.constant dense<0.000000e+00> : vector<10xf32>
    %18 = vector.multi_reduction <add>, %11, %cst_16 [1] : vector<10x32xf32> to vector<10xf32>
    %19 = vector.shape_cast %18 : vector<10xf32> to vector<10x1xf32>
    %cst_17 = arith.constant 3.200000e+01 : f32
    %20 = vector.broadcast %cst_17 : f32 to vector<10x1xf32>
    %21 = arith.divf %19, %20 : vector<10x1xf32>
    %22 = vector.broadcast %21 : vector<10x1xf32> to vector<10x32xf32>
    %23 = arith.subf %11, %22 : vector<10x32xf32>
    %24 = arith.mulf %23, %23 : vector<10x32xf32>
    %cst_18 = arith.constant dense<0.000000e+00> : vector<10xf32>
    %25 = vector.multi_reduction <add>, %24, %cst_18 [1] : vector<10x32xf32> to vector<10xf32>
    %26 = vector.shape_cast %25 : vector<10xf32> to vector<10x1xf32>
    %cst_19 = arith.constant 3.200000e+01 : f32
    %27 = vector.broadcast %cst_19 : f32 to vector<10x1xf32>
    %28 = arith.divf %26, %27 : vector<10x1xf32>
    %29 = vector.broadcast %21 : vector<10x1xf32> to vector<10x32xf32>
    %30 = arith.subf %11, %29 : vector<10x32xf32>
    %cst_20 = arith.constant 9.99999996E-13 : f32
    %31 = vector.broadcast %cst_20 : f32 to vector<10x1xf32>
    %32 = arith.addf %28, %31 : vector<10x1xf32>
    %33 = math.rsqrt %32 : vector<10x1xf32>
    %34 = vector.broadcast %33 : vector<10x1xf32> to vector<10x32xf32>
    %35 = arith.mulf %30, %34 : vector<10x32xf32>
    %36 = vector.broadcast %16 : vector<1x32xf32> to vector<10x32xf32>
    %37 = arith.mulf %35, %36 : vector<10x32xf32>
    %38 = vector.broadcast %17 : vector<1x32xf32> to vector<10x32xf32>
    %39 = arith.addf %37, %38 : vector<10x32xf32>
    %cst_21 = arith.constant 0.000000e+00 : f32
    %40 = vector.broadcast %cst_21 : f32 to vector<10x32xf32>
    %c0_22 = arith.constant 0 : index
    %c0_23 = arith.constant 0 : index
    %c0_24 = arith.constant 0 : index
    %c0_25 = arith.constant 0 : index
    %41 = vector.load %arg4[%c0_22, %c0_23, %c0_24, %c0_25] : memref<2x2x32x16xf32, #tpu.memory_space<vmem>>, vector<1x1x32x16xf32>
    %42 = vector.shape_cast %41 : vector<1x1x32x16xf32> to vector<32x16xf32>
    %cst_26 = arith.constant dense<0.000000e+00> : vector<10x16xf32>
    %43 = tpu.matmul %39, %42, %cst_26 {dimension_numbers = #tpu.dot_dimension_numbers<[1], [0], [0], [1], [0, 0, 1, 1], [], []>} : vector<10x32xf32>, vector<32x16xf32>, vector<10x16xf32> -> vector<10x16xf32>
    %44 = vector.extract_strided_slice %15 {offsets = [0, 0], sizes = [1, 16], strides = [1, 1]} : vector<6x16xf32> to vector<1x16xf32>
    %45 = vector.broadcast %44 : vector<1x16xf32> to vector<10x16xf32>
    %46 = arith.addf %43, %45 : vector<10x16xf32>
    %c0_27 = arith.constant 0 : index
    %c0_28 = arith.constant 0 : index
    %c0_29 = arith.constant 0 : index
    %c0_30 = arith.constant 0 : index
    %47 = vector.load %arg5[%c0_27, %c0_28, %c0_29, %c0_30] : memref<2x2x32x16xf32, #tpu.memory_space<vmem>>, vector<1x1x32x16xf32>
    %48 = vector.shape_cast %47 : vector<1x1x32x16xf32> to vector<32x16xf32>
    %cst_31 = arith.constant dense<0.000000e+00> : vector<10x16xf32>
    %49 = tpu.matmul %39, %48, %cst_31 {dimension_numbers = #tpu.dot_dimension_numbers<[1], [0], [0], [1], [0, 0, 1, 1], [], []>} : vector<10x32xf32>, vector<32x16xf32>, vector<10x16xf32> -> vector<10x16xf32>
    %50 = vector.extract_strided_slice %15 {offsets = [2, 0], sizes = [1, 16], strides = [1, 1]} : vector<6x16xf32> to vector<1x16xf32>
    %51 = vector.broadcast %50 : vector<1x16xf32> to vector<10x16xf32>
    %52 = arith.addf %49, %51 : vector<10x16xf32>
    %c0_32 = arith.constant 0 : index
    %c0_33 = arith.constant 0 : index
    %c0_34 = arith.constant 0 : index
    %c0_35 = arith.constant 0 : index
    %53 = vector.load %arg6[%c0_32, %c0_33, %c0_34, %c0_35] : memref<2x2x32x16xf32, #tpu.memory_space<vmem>>, vector<1x1x32x16xf32>
    %54 = vector.shape_cast %53 : vector<1x1x32x16xf32> to vector<32x16xf32>
    %cst_36 = arith.constant dense<0.000000e+00> : vector<10x16xf32>
    %55 = tpu.matmul %39, %54, %cst_36 {dimension_numbers = #tpu.dot_dimension_numbers<[1], [0], [0], [1], [0, 0, 1, 1], [], []>} : vector<10x32xf32>, vector<32x16xf32>, vector<10x16xf32> -> vector<10x16xf32>
    %56 = vector.extract_strided_slice %15 {offsets = [4, 0], sizes = [1, 16], strides = [1, 1]} : vector<6x16xf32> to vector<1x16xf32>
    %57 = vector.broadcast %56 : vector<1x16xf32> to vector<10x16xf32>
    %58 = arith.addf %55, %57 : vector<10x16xf32>
    %59 = vector.shape_cast %46 : vector<10x16xf32> to vector<2x5x16xf32>
    %60 = vector.shape_cast %52 : vector<10x16xf32> to vector<2x5x16xf32>
    %61 = vector.shape_cast %58 : vector<10x16xf32> to vector<2x5x16xf32>
    "tpu.trace_start"() <{level = 10 : i32, message = "bqd,bkd->bqk"}> : () -> ()
    %cst_37 = arith.constant dense<0.000000e+00> : vector<2x5x5xf32>
    %62 = tpu.matmul %59, %60, %cst_37 {dimension_numbers = #tpu.dot_dimension_numbers<[2], [2], [1], [1], [0, 0, 0, 1, 1, 1], [0], [0]>} : vector<2x5x16xf32>, vector<2x5x16xf32>, vector<2x5x5xf32> -> vector<2x5x5xf32>
    "tpu.trace_stop"() : () -> ()
    %cst_38 = arith.constant 2.500000e-01 : f32
    %63 = vector.broadcast %cst_38 : f32 to vector<2x5x5xf32>
    %64 = arith.mulf %62, %63 : vector<2x5x5xf32>
    %cst_39 = arith.constant dense<0xFF800000> : vector<2x5xf32>
    %65 = vector.multi_reduction <maximumf>, %64, %cst_39 [2] : vector<2x5x5xf32> to vector<2x5xf32>
    %66 = vector.shape_cast %65 : vector<2x5xf32> to vector<2x5x1xf32>
    %67 = vector.broadcast %66 : vector<2x5x1xf32> to vector<2x5x5xf32>
    %68 = arith.subf %64, %67 : vector<2x5x5xf32>
    %69 = math.exp %68 : vector<2x5x5xf32>
    %cst_40 = arith.constant dense<0.000000e+00> : vector<2x5xf32>
    %70 = vector.multi_reduction <add>, %69, %cst_40 [2] : vector<2x5x5xf32> to vector<2x5xf32>
    %71 = vector.shape_cast %70 : vector<2x5xf32> to vector<2x5x1xf32>
    %72 = tpu.reciprocal %71 {approx = true} : vector<2x5x1xf32> -> vector<2x5x1xf32>
    %73 = vector.broadcast %72 : vector<2x5x1xf32> to vector<2x5x5xf32>
    %74 = arith.mulf %69, %73 : vector<2x5x5xf32>
    "tpu.trace_start"() <{level = 10 : i32, message = "bqk,bkd->bqd"}> : () -> ()
    %cst_41 = arith.constant dense<0.000000e+00> : vector<2x5x16xf32>
    %75 = tpu.matmul %74, %61, %cst_41 {dimension_numbers = #tpu.dot_dimension_numbers<[2], [1], [1], [2], [0, 0, 0, 1, 1, 2], [0], [0]>} : vector<2x5x5xf32>, vector<2x5x16xf32>, vector<2x5x16xf32> -> vector<2x5x16xf32>
    "tpu.trace_stop"() : () -> ()
    %76 = vector.shape_cast %75 : vector<2x5x16xf32> to vector<10x16xf32>
    %c0_42 = arith.constant 0 : index
    %c0_43 = arith.constant 0 : index
    %c0_44 = arith.constant 0 : index
    %c0_45 = arith.constant 0 : index
    %77 = vector.load %arg7[%c0_42, %c0_43, %c0_44, %c0_45] : memref<2x2x16x32xf32, #tpu.memory_space<vmem>>, vector<1x1x16x32xf32>
    %78 = vector.shape_cast %77 : vector<1x1x16x32xf32> to vector<16x32xf32>
    %cst_46 = arith.constant dense<0.000000e+00> : vector<10x32xf32>
    %79 = tpu.matmul %76, %78, %cst_46 {dimension_numbers = #tpu.dot_dimension_numbers<[1], [0], [0], [1], [0, 0, 1, 1], [], []>} : vector<10x16xf32>, vector<16x32xf32>, vector<10x32xf32> -> vector<10x32xf32>
    %80 = arith.addf %40, %79 : vector<10x32xf32>
    %c0_47 = arith.constant 0 : index
    %c1_48 = arith.constant 1 : index
    %c0_49 = arith.constant 0 : index
    %c0_50 = arith.constant 0 : index
    %81 = vector.load %arg4[%c0_47, %c1_48, %c0_49, %c0_50] : memref<2x2x32x16xf32, #tpu.memory_space<vmem>>, vector<1x1x32x16xf32>
    %82 = vector.shape_cast %81 : vector<1x1x32x16xf32> to vector<32x16xf32>
    %cst_51 = arith.constant dense<0.000000e+00> : vector<10x16xf32>
    %83 = tpu.matmul %39, %82, %cst_51 {dimension_numbers = #tpu.dot_dimension_numbers<[1], [0], [0], [1], [0, 0, 1, 1], [], []>} : vector<10x32xf32>, vector<32x16xf32>, vector<10x16xf32> -> vector<10x16xf32>
    %84 = vector.extract_strided_slice %15 {offsets = [1, 0], sizes = [1, 16], strides = [1, 1]} : vector<6x16xf32> to vector<1x16xf32>
    %85 = vector.broadcast %84 : vector<1x16xf32> to vector<10x16xf32>
    %86 = arith.addf %83, %85 : vector<10x16xf32>
    %c0_52 = arith.constant 0 : index
    %c1_53 = arith.constant 1 : index
    %c0_54 = arith.constant 0 : index
    %c0_55 = arith.constant 0 : index
    %87 = vector.load %arg5[%c0_52, %c1_53, %c0_54, %c0_55] : memref<2x2x32x16xf32, #tpu.memory_space<vmem>>, vector<1x1x32x16xf32>
    %88 = vector.shape_cast %87 : vector<1x1x32x16xf32> to vector<32x16xf32>
    %cst_56 = arith.constant dense<0.000000e+00> : vector<10x16xf32>
    %89 = tpu.matmul %39, %88, %cst_56 {dimension_numbers = #tpu.dot_dimension_numbers<[1], [0], [0], [1], [0, 0, 1, 1], [], []>} : vector<10x32xf32>, vector<32x16xf32>, vector<10x16xf32> -> vector<10x16xf32>
    %90 = vector.extract_strided_slice %15 {offsets = [3, 0], sizes = [1, 16], strides = [1, 1]} : vector<6x16xf32> to vector<1x16xf32>
    %91 = vector.broadcast %90 : vector<1x16xf32> to vector<10x16xf32>
    %92 = arith.addf %89, %91 : vector<10x16xf32>
    %c0_57 = arith.constant 0 : index
    %c1_58 = arith.constant 1 : index
    %c0_59 = arith.constant 0 : index
    %c0_60 = arith.constant 0 : index
    %93 = vector.load %arg6[%c0_57, %c1_58, %c0_59, %c0_60] : memref<2x2x32x16xf32, #tpu.memory_space<vmem>>, vector<1x1x32x16xf32>
    %94 = vector.shape_cast %93 : vector<1x1x32x16xf32> to vector<32x16xf32>
    %cst_61 = arith.constant dense<0.000000e+00> : vector<10x16xf32>
    %95 = tpu.matmul %39, %94, %cst_61 {dimension_numbers = #tpu.dot_dimension_numbers<[1], [0], [0], [1], [0, 0, 1, 1], [], []>} : vector<10x32xf32>, vector<32x16xf32>, vector<10x16xf32> -> vector<10x16xf32>
    %96 = vector.extract_strided_slice %15 {offsets = [5, 0], sizes = [1, 16], strides = [1, 1]} : vector<6x16xf32> to vector<1x16xf32>
    %97 = vector.broadcast %96 : vector<1x16xf32> to vector<10x16xf32>
    %98 = arith.addf %95, %97 : vector<10x16xf32>
    %99 = vector.shape_cast %86 : vector<10x16xf32> to vector<2x5x16xf32>
    %100 = vector.shape_cast %92 : vector<10x16xf32> to vector<2x5x16xf32>
    %101 = vector.shape_cast %98 : vector<10x16xf32> to vector<2x5x16xf32>
    "tpu.trace_start"() <{level = 10 : i32, message = "bqd,bkd->bqk"}> : () -> ()
    %cst_62 = arith.constant dense<0.000000e+00> : vector<2x5x5xf32>
    %102 = tpu.matmul %99, %100, %cst_62 {dimension_numbers = #tpu.dot_dimension_numbers<[2], [2], [1], [1], [0, 0, 0, 1, 1, 1], [0], [0]>} : vector<2x5x16xf32>, vector<2x5x16xf32>, vector<2x5x5xf32> -> vector<2x5x5xf32>
    "tpu.trace_stop"() : () -> ()
    %cst_63 = arith.constant 2.500000e-01 : f32
    %103 = vector.broadcast %cst_63 : f32 to vector<2x5x5xf32>
    %104 = arith.mulf %102, %103 : vector<2x5x5xf32>
    %cst_64 = arith.constant dense<0xFF800000> : vector<2x5xf32>
    %105 = vector.multi_reduction <maximumf>, %104, %cst_64 [2] : vector<2x5x5xf32> to vector<2x5xf32>
    %106 = vector.shape_cast %105 : vector<2x5xf32> to vector<2x5x1xf32>
    %107 = vector.broadcast %106 : vector<2x5x1xf32> to vector<2x5x5xf32>
    %108 = arith.subf %104, %107 : vector<2x5x5xf32>
    %109 = math.exp %108 : vector<2x5x5xf32>
    %cst_65 = arith.constant dense<0.000000e+00> : vector<2x5xf32>
    %110 = vector.multi_reduction <add>, %109, %cst_65 [2] : vector<2x5x5xf32> to vector<2x5xf32>
    %111 = vector.shape_cast %110 : vector<2x5xf32> to vector<2x5x1xf32>
    %112 = tpu.reciprocal %111 {approx = true} : vector<2x5x1xf32> -> vector<2x5x1xf32>
    %113 = vector.broadcast %112 : vector<2x5x1xf32> to vector<2x5x5xf32>
    %114 = arith.mulf %109, %113 : vector<2x5x5xf32>
    "tpu.trace_start"() <{level = 10 : i32, message = "bqk,bkd->bqd"}> : () -> ()
    %cst_66 = arith.constant dense<0.000000e+00> : vector<2x5x16xf32>
    %115 = tpu.matmul %114, %101, %cst_66 {dimension_numbers = #tpu.dot_dimension_numbers<[2], [1], [1], [2], [0, 0, 0, 1, 1, 2], [0], [0]>} : vector<2x5x5xf32>, vector<2x5x16xf32>, vector<2x5x16xf32> -> vector<2x5x16xf32>
    "tpu.trace_stop"() : () -> ()
    %116 = vector.shape_cast %115 : vector<2x5x16xf32> to vector<10x16xf32>
    %c0_67 = arith.constant 0 : index
    %c1_68 = arith.constant 1 : index
    %c0_69 = arith.constant 0 : index
    %c0_70 = arith.constant 0 : index
    %117 = vector.load %arg7[%c0_67, %c1_68, %c0_69, %c0_70] : memref<2x2x16x32xf32, #tpu.memory_space<vmem>>, vector<1x1x16x32xf32>
    %118 = vector.shape_cast %117 : vector<1x1x16x32xf32> to vector<16x32xf32>
    %cst_71 = arith.constant dense<0.000000e+00> : vector<10x32xf32>
    %119 = tpu.matmul %116, %118, %cst_71 {dimension_numbers = #tpu.dot_dimension_numbers<[1], [0], [0], [1], [0, 0, 1, 1], [], []>} : vector<10x16xf32>, vector<16x32xf32>, vector<10x32xf32> -> vector<10x32xf32>
    %120 = arith.addf %80, %119 : vector<10x32xf32>
    %121 = arith.addf %11, %120 : vector<10x32xf32>
    %122 = vector.extract_strided_slice %13 {offsets = [2, 0], sizes = [1, 32], strides = [1, 1]} : vector<6x32xf32> to vector<1x32xf32>
    %123 = vector.broadcast %122 : vector<1x32xf32> to vector<10x32xf32>
    %124 = arith.addf %121, %123 : vector<10x32xf32>
    %125 = vector.extract_strided_slice %13 {offsets = [3, 0], sizes = [1, 32], strides = [1, 1]} : vector<6x32xf32> to vector<1x32xf32>
    %126 = vector.extract_strided_slice %13 {offsets = [4, 0], sizes = [1, 32], strides = [1, 1]} : vector<6x32xf32> to vector<1x32xf32>
    %cst_72 = arith.constant dense<0.000000e+00> : vector<10xf32>
    %127 = vector.multi_reduction <add>, %124, %cst_72 [1] : vector<10x32xf32> to vector<10xf32>
    %128 = vector.shape_cast %127 : vector<10xf32> to vector<10x1xf32>
    %cst_73 = arith.constant 3.200000e+01 : f32
    %129 = vector.broadcast %cst_73 : f32 to vector<10x1xf32>
    %130 = arith.divf %128, %129 : vector<10x1xf32>
    %131 = vector.broadcast %130 : vector<10x1xf32> to vector<10x32xf32>
    %132 = arith.subf %124, %131 : vector<10x32xf32>
    %133 = arith.mulf %132, %132 : vector<10x32xf32>
    %cst_74 = arith.constant dense<0.000000e+00> : vector<10xf32>
    %134 = vector.multi_reduction <add>, %133, %cst_74 [1] : vector<10x32xf32> to vector<10xf32>
    %135 = vector.shape_cast %134 : vector<10xf32> to vector<10x1xf32>
    %cst_75 = arith.constant 3.200000e+01 : f32
    %136 = vector.broadcast %cst_75 : f32 to vector<10x1xf32>
    %137 = arith.divf %135, %136 : vector<10x1xf32>
    %138 = vector.broadcast %130 : vector<10x1xf32> to vector<10x32xf32>
    %139 = arith.subf %124, %138 : vector<10x32xf32>
    %cst_76 = arith.constant 9.99999996E-13 : f32
    %140 = vector.broadcast %cst_76 : f32 to vector<10x1xf32>
    %141 = arith.addf %137, %140 : vector<10x1xf32>
    %142 = math.rsqrt %141 : vector<10x1xf32>
    %143 = vector.broadcast %142 : vector<10x1xf32> to vector<10x32xf32>
    %144 = arith.mulf %139, %143 : vector<10x32xf32>
    %145 = vector.broadcast %125 : vector<1x32xf32> to vector<10x32xf32>
    %146 = arith.mulf %144, %145 : vector<10x32xf32>
    %147 = vector.broadcast %126 : vector<1x32xf32> to vector<10x32xf32>
    %148 = arith.addf %146, %147 : vector<10x32xf32>
    %c0_77 = arith.constant 0 : index
    %c0_78 = arith.constant 0 : index
    %c0_79 = arith.constant 0 : index
    %149 = vector.load %arg9[%c0_77, %c0_78, %c0_79] : memref<2x32x64xf32, #tpu.memory_space<vmem>>, vector<1x32x64xf32>
    %150 = vector.shape_cast %149 : vector<1x32x64xf32> to vector<32x64xf32>
    %cst_80 = arith.constant dense<0.000000e+00> : vector<10x64xf32>
    %151 = tpu.matmul %148, %150, %cst_80 {dimension_numbers = #tpu.dot_dimension_numbers<[1], [0], [0], [1], [0, 0, 1, 1], [], []>} : vector<10x32xf32>, vector<32x64xf32>, vector<10x64xf32> -> vector<10x64xf32>
    %c0_81 = arith.constant 0 : index
    %c0_82 = arith.constant 0 : index
    %c0_83 = arith.constant 0 : index
    %152 = vector.load %arg10[%c0_81, %c0_82, %c0_83] : memref<2x1x64xf32, #tpu.memory_space<vmem>>, vector<1x1x64xf32>
    %153 = vector.shape_cast %152 : vector<1x1x64xf32> to vector<1x64xf32>
    %154 = vector.broadcast %153 : vector<1x64xf32> to vector<10x64xf32>
    %155 = arith.addf %151, %154 : vector<10x64xf32>
    %156 = arith.mulf %155, %155 : vector<10x64xf32>
    %157 = arith.mulf %155, %156 : vector<10x64xf32>
    %cst_84 = arith.constant 4.471500e-02 : f32
    %158 = vector.broadcast %cst_84 : f32 to vector<10x64xf32>
    %159 = arith.mulf %158, %157 : vector<10x64xf32>
    %160 = arith.addf %155, %159 : vector<10x64xf32>
    %cst_85 = arith.constant 0.797884583 : f32
    %161 = vector.broadcast %cst_85 : f32 to vector<10x64xf32>
    %162 = arith.mulf %161, %160 : vector<10x64xf32>
    %163 = math.tanh %162 : vector<10x64xf32>
    %cst_86 = arith.constant 1.000000e+00 : f32
    %164 = vector.broadcast %cst_86 : f32 to vector<10x64xf32>
    %165 = arith.addf %164, %163 : vector<10x64xf32>
    %cst_87 = arith.constant 5.000000e-01 : f32
    %166 = vector.broadcast %cst_87 : f32 to vector<10x64xf32>
    %167 = arith.mulf %166, %165 : vector<10x64xf32>
    %168 = arith.mulf %155, %167 : vector<10x64xf32>
    %c0_88 = arith.constant 0 : index
    %c0_89 = arith.constant 0 : index
    %c0_90 = arith.constant 0 : index
    %169 = vector.load %arg11[%c0_88, %c0_89, %c0_90] : memref<2x64x32xf32, #tpu.memory_space<vmem>>, vector<1x64x32xf32>
    %170 = vector.shape_cast %169 : vector<1x64x32xf32> to vector<64x32xf32>
    %cst_91 = arith.constant dense<0.000000e+00> : vector<10x32xf32>
    %171 = tpu.matmul %168, %170, %cst_91 {dimension_numbers = #tpu.dot_dimension_numbers<[1], [0], [0], [1], [0, 0, 1, 1], [], []>} : vector<10x64xf32>, vector<64x32xf32>, vector<10x32xf32> -> vector<10x32xf32>
    %172 = vector.extract_strided_slice %13 {offsets = [5, 0], sizes = [1, 32], strides = [1, 1]} : vector<6x32xf32> to vector<1x32xf32>
    %173 = vector.broadcast %172 : vector<1x32xf32> to vector<10x32xf32>
    %174 = arith.addf %171, %173 : vector<10x32xf32>
    %175 = arith.addf %124, %174 : vector<10x32xf32>
    %c1_92 = arith.constant 1 : index
    %c0_93 = arith.constant 0 : index
    %c0_94 = arith.constant 0 : index
    %176 = vector.load %arg12[%c1_92, %c0_93, %c0_94] : memref<2x6x32xf32, #tpu.memory_space<vmem>>, vector<1x6x32xf32>
    %177 = vector.shape_cast %176 : vector<1x6x32xf32> to vector<6x32xf32>
    %c1_95 = arith.constant 1 : index
    %c0_96 = arith.constant 0 : index
    %c0_97 = arith.constant 0 : index
    %178 = vector.load %arg8[%c1_95, %c0_96, %c0_97] : memref<2x6x16xf32, #tpu.memory_space<vmem>>, vector<1x6x16xf32>
    %179 = vector.shape_cast %178 : vector<1x6x16xf32> to vector<6x16xf32>
    %180 = vector.extract_strided_slice %177 {offsets = [0, 0], sizes = [1, 32], strides = [1, 1]} : vector<6x32xf32> to vector<1x32xf32>
    %181 = vector.extract_strided_slice %177 {offsets = [1, 0], sizes = [1, 32], strides = [1, 1]} : vector<6x32xf32> to vector<1x32xf32>
    %cst_98 = arith.constant dense<0.000000e+00> : vector<10xf32>
    %182 = vector.multi_reduction <add>, %175, %cst_98 [1] : vector<10x32xf32> to vector<10xf32>
    %183 = vector.shape_cast %182 : vector<10xf32> to vector<10x1xf32>
    %cst_99 = arith.constant 3.200000e+01 : f32
    %184 = vector.broadcast %cst_99 : f32 to vector<10x1xf32>
    %185 = arith.divf %183, %184 : vector<10x1xf32>
    %186 = vector.broadcast %185 : vector<10x1xf32> to vector<10x32xf32>
    %187 = arith.subf %175, %186 : vector<10x32xf32>
    %188 = arith.mulf %187, %187 : vector<10x32xf32>
    %cst_100 = arith.constant dense<0.000000e+00> : vector<10xf32>
    %189 = vector.multi_reduction <add>, %188, %cst_100 [1] : vector<10x32xf32> to vector<10xf32>
    %190 = vector.shape_cast %189 : vector<10xf32> to vector<10x1xf32>
    %cst_101 = arith.constant 3.200000e+01 : f32
    %191 = vector.broadcast %cst_101 : f32 to vector<10x1xf32>
    %192 = arith.divf %190, %191 : vector<10x1xf32>
    %193 = vector.broadcast %185 : vector<10x1xf32> to vector<10x32xf32>
    %194 = arith.subf %175, %193 : vector<10x32xf32>
    %cst_102 = arith.constant 9.99999996E-13 : f32
    %195 = vector.broadcast %cst_102 : f32 to vector<10x1xf32>
    %196 = arith.addf %192, %195 : vector<10x1xf32>
    %197 = math.rsqrt %196 : vector<10x1xf32>
    %198 = vector.broadcast %197 : vector<10x1xf32> to vector<10x32xf32>
    %199 = arith.mulf %194, %198 : vector<10x32xf32>
    %200 = vector.broadcast %180 : vector<1x32xf32> to vector<10x32xf32>
    %201 = arith.mulf %199, %200 : vector<10x32xf32>
    %202 = vector.broadcast %181 : vector<1x32xf32> to vector<10x32xf32>
    %203 = arith.addf %201, %202 : vector<10x32xf32>
    %cst_103 = arith.constant 0.000000e+00 : f32
    %204 = vector.broadcast %cst_103 : f32 to vector<10x32xf32>
    %c1_104 = arith.constant 1 : index
    %c0_105 = arith.constant 0 : index
    %c0_106 = arith.constant 0 : index
    %c0_107 = arith.constant 0 : index
    %205 = vector.load %arg4[%c1_104, %c0_105, %c0_106, %c0_107] : memref<2x2x32x16xf32, #tpu.memory_space<vmem>>, vector<1x1x32x16xf32>
    %206 = vector.shape_cast %205 : vector<1x1x32x16xf32> to vector<32x16xf32>
    %cst_108 = arith.constant dense<0.000000e+00> : vector<10x16xf32>
    %207 = tpu.matmul %203, %206, %cst_108 {dimension_numbers = #tpu.dot_dimension_numbers<[1], [0], [0], [1], [0, 0, 1, 1], [], []>} : vector<10x32xf32>, vector<32x16xf32>, vector<10x16xf32> -> vector<10x16xf32>
    %208 = vector.extract_strided_slice %179 {offsets = [0, 0], sizes = [1, 16], strides = [1, 1]} : vector<6x16xf32> to vector<1x16xf32>
    %209 = vector.broadcast %208 : vector<1x16xf32> to vector<10x16xf32>
    %210 = arith.addf %207, %209 : vector<10x16xf32>
    %c1_109 = arith.constant 1 : index
    %c0_110 = arith.constant 0 : index
    %c0_111 = arith.constant 0 : index
    %c0_112 = arith.constant 0 : index
    %211 = vector.load %arg5[%c1_109, %c0_110, %c0_111, %c0_112] : memref<2x2x32x16xf32, #tpu.memory_space<vmem>>, vector<1x1x32x16xf32>
    %212 = vector.shape_cast %211 : vector<1x1x32x16xf32> to vector<32x16xf32>
    %cst_113 = arith.constant dense<0.000000e+00> : vector<10x16xf32>
    %213 = tpu.matmul %203, %212, %cst_113 {dimension_numbers = #tpu.dot_dimension_numbers<[1], [0], [0], [1], [0, 0, 1, 1], [], []>} : vector<10x32xf32>, vector<32x16xf32>, vector<10x16xf32> -> vector<10x16xf32>
    %214 = vector.extract_strided_slice %179 {offsets = [2, 0], sizes = [1, 16], strides = [1, 1]} : vector<6x16xf32> to vector<1x16xf32>
    %215 = vector.broadcast %214 : vector<1x16xf32> to vector<10x16xf32>
    %216 = arith.addf %213, %215 : vector<10x16xf32>
    %c1_114 = arith.constant 1 : index
    %c0_115 = arith.constant 0 : index
    %c0_116 = arith.constant 0 : index
    %c0_117 = arith.constant 0 : index
    %217 = vector.load %arg6[%c1_114, %c0_115, %c0_116, %c0_117] : memref<2x2x32x16xf32, #tpu.memory_space<vmem>>, vector<1x1x32x16xf32>
    %218 = vector.shape_cast %217 : vector<1x1x32x16xf32> to vector<32x16xf32>
    %cst_118 = arith.constant dense<0.000000e+00> : vector<10x16xf32>
    %219 = tpu.matmul %203, %218, %cst_118 {dimension_numbers = #tpu.dot_dimension_numbers<[1], [0], [0], [1], [0, 0, 1, 1], [], []>} : vector<10x32xf32>, vector<32x16xf32>, vector<10x16xf32> -> vector<10x16xf32>
    %220 = vector.extract_strided_slice %179 {offsets = [4, 0], sizes = [1, 16], strides = [1, 1]} : vector<6x16xf32> to vector<1x16xf32>
    %221 = vector.broadcast %220 : vector<1x16xf32> to vector<10x16xf32>
    %222 = arith.addf %219, %221 : vector<10x16xf32>
    %223 = vector.shape_cast %210 : vector<10x16xf32> to vector<2x5x16xf32>
    %224 = vector.shape_cast %216 : vector<10x16xf32> to vector<2x5x16xf32>
    %225 = vector.shape_cast %222 : vector<10x16xf32> to vector<2x5x16xf32>
    "tpu.trace_start"() <{level = 10 : i32, message = "bqd,bkd->bqk"}> : () -> ()
    %cst_119 = arith.constant dense<0.000000e+00> : vector<2x5x5xf32>
    %226 = tpu.matmul %223, %224, %cst_119 {dimension_numbers = #tpu.dot_dimension_numbers<[2], [2], [1], [1], [0, 0, 0, 1, 1, 1], [0], [0]>} : vector<2x5x16xf32>, vector<2x5x16xf32>, vector<2x5x5xf32> -> vector<2x5x5xf32>
    "tpu.trace_stop"() : () -> ()
    %cst_120 = arith.constant 2.500000e-01 : f32
    %227 = vector.broadcast %cst_120 : f32 to vector<2x5x5xf32>
    %228 = arith.mulf %226, %227 : vector<2x5x5xf32>
    %cst_121 = arith.constant dense<0xFF800000> : vector<2x5xf32>
    %229 = vector.multi_reduction <maximumf>, %228, %cst_121 [2] : vector<2x5x5xf32> to vector<2x5xf32>
    %230 = vector.shape_cast %229 : vector<2x5xf32> to vector<2x5x1xf32>
    %231 = vector.broadcast %230 : vector<2x5x1xf32> to vector<2x5x5xf32>
    %232 = arith.subf %228, %231 : vector<2x5x5xf32>
    %233 = math.exp %232 : vector<2x5x5xf32>
    %cst_122 = arith.constant dense<0.000000e+00> : vector<2x5xf32>
    %234 = vector.multi_reduction <add>, %233, %cst_122 [2] : vector<2x5x5xf32> to vector<2x5xf32>
    %235 = vector.shape_cast %234 : vector<2x5xf32> to vector<2x5x1xf32>
    %236 = tpu.reciprocal %235 {approx = true} : vector<2x5x1xf32> -> vector<2x5x1xf32>
    %237 = vector.broadcast %236 : vector<2x5x1xf32> to vector<2x5x5xf32>
    %238 = arith.mulf %233, %237 : vector<2x5x5xf32>
    "tpu.trace_start"() <{level = 10 : i32, message = "bqk,bkd->bqd"}> : () -> ()
    %cst_123 = arith.constant dense<0.000000e+00> : vector<2x5x16xf32>
    %239 = tpu.matmul %238, %225, %cst_123 {dimension_numbers = #tpu.dot_dimension_numbers<[2], [1], [1], [2], [0, 0, 0, 1, 1, 2], [0], [0]>} : vector<2x5x5xf32>, vector<2x5x16xf32>, vector<2x5x16xf32> -> vector<2x5x16xf32>
    "tpu.trace_stop"() : () -> ()
    %240 = vector.shape_cast %239 : vector<2x5x16xf32> to vector<10x16xf32>
    %c1_124 = arith.constant 1 : index
    %c0_125 = arith.constant 0 : index
    %c0_126 = arith.constant 0 : index
    %c0_127 = arith.constant 0 : index
    %241 = vector.load %arg7[%c1_124, %c0_125, %c0_126, %c0_127] : memref<2x2x16x32xf32, #tpu.memory_space<vmem>>, vector<1x1x16x32xf32>
    %242 = vector.shape_cast %241 : vector<1x1x16x32xf32> to vector<16x32xf32>
    %cst_128 = arith.constant dense<0.000000e+00> : vector<10x32xf32>
    %243 = tpu.matmul %240, %242, %cst_128 {dimension_numbers = #tpu.dot_dimension_numbers<[1], [0], [0], [1], [0, 0, 1, 1], [], []>} : vector<10x16xf32>, vector<16x32xf32>, vector<10x32xf32> -> vector<10x32xf32>
    %244 = arith.addf %204, %243 : vector<10x32xf32>
    %c1_129 = arith.constant 1 : index
    %c1_130 = arith.constant 1 : index
    %c0_131 = arith.constant 0 : index
    %c0_132 = arith.constant 0 : index
    %245 = vector.load %arg4[%c1_129, %c1_130, %c0_131, %c0_132] : memref<2x2x32x16xf32, #tpu.memory_space<vmem>>, vector<1x1x32x16xf32>
    %246 = vector.shape_cast %245 : vector<1x1x32x16xf32> to vector<32x16xf32>
    %cst_133 = arith.constant dense<0.000000e+00> : vector<10x16xf32>
    %247 = tpu.matmul %203, %246, %cst_133 {dimension_numbers = #tpu.dot_dimension_numbers<[1], [0], [0], [1], [0, 0, 1, 1], [], []>} : vector<10x32xf32>, vector<32x16xf32>, vector<10x16xf32> -> vector<10x16xf32>
    %248 = vector.extract_strided_slice %179 {offsets = [1, 0], sizes = [1, 16], strides = [1, 1]} : vector<6x16xf32> to vector<1x16xf32>
    %249 = vector.broadcast %248 : vector<1x16xf32> to vector<10x16xf32>
    %250 = arith.addf %247, %249 : vector<10x16xf32>
    %c1_134 = arith.constant 1 : index
    %c1_135 = arith.constant 1 : index
    %c0_136 = arith.constant 0 : index
    %c0_137 = arith.constant 0 : index
    %251 = vector.load %arg5[%c1_134, %c1_135, %c0_136, %c0_137] : memref<2x2x32x16xf32, #tpu.memory_space<vmem>>, vector<1x1x32x16xf32>
    %252 = vector.shape_cast %251 : vector<1x1x32x16xf32> to vector<32x16xf32>
    %cst_138 = arith.constant dense<0.000000e+00> : vector<10x16xf32>
    %253 = tpu.matmul %203, %252, %cst_138 {dimension_numbers = #tpu.dot_dimension_numbers<[1], [0], [0], [1], [0, 0, 1, 1], [], []>} : vector<10x32xf32>, vector<32x16xf32>, vector<10x16xf32> -> vector<10x16xf32>
    %254 = vector.extract_strided_slice %179 {offsets = [3, 0], sizes = [1, 16], strides = [1, 1]} : vector<6x16xf32> to vector<1x16xf32>
    %255 = vector.broadcast %254 : vector<1x16xf32> to vector<10x16xf32>
    %256 = arith.addf %253, %255 : vector<10x16xf32>
    %c1_139 = arith.constant 1 : index
    %c1_140 = arith.constant 1 : index
    %c0_141 = arith.constant 0 : index
    %c0_142 = arith.constant 0 : index
    %257 = vector.load %arg6[%c1_139, %c1_140, %c0_141, %c0_142] : memref<2x2x32x16xf32, #tpu.memory_space<vmem>>, vector<1x1x32x16xf32>
    %258 = vector.shape_cast %257 : vector<1x1x32x16xf32> to vector<32x16xf32>
    %cst_143 = arith.constant dense<0.000000e+00> : vector<10x16xf32>
    %259 = tpu.matmul %203, %258, %cst_143 {dimension_numbers = #tpu.dot_dimension_numbers<[1], [0], [0], [1], [0, 0, 1, 1], [], []>} : vector<10x32xf32>, vector<32x16xf32>, vector<10x16xf32> -> vector<10x16xf32>
    %260 = vector.extract_strided_slice %179 {offsets = [5, 0], sizes = [1, 16], strides = [1, 1]} : vector<6x16xf32> to vector<1x16xf32>
    %261 = vector.broadcast %260 : vector<1x16xf32> to vector<10x16xf32>
    %262 = arith.addf %259, %261 : vector<10x16xf32>
    %263 = vector.shape_cast %250 : vector<10x16xf32> to vector<2x5x16xf32>
    %264 = vector.shape_cast %256 : vector<10x16xf32> to vector<2x5x16xf32>
    %265 = vector.shape_cast %262 : vector<10x16xf32> to vector<2x5x16xf32>
    "tpu.trace_start"() <{level = 10 : i32, message = "bqd,bkd->bqk"}> : () -> ()
    %cst_144 = arith.constant dense<0.000000e+00> : vector<2x5x5xf32>
    %266 = tpu.matmul %263, %264, %cst_144 {dimension_numbers = #tpu.dot_dimension_numbers<[2], [2], [1], [1], [0, 0, 0, 1, 1, 1], [0], [0]>} : vector<2x5x16xf32>, vector<2x5x16xf32>, vector<2x5x5xf32> -> vector<2x5x5xf32>
    "tpu.trace_stop"() : () -> ()
    %cst_145 = arith.constant 2.500000e-01 : f32
    %267 = vector.broadcast %cst_145 : f32 to vector<2x5x5xf32>
    %268 = arith.mulf %266, %267 : vector<2x5x5xf32>
    %cst_146 = arith.constant dense<0xFF800000> : vector<2x5xf32>
    %269 = vector.multi_reduction <maximumf>, %268, %cst_146 [2] : vector<2x5x5xf32> to vector<2x5xf32>
    %270 = vector.shape_cast %269 : vector<2x5xf32> to vector<2x5x1xf32>
    %271 = vector.broadcast %270 : vector<2x5x1xf32> to vector<2x5x5xf32>
    %272 = arith.subf %268, %271 : vector<2x5x5xf32>
    %273 = math.exp %272 : vector<2x5x5xf32>
    %cst_147 = arith.constant dense<0.000000e+00> : vector<2x5xf32>
    %274 = vector.multi_reduction <add>, %273, %cst_147 [2] : vector<2x5x5xf32> to vector<2x5xf32>
    %275 = vector.shape_cast %274 : vector<2x5xf32> to vector<2x5x1xf32>
    %276 = tpu.reciprocal %275 {approx = true} : vector<2x5x1xf32> -> vector<2x5x1xf32>
    %277 = vector.broadcast %276 : vector<2x5x1xf32> to vector<2x5x5xf32>
    %278 = arith.mulf %273, %277 : vector<2x5x5xf32>
    "tpu.trace_start"() <{level = 10 : i32, message = "bqk,bkd->bqd"}> : () -> ()
    %cst_148 = arith.constant dense<0.000000e+00> : vector<2x5x16xf32>
    %279 = tpu.matmul %278, %265, %cst_148 {dimension_numbers = #tpu.dot_dimension_numbers<[2], [1], [1], [2], [0, 0, 0, 1, 1, 2], [0], [0]>} : vector<2x5x5xf32>, vector<2x5x16xf32>, vector<2x5x16xf32> -> vector<2x5x16xf32>
    "tpu.trace_stop"() : () -> ()
    %280 = vector.shape_cast %279 : vector<2x5x16xf32> to vector<10x16xf32>
    %c1_149 = arith.constant 1 : index
    %c1_150 = arith.constant 1 : index
    %c0_151 = arith.constant 0 : index
    %c0_152 = arith.constant 0 : index
    %281 = vector.load %arg7[%c1_149, %c1_150, %c0_151, %c0_152] : memref<2x2x16x32xf32, #tpu.memory_space<vmem>>, vector<1x1x16x32xf32>
    %282 = vector.shape_cast %281 : vector<1x1x16x32xf32> to vector<16x32xf32>
    %cst_153 = arith.constant dense<0.000000e+00> : vector<10x32xf32>
    %283 = tpu.matmul %280, %282, %cst_153 {dimension_numbers = #tpu.dot_dimension_numbers<[1], [0], [0], [1], [0, 0, 1, 1], [], []>} : vector<10x16xf32>, vector<16x32xf32>, vector<10x32xf32> -> vector<10x32xf32>
    %284 = arith.addf %244, %283 : vector<10x32xf32>
    %285 = arith.addf %175, %284 : vector<10x32xf32>
    %286 = vector.extract_strided_slice %177 {offsets = [2, 0], sizes = [1, 32], strides = [1, 1]} : vector<6x32xf32> to vector<1x32xf32>
    %287 = vector.broadcast %286 : vector<1x32xf32> to vector<10x32xf32>
    %288 = arith.addf %285, %287 : vector<10x32xf32>
    %289 = vector.extract_strided_slice %177 {offsets = [3, 0], sizes = [1, 32], strides = [1, 1]} : vector<6x32xf32> to vector<1x32xf32>
    %290 = vector.extract_strided_slice %177 {offsets = [4, 0], sizes = [1, 32], strides = [1, 1]} : vector<6x32xf32> to vector<1x32xf32>
    %cst_154 = arith.constant dense<0.000000e+00> : vector<10xf32>
    %291 = vector.multi_reduction <add>, %288, %cst_154 [1] : vector<10x32xf32> to vector<10xf32>
    %292 = vector.shape_cast %291 : vector<10xf32> to vector<10x1xf32>
    %cst_155 = arith.constant 3.200000e+01 : f32
    %293 = vector.broadcast %cst_155 : f32 to vector<10x1xf32>
    %294 = arith.divf %292, %293 : vector<10x1xf32>
    %295 = vector.broadcast %294 : vector<10x1xf32> to vector<10x32xf32>
    %296 = arith.subf %288, %295 : vector<10x32xf32>
    %297 = arith.mulf %296, %296 : vector<10x32xf32>
    %cst_156 = arith.constant dense<0.000000e+00> : vector<10xf32>
    %298 = vector.multi_reduction <add>, %297, %cst_156 [1] : vector<10x32xf32> to vector<10xf32>
    %299 = vector.shape_cast %298 : vector<10xf32> to vector<10x1xf32>
    %cst_157 = arith.constant 3.200000e+01 : f32
    %300 = vector.broadcast %cst_157 : f32 to vector<10x1xf32>
    %301 = arith.divf %299, %300 : vector<10x1xf32>
    %302 = vector.broadcast %294 : vector<10x1xf32> to vector<10x32xf32>
    %303 = arith.subf %288, %302 : vector<10x32xf32>
    %cst_158 = arith.constant 9.99999996E-13 : f32
    %304 = vector.broadcast %cst_158 : f32 to vector<10x1xf32>
    %305 = arith.addf %301, %304 : vector<10x1xf32>
    %306 = math.rsqrt %305 : vector<10x1xf32>
    %307 = vector.broadcast %306 : vector<10x1xf32> to vector<10x32xf32>
    %308 = arith.mulf %303, %307 : vector<10x32xf32>
    %309 = vector.broadcast %289 : vector<1x32xf32> to vector<10x32xf32>
    %310 = arith.mulf %308, %309 : vector<10x32xf32>
    %311 = vector.broadcast %290 : vector<1x32xf32> to vector<10x32xf32>
    %312 = arith.addf %310, %311 : vector<10x32xf32>
    %c1_159 = arith.constant 1 : index
    %c0_160 = arith.constant 0 : index
    %c0_161 = arith.constant 0 : index
    %313 = vector.load %arg9[%c1_159, %c0_160, %c0_161] : memref<2x32x64xf32, #tpu.memory_space<vmem>>, vector<1x32x64xf32>
    %314 = vector.shape_cast %313 : vector<1x32x64xf32> to vector<32x64xf32>
    %cst_162 = arith.constant dense<0.000000e+00> : vector<10x64xf32>
    %315 = tpu.matmul %312, %314, %cst_162 {dimension_numbers = #tpu.dot_dimension_numbers<[1], [0], [0], [1], [0, 0, 1, 1], [], []>} : vector<10x32xf32>, vector<32x64xf32>, vector<10x64xf32> -> vector<10x64xf32>
    %c1_163 = arith.constant 1 : index
    %c0_164 = arith.constant 0 : index
    %c0_165 = arith.constant 0 : index
    %316 = vector.load %arg10[%c1_163, %c0_164, %c0_165] : memref<2x1x64xf32, #tpu.memory_space<vmem>>, vector<1x1x64xf32>
    %317 = vector.shape_cast %316 : vector<1x1x64xf32> to vector<1x64xf32>
    %318 = vector.broadcast %317 : vector<1x64xf32> to vector<10x64xf32>
    %319 = arith.addf %315, %318 : vector<10x64xf32>
    %320 = arith.mulf %319, %319 : vector<10x64xf32>
    %321 = arith.mulf %319, %320 : vector<10x64xf32>
    %cst_166 = arith.constant 4.471500e-02 : f32
    %322 = vector.broadcast %cst_166 : f32 to vector<10x64xf32>
    %323 = arith.mulf %322, %321 : vector<10x64xf32>
    %324 = arith.addf %319, %323 : vector<10x64xf32>
    %cst_167 = arith.constant 0.797884583 : f32
    %325 = vector.broadcast %cst_167 : f32 to vector<10x64xf32>
    %326 = arith.mulf %325, %324 : vector<10x64xf32>
    %327 = math.tanh %326 : vector<10x64xf32>
    %cst_168 = arith.constant 1.000000e+00 : f32
    %328 = vector.broadcast %cst_168 : f32 to vector<10x64xf32>
    %329 = arith.addf %328, %327 : vector<10x64xf32>
    %cst_169 = arith.constant 5.000000e-01 : f32
    %330 = vector.broadcast %cst_169 : f32 to vector<10x64xf32>
    %331 = arith.mulf %330, %329 : vector<10x64xf32>
    %332 = arith.mulf %319, %331 : vector<10x64xf32>
    %c1_170 = arith.constant 1 : index
    %c0_171 = arith.constant 0 : index
    %c0_172 = arith.constant 0 : index
    %333 = vector.load %arg11[%c1_170, %c0_171, %c0_172] : memref<2x64x32xf32, #tpu.memory_space<vmem>>, vector<1x64x32xf32>
    %334 = vector.shape_cast %333 : vector<1x64x32xf32> to vector<64x32xf32>
    %cst_173 = arith.constant dense<0.000000e+00> : vector<10x32xf32>
    %335 = tpu.matmul %332, %334, %cst_173 {dimension_numbers = #tpu.dot_dimension_numbers<[1], [0], [0], [1], [0, 0, 1, 1], [], []>} : vector<10x64xf32>, vector<64x32xf32>, vector<10x32xf32> -> vector<10x32xf32>
    %336 = vector.extract_strided_slice %177 {offsets = [5, 0], sizes = [1, 32], strides = [1, 1]} : vector<6x32xf32> to vector<1x32xf32>
    %337 = vector.broadcast %336 : vector<1x32xf32> to vector<10x32xf32>
    %338 = arith.addf %335, %337 : vector<10x32xf32>
    %339 = arith.addf %288, %338 : vector<10x32xf32>
    %c0_174 = arith.constant 0 : index
    %c0_175 = arith.constant 0 : index
    %340 = vector.load %arg15[%c0_174, %c0_175] : memref<3x32xf32, #tpu.memory_space<vmem>>, vector<3x32xf32>
    %341 = vector.extract_strided_slice %339 {offsets = [0, 0], sizes = [1, 32], strides = [1, 1]} : vector<10x32xf32> to vector<1x32xf32>
    %342 = vector.extract_strided_slice %339 {offsets = [5, 0], sizes = [1, 32], strides = [1, 1]} : vector<10x32xf32> to vector<1x32xf32>
    %343 = tpu.concatenate %341, %342 in 0 : vector<1x32xf32>, vector<1x32xf32> -> vector<2x32xf32>
    %344 = vector.extract_strided_slice %340 {offsets = [0, 0], sizes = [1, 32], strides = [1, 1]} : vector<3x32xf32> to vector<1x32xf32>
    %345 = vector.extract_strided_slice %340 {offsets = [1, 0], sizes = [1, 32], strides = [1, 1]} : vector<3x32xf32> to vector<1x32xf32>
    %cst_176 = arith.constant dense<0.000000e+00> : vector<2xf32>
    %346 = vector.multi_reduction <add>, %343, %cst_176 [1] : vector<2x32xf32> to vector<2xf32>
    %347 = vector.shape_cast %346 : vector<2xf32> to vector<2x1xf32>
    %cst_177 = arith.constant 3.200000e+01 : f32
    %348 = vector.broadcast %cst_177 : f32 to vector<2x1xf32>
    %349 = arith.divf %347, %348 : vector<2x1xf32>
    %350 = vector.broadcast %349 : vector<2x1xf32> to vector<2x32xf32>
    %351 = arith.subf %343, %350 : vector<2x32xf32>
    %352 = arith.mulf %351, %351 : vector<2x32xf32>
    %cst_178 = arith.constant dense<0.000000e+00> : vector<2xf32>
    %353 = vector.multi_reduction <add>, %352, %cst_178 [1] : vector<2x32xf32> to vector<2xf32>
    %354 = vector.shape_cast %353 : vector<2xf32> to vector<2x1xf32>
    %cst_179 = arith.constant 3.200000e+01 : f32
    %355 = vector.broadcast %cst_179 : f32 to vector<2x1xf32>
    %356 = arith.divf %354, %355 : vector<2x1xf32>
    %357 = vector.broadcast %349 : vector<2x1xf32> to vector<2x32xf32>
    %358 = arith.subf %343, %357 : vector<2x32xf32>
    %cst_180 = arith.constant 9.99999996E-13 : f32
    %359 = vector.broadcast %cst_180 : f32 to vector<2x1xf32>
    %360 = arith.addf %356, %359 : vector<2x1xf32>
    %361 = math.rsqrt %360 : vector<2x1xf32>
    %362 = vector.broadcast %361 : vector<2x1xf32> to vector<2x32xf32>
    %363 = arith.mulf %358, %362 : vector<2x32xf32>
    %364 = vector.broadcast %344 : vector<1x32xf32> to vector<2x32xf32>
    %365 = arith.mulf %363, %364 : vector<2x32xf32>
    %366 = vector.broadcast %345 : vector<1x32xf32> to vector<2x32xf32>
    %367 = arith.addf %365, %366 : vector<2x32xf32>
    %c0_181 = arith.constant 0 : index
    %c0_182 = arith.constant 0 : index
    %368 = vector.load %arg13[%c0_181, %c0_182] : memref<32x32xf32, #tpu.memory_space<vmem>>, vector<32x32xf32>
    %cst_183 = arith.constant dense<0.000000e+00> : vector<2x32xf32>
    %369 = tpu.matmul %367, %368, %cst_183 {dimension_numbers = #tpu.dot_dimension_numbers<[1], [0], [0], [1], [0, 0, 1, 1], [], []>} : vector<2x32xf32>, vector<32x32xf32>, vector<2x32xf32> -> vector<2x32xf32>
    %370 = vector.extract_strided_slice %340 {offsets = [2, 0], sizes = [1, 32], strides = [1, 1]} : vector<3x32xf32> to vector<1x32xf32>
    %371 = vector.broadcast %370 : vector<1x32xf32> to vector<2x32xf32>
    %372 = arith.addf %369, %371 : vector<2x32xf32>
    %cst_184 = arith.constant 0.000000e+00 : f32
    %373 = vector.broadcast %cst_184 : f32 to vector<2x32xf32>
    %374 = arith.maximumf %372, %373 : vector<2x32xf32>
    %c0_185 = arith.constant 0 : index
    %c0_186 = arith.constant 0 : index
    %375 = vector.load %arg14[%c0_185, %c0_186] : memref<32x16xf32, #tpu.memory_space<vmem>>, vector<32x16xf32>
    %cst_187 = arith.constant dense<0.000000e+00> : vector<2x16xf32>
    %376 = tpu.matmul %374, %375, %cst_187 {dimension_numbers = #tpu.dot_dimension_numbers<[1], [0], [0], [1], [0, 0, 1, 1], [], []>} : vector<2x32xf32>, vector<32x16xf32>, vector<2x16xf32> -> vector<2x16xf32>
    %c0_188 = arith.constant 0 : index
    %c0_189 = arith.constant 0 : index
    %377 = vector.load %arg16[%c0_188, %c0_189] : memref<1x16xf32, #tpu.memory_space<vmem>>, vector<1x16xf32>
    %378 = vector.broadcast %377 : vector<1x16xf32> to vector<2x16xf32>
    %379 = arith.addf %376, %378 : vector<2x16xf32>
    %c0_190 = arith.constant 0 : index
    %c0_191 = arith.constant 0 : index
    %380 = vector.load %arg17[%c0_190, %c0_191] : memref<2x16xf32, #tpu.memory_space<vmem>>, vector<2x16xf32>
    tpu.vector_store %arg17[%c0_190, %c0_191], %379 {strides = array<i32>} : memref<2x16xf32, #tpu.memory_space<vmem>>, vector<2x16xf32>,
    return
  }
  func.func @transform_0(%arg0: i32) -> (i32, i32) {
    %c0_i32 = arith.constant 0 : i32
    %c0_i32_0 = arith.constant 0 : i32
    %c0_i32_1 = arith.constant 0 : i32
    return %c0_i32, %c0_i32_0 : i32, i32
  }
  func.func @transform_1(%arg0: i32) -> (i32, i32) {
    %c0_i32 = arith.constant 0 : i32
    %c0_i32_0 = arith.constant 0 : i32
    %c0_i32_1 = arith.constant 0 : i32
    return %c0_i32, %c0_i32_0 : i32, i32
  }
  func.func @transform_2(%arg0: i32) -> (i32, i32) {
    %c0_i32 = arith.constant 0 : i32
    %c0_i32_0 = arith.constant 0 : i32
    %c0_i32_1 = arith.constant 0 : i32
    return %c0_i32, %c0_i32_0 : i32, i32
  }
  func.func @transform_3(%arg0: i32) -> (i32, i32, i32, i32) {
    %c0_i32 = arith.constant 0 : i32
    %c0_i32_0 = arith.constant 0 : i32
    %c0_i32_1 = arith.constant 0 : i32
    %c0_i32_2 = arith.constant 0 : i32
    %c0_i32_3 = arith.constant 0 : i32
    return %c0_i32, %c0_i32_0, %c0_i32_1, %c0_i32_2 : i32, i32, i32, i32
  }
  func.func @transform_4(%arg0: i32) -> (i32, i32, i32, i32) {
    %c0_i32 = arith.constant 0 : i32
    %c0_i32_0 = arith.constant 0 : i32
    %c0_i32_1 = arith.constant 0 : i32
    %c0_i32_2 = arith.constant 0 : i32
    %c0_i32_3 = arith.constant 0 : i32
    return %c0_i32, %c0_i32_0, %c0_i32_1, %c0_i32_2 : i32, i32, i32, i32
  }
  func.func @transform_5(%arg0: i32) -> (i32, i32, i32, i32) {
    %c0_i32 = arith.constant 0 : i32
    %c0_i32_0 = arith.constant 0 : i32
    %c0_i32_1 = arith.constant 0 : i32
    %c0_i32_2 = arith.constant 0 : i32
    %c0_i32_3 = arith.constant 0 : i32
    return %c0_i32, %c0_i32_0, %c0_i32_1, %c0_i32_2 : i32, i32, i32, i32
  }
  func.func @transform_6(%arg0: i32) -> (i32, i32, i32, i32) {
    %c0_i32 = arith.constant 0 : i32
    %c0_i32_0 = arith.constant 0 : i32
    %c0_i32_1 = arith.constant 0 : i32
    %c0_i32_2 = arith.constant 0 : i32
    %c0_i32_3 = arith.constant 0 : i32
    return %c0_i32, %c0_i32_0, %c0_i32_1, %c0_i32_2 : i32, i32, i32, i32
  }
  func.func @transform_7(%arg0: i32) -> (i32, i32, i32) {
    %c0_i32 = arith.constant 0 : i32
    %c0_i32_0 = arith.constant 0 : i32
    %c0_i32_1 = arith.constant 0 : i32
    %c0_i32_2 = arith.constant 0 : i32
    return %c0_i32, %c0_i32_0, %c0_i32_1 : i32, i32, i32
  }
  func.func @transform_8(%arg0: i32) -> (i32, i32, i32) {
    %c0_i32 = arith.constant 0 : i32
    %c0_i32_0 = arith.constant 0 : i32
    %c0_i32_1 = arith.constant 0 : i32
    %c0_i32_2 = arith.constant 0 : i32
    return %c0_i32, %c0_i32_0, %c0_i32_1 : i32, i32, i32
  }
  func.func @transform_9(%arg0: i32) -> (i32, i32, i32) {
    %c0_i32 = arith.constant 0 : i32
    %c0_i32_0 = arith.constant 0 : i32
    %c0_i32_1 = arith.constant 0 : i32
    %c0_i32_2 = arith.constant 0 : i32
    return %c0_i32, %c0_i32_0, %c0_i32_1 : i32, i32, i32
  }
  func.func @transform_10(%arg0: i32) -> (i32, i32, i32) {
    %c0_i32 = arith.constant 0 : i32
    %c0_i32_0 = arith.constant 0 : i32
    %c0_i32_1 = arith.constant 0 : i32
    %c0_i32_2 = arith.constant 0 : i32
    return %c0_i32, %c0_i32_0, %c0_i32_1 : i32, i32, i32
  }
  func.func @transform_11(%arg0: i32) -> (i32, i32, i32) {
    %c0_i32 = arith.constant 0 : i32
    %c0_i32_0 = arith.constant 0 : i32
    %c0_i32_1 = arith.constant 0 : i32
    %c0_i32_2 = arith.constant 0 : i32
    return %c0_i32, %c0_i32_0, %c0_i32_1 : i32, i32, i32
  }
  func.func @transform_12(%arg0: i32) -> (i32, i32) {
    %c0_i32 = arith.constant 0 : i32
    %c0_i32_0 = arith.constant 0 : i32
    %c0_i32_1 = arith.constant 0 : i32
    return %c0_i32, %c0_i32_0 : i32, i32
  }
  func.func @transform_13(%arg0: i32) -> (i32, i32) {
    %c0_i32 = arith.constant 0 : i32
    %c0_i32_0 = arith.constant 0 : i32
    %c0_i32_1 = arith.constant 0 : i32
    return %c0_i32, %c0_i32_0 : i32, i32
  }
  func.func @transform_14(%arg0: i32) -> (i32, i32) {
    %c0_i32 = arith.constant 0 : i32
    %c0_i32_0 = arith.constant 0 : i32
    %c0_i32_1 = arith.constant 0 : i32
    return %c0_i32, %c0_i32_0 : i32, i32
  }
  func.func @transform_15(%arg0: i32) -> (i32, i32) {
    %c0_i32 = arith.constant 0 : i32
    %c0_i32_0 = arith.constant 0 : i32
    %c0_i32_1 = arith.constant 0 : i32
    return %c0_i32, %c0_i32_0 : i32, i32
  }
  func.func @transform_16(%arg0: i32) -> (i32, i32) {
    %c0_i32 = arith.constant 0 : i32
    %c0_i32_0 = arith.constant 0 : i32
    %c0_i32_1 = arith.constant 0 : i32
    return %c0_i32, %c0_i32_0 : i32, i32
  }
}

</mosaic_0001>

<bundles_post_ra>
// kernel: vit_simclr_forward.1
= control target key start
LH: loop header
LB: loop body
LE: loop exit
PB: predicated region body
PF: predicated region fallthrough
CT: control target
= control target key end

     0   :  { %s8675_s0 = inlined_call_operand.vmem [shape: f32[8,768], index: 0, kind: input, shape index: {}]   ;;  %s8676_s1 = inlined_call_operand.vmem [shape: f32[768,32], index: 1, kind: input, shape index: {}]   ;;  %s8677_s2 = inlined_call_operand.vmem [shape: f32[5,32], index: 2, kind: input, shape index: {}]   ;;  %s8678_s3 = inlined_call_operand.vmem [shape: f32[2,2,32,16], index: 3, kind: input, shape index: {}]   ;;  %s8679_s4 = inlined_call_operand.vmem [shape: f32[2,2,32,16], index: 4, kind: input, shape index: {}]   ;;  %s8680_s5 = inlined_call_operand.vmem [shape: f32[2,2,32,16], index: 5, kind: input, shape index: {}]   ;;  %s8681_s6 = inlined_call_operand.vmem [shape: f32[2,2,16,32], index: 6, kind: input, shape index: {}]   ;;  %s8682_s7 = inlined_call_operand.vmem [shape: f32[2,6,16], index: 7, kind: input, shape index: {}]   ;;  %s8683_s8 = inlined_call_operand.vmem [shape: f32[2,32,64], index: 8, kind: input, shape index: {}]   ;;  %s8684_s9 = inlined_call_operand.vmem [shape: f32[2,1,64], index: 9, kind: input, shape index: {}]   ;;  %s8685_s10 = inlined_call_operand.vmem [shape: f32[2,64,32], index: 10, kind: input, shape index: {}]   ;;  %s8686_s11 = inlined_call_operand.vmem [shape: f32[2,6,32], index: 11, kind: input, shape index: {}]   ;;  %s8687_s12 = inlined_call_operand.vmem [shape: f32[32,32], index: 12, kind: input, shape index: {}]   ;;  %s8688_s13 = inlined_call_operand.vmem [shape: f32[32,16], index: 13, kind: input, shape index: {}]   ;;  %s8689_s14 = inlined_call_operand.vmem [shape: f32[3,32], index: 14, kind: input, shape index: {}]   ;;  %s8690_s15 = inlined_call_operand.vmem [shape: f32[1,16], index: 15, kind: input, shape index: {}]   ;;  %s8691_s16 = inlined_call_operand.hbm [shape: f32[2,16], index: 16, kind: output, shape index: {}]  }
   0x1   :  { %8693 = sst [smem:[#allocation5_spill]] %s8675_s0 }
   0x2   :  { %v76_v0 = vld [vmem:[%s8676_s1 + $0x80] sm:$0xff]  ;;  %v77_v1 = vld [vmem:[%s8676_s1 + $0x88] sm:$0xff]  ;;  %v78_v11 = vld [vmem:[%s8676_s1 + $0x90] sm:$0xff]  ;;  %s8694_s28 = sld [smem:[#allocation5_spill]] }
   0x3   :  { %v108_v2 = vld [vmem:[%s8676_s1 + $0x180] sm:$0xff]  ;;  %v6949_v3 = vpack.c.bf16 %v77_v1, %v76_v0  ;;  %v109_v4 = vld [vmem:[%s8676_s1 + $0x188] sm:$0xff]  ;;  %v79_v13 = vld [vmem:[%s8676_s1 + $0x98] sm:$0xff] }
   0x4   :  { %v60_v5 = vld [vmem:[%s8676_s1] sm:$0xff]  ;;  %v61_v6 = vld [vmem:[%s8676_s1 + $0x8] sm:$0xff]  ;;  %v6981_v7 = vpack.c.bf16 %v109_v4, %v108_v2  ;;  %v110_v14 = vld [vmem:[%s8676_s1 + $0x190] sm:$0xff]  ;;  %v6953_v16 = vpack.c.bf16 %v79_v13, %v78_v11 }
   0x5   :  { %v6951_v8 = vpack.c.bf16 %v61_v6, %v60_v5  ;;  %v92_v9 = vld [vmem:[%s8676_s1 + $0x100] sm:$0xff]  ;;  %v93_v10 = vld [vmem:[%s8676_s1 + $0x108] sm:$0xff]  ;;  %6950 = vmatprep.subr.bf16.mxu0 %v6949_v3  ;;  %v111_v15 = vld [vmem:[%s8676_s1 + $0x198] sm:$0xff] }
   0x6   :  { %v6983_v12 = vpack.c.bf16 %v93_v10, %v92_v9  ;;  %6982 = vmatprep.subr.bf16.mxu1 %v6981_v7  ;;  %v6985_v17 = vpack.c.bf16 %v111_v15, %v110_v14  ;;  %v62_v18 = vld [vmem:[%s8676_s1 + $0x10] sm:$0xff]  ;;  %v63_v19 = vld [vmem:[%s8676_s1 + $0x18] sm:$0xff]  ;;  %v80_v23 = vld [vmem:[%s8676_s1 + $0xa0] sm:$0xff] }
   0x7   :  { %6952 = vmatpush3.bf16.msra.mxu0 %v6951_v8  ;;  %v94_v20 = vld [vmem:[%s8676_s1 + $0x110] sm:$0xff]  ;;  %v6955_v21 = vpack.c.bf16 %v63_v19, %v62_v18  ;;  %v95_v22 = vld [vmem:[%s8676_s1 + $0x118] sm:$0xff]  ;;  %v81_v24 = vld [vmem:[%s8676_s1 + $0xa8] sm:$0xff] }
   0x8   :  { %6984 = vmatpush3.bf16.msra.mxu1 %v6983_v12  ;;  %6954 = vmatprep.subr.bf16.mxu0 %v6953_v16  ;;  %v6987_v25 = vpack.c.bf16 %v95_v22, %v94_v20  ;;  %v6957_v26 = vpack.c.bf16 %v81_v24, %v80_v23  ;;  %v112_v27 = vld [vmem:[%s8676_s1 + $0x1a0] sm:$0xff]  ;;  %v113_v28 = vld [vmem:[%s8676_s1 + $0x1a8] sm:$0xff]  ;;  %v82_v35 = vld [vmem:[%s8676_s1 + $0xb0] sm:$0xff] }
   0x9   :  { %6986 = vmatprep.subr.bf16.mxu1 %v6985_v17  ;;  %v64_v29 = vld [vmem:[%s8676_s1 + $0x20] sm:$0xff]  ;;  %v6989_v30 = vpack.c.bf16 %v113_v28, %v112_v27  ;;  %v65_v31 = vld [vmem:[%s8676_s1 + $0x28] sm:$0xff]  ;;  %v83_v36 = vld [vmem:[%s8676_s1 + $0xb8] sm:$0xff] }
   0xa   :  { %v96_v32 = vld [vmem:[%s8676_s1 + $0x120] sm:$0xff]  ;;  %v97_v33 = vld [vmem:[%s8676_s1 + $0x128] sm:$0xff]  ;;  %v6959_v34 = vpack.c.bf16 %v65_v31, %v64_v29  ;;  %v114_v37 = vld [vmem:[%s8676_s1 + $0x1b0] sm:$0xff]  ;;  %v6961_v39 = vpack.c.bf16 %v83_v36, %v82_v35 }
   0xb   :  { %6956 = vmatpush3.bf16.msra.mxu0 %v6955_v21  ;;  %v6991_v38 = vpack.c.bf16 %v97_v33, %v96_v32  ;;  %v115_v40 = vld [vmem:[%s8676_s1 + $0x1b8] sm:$0xff]  ;;  %v66_v41 = vld [vmem:[%s8676_s1 + $0x30] sm:$0xff]  ;;  %v84_v46 = vld [vmem:[%s8676_s1 + $0xc0] sm:$0xff] }
   0xc   :  { %6988 = vmatpush3.bf16.msra.mxu1 %v6987_v25  ;;  %6958 = vmatprep.subr.bf16.mxu0 %v6957_v26  ;;  %v67_v42 = vld [vmem:[%s8676_s1 + $0x38] sm:$0xff]  ;;  %v6993_v43 = vpack.c.bf16 %v115_v40, %v114_v37  ;;  %v98_v44 = vld [vmem:[%s8676_s1 + $0x130] sm:$0xff]  ;;  %v85_v47 = vld [vmem:[%s8676_s1 + $0xc8] sm:$0xff] }
   0xd   :  { %6990 = vmatprep.subr.bf16.mxu1 %v6989_v30  ;;  %v99_v45 = vld [vmem:[%s8676_s1 + $0x138] sm:$0xff]  ;;  %v116_v48 = vld [vmem:[%s8676_s1 + $0x1c0] sm:$0xff]  ;;  %v117_v49 = vld [vmem:[%s8676_s1 + $0x1c8] sm:$0xff]  ;;  %v6963_v50 = vpack.c.bf16 %v67_v42, %v66_v41  ;;  %v6965_v52 = vpack.c.bf16 %v85_v47, %v84_v46 }
   0xe   :  { %v6995_v51 = vpack.c.bf16 %v99_v45, %v98_v44  ;;  %v68_v53 = vld [vmem:[%s8676_s1 + $0x40] sm:$0xff]  ;;  %v69_v54 = vld [vmem:[%s8676_s1 + $0x48] sm:$0xff]  ;;  %v6997_v56 = vpack.c.bf16 %v117_v49, %v116_v48  ;;  %v86_v58 = vld [vmem:[%s8676_s1 + $0xd0] sm:$0xff] }
   0xf   :  { %6960 = vmatpush3.bf16.msra.mxu0 %v6959_v34  ;;  %v100_v55 = vld [vmem:[%s8676_s1 + $0x140] sm:$0xff]  ;;  %v101_v57 = vld [vmem:[%s8676_s1 + $0x148] sm:$0xff]  ;;  %v87_v59 = vld [vmem:[%s8676_s1 + $0xd8] sm:$0xff]  ;;  %v6967_v62 = vpack.c.bf16 %v69_v54, %v68_v53 }
  0x10   :  { %6992 = vmatpush3.bf16.msra.mxu1 %v6991_v38  ;;  %6962 = vmatprep.subr.bf16.mxu0 %v6961_v39  ;;  %v118_v60 = vld [vmem:[%s8676_s1 + $0x1d0] sm:$0xff]  ;;  %v119_v61 = vld [vmem:[%s8676_s1 + $0x1d8] sm:$0xff]  ;;  %v6999_v63 = vpack.c.bf16 %v101_v57, %v100_v55  ;;  %v6969_v0 = vpack.c.bf16 %v87_v59, %v86_v58  ;;  %v88_v6 = vld [vmem:[%s8676_s1 + $0xe0] sm:$0xff] }
  0x11   :  { %6994 = vmatprep.subr.bf16.mxu1 %v6993_v43  ;;  %v70_v1 = vld [vmem:[%s8676_s1 + $0x50] sm:$0xff]  ;;  %v71_v2 = vld [vmem:[%s8676_s1 + $0x58] sm:$0xff]  ;;  %v7001_v4 = vpack.c.bf16 %v119_v61, %v118_v60  ;;  %v89_v7 = vld [vmem:[%s8676_s1 + $0xe8] sm:$0xff] }
  0x12   :  { %v102_v3 = vld [vmem:[%s8676_s1 + $0x150] sm:$0xff]  ;;  %v103_v5 = vld [vmem:[%s8676_s1 + $0x158] sm:$0xff]  ;;  %v120_v8 = vld [vmem:[%s8676_s1 + $0x1e0] sm:$0xff]  ;;  %v6971_v10 = vpack.c.bf16 %v71_v2, %v70_v1  ;;  %v6973_v14 = vpack.c.bf16 %v89_v7, %v88_v6 }
  0x13   :  { %6964 = vmatpush3.bf16.msra.mxu0 %v6963_v50  ;;  %v121_v9 = vld [vmem:[%s8676_s1 + $0x1e8] sm:$0xff]  ;;  %v72_v11 = vld [vmem:[%s8676_s1 + $0x60] sm:$0xff]  ;;  %v7003_v13 = vpack.c.bf16 %v103_v5, %v102_v3  ;;  %v57_v17 = vld [vmem:[%s8694_s28 + $0x18] sm:$0xff] }
  0x14   :  { %6996 = vmatpush3.bf16.msra.mxu1 %v6995_v51  ;;  %6966 = vmatprep.subr.bf16.mxu0 %v6965_v52  ;;  %v73_v12 = vld [vmem:[%s8676_s1 + $0x68] sm:$0xff]  ;;  %v104_v15 = vld [vmem:[%s8676_s1 + $0x160] sm:$0xff]  ;;  %v7005_v18 = vpack.c.bf16 %v121_v9, %v120_v8  ;;  %v90_v20 = vld [vmem:[%s8676_s1 + $0xf0] sm:$0xff] }
  0x15   :  { %6998 = vmatprep.subr.bf16.mxu1 %v6997_v56  ;;  %v55_v16 = vld [vmem:[%s8694_s28 + $0x8] sm:$0xff]  ;;  %v91_v21 = vld [vmem:[%s8676_s1 + $0xf8] sm:$0xff]  ;;  %v122_v22 = vld [vmem:[%s8676_s1 + $0x1f0] sm:$0xff]  ;;  %290 = vmatprep.mubr.f32.mxu1 %v57_v17  ;;  %v6975_v24 = vpack.c.bf16 %v73_v12, %v72_v11 }
  0x16   :  { %v105_v19 = vld [vmem:[%s8676_s1 + $0x168] sm:$0xff]  ;;  %220 = vmatprep.mubr.f32.mxu0 %v55_v16  ;;  %v123_v23 = vld [vmem:[%s8676_s1 + $0x1f8] sm:$0xff]  ;;  %v6977_v26 = vpack.c.bf16 %v91_v21, %v90_v20  ;;  %v74_v27 = vld [vmem:[%s8676_s1 + $0x70] sm:$0xff] }
  0x17   :  { %6968 = vmatpush3.bf16.msra.mxu0 %v6967_v62  ;;  %v7007_v25 = vpack.c.bf16 %v105_v19, %v104_v15  ;;  %v75_v28 = vld [vmem:[%s8676_s1 + $0x78] sm:$0xff]  ;;  %v106_v29 = vld [vmem:[%s8676_s1 + $0x170] sm:$0xff]  ;;  %v7009_v30 = vpack.c.bf16 %v123_v23, %v122_v22  ;;  %v140_v32 = vld [vmem:[%s8676_s1 + $0x280] sm:$0xff] }
  0x18   :  { %7000 = vmatpush3.bf16.msra.mxu1 %v6999_v63  ;;  %6970 = vmatprep.subr.bf16.mxu0 %v6969_v0  ;;  %v107_v31 = vld [vmem:[%s8676_s1 + $0x178] sm:$0xff]  ;;  %v141_v33 = vld [vmem:[%s8676_s1 + $0x288] sm:$0xff]  ;;  %v6979_v34 = vpack.c.bf16 %v75_v28, %v74_v27  ;;  %v124_v37 = vld [vmem:[%s8676_s1 + $0x200] sm:$0xff] }
  0x19   :  { %7002 = vmatprep.subr.bf16.mxu1 %v7001_v4  ;;  %v7011_v35 = vpack.c.bf16 %v107_v31, %v106_v29  ;;  %v7013_v36 = vpack.c.bf16 %v141_v33, %v140_v32  ;;  %v125_v38 = vld [vmem:[%s8676_s1 + $0x208] sm:$0xff]  ;;  %v142_v39 = vld [vmem:[%s8676_s1 + $0x290] sm:$0xff]  ;;  %v143_v40 = vld [vmem:[%s8676_s1 + $0x298] sm:$0xff] }
  0x1a   :  { %v54_v41 = vld [vmem:[%s8694_s28] sm:$0xff]  ;;  %v56_v42 = vld [vmem:[%s8694_s28 + $0x10] sm:$0xff]  ;;  %v7015_v43 = vpack.c.bf16 %v125_v38, %v124_v37  ;;  %v7017_v44 = vpack.c.bf16 %v143_v40, %v142_v39  ;;  %v127_v46 = vld [vmem:[%s8676_s1 + $0x218] sm:$0xff] }
  0x1b   :  { %6972 = vmatpush3.bf16.msra.mxu0 %v6971_v10  ;;  %v126_v45 = vld [vmem:[%s8676_s1 + $0x210] sm:$0xff]  ;;  %v144_v47 = vld [vmem:[%s8676_s1 + $0x2a0] sm:$0xff]  ;;  %v145_v48 = vld [vmem:[%s8676_s1 + $0x2a8] sm:$0xff] }
  0x1c   :  { %7004 = vmatpush3.bf16.msra.mxu1 %v7003_v13  ;;  %6974 = vmatprep.subr.bf16.mxu0 %v6973_v14  ;;  %v59_v49 = vld [vmem:[%s8694_s28 + $0x28] sm:$0xff] }
  0x1d   :  { %7006 = vmatprep.subr.bf16.mxu1 %v7005_v18 }
  0x1f   :  { %6976 = vmatpush3.bf16.msra.mxu0 %v6975_v24 }
  0x20   :  { %7008 = vmatpush3.bf16.msra.mxu1 %v7007_v25  ;;  %6978 = vmatprep.subr.bf16.mxu0 %v6977_v26 }
  0x21   :  { %7010 = vmatprep.subr.bf16.mxu1 %v7009_v30 }
  0x23   :  { %6980 = vmatpush3.bf16.msra.mxu0 %v6979_v34 }
  0x24   :  { %7012 = vmatpush3.bf16.msra.mxu1 %v7011_v35  ;;  %7014 = vmatprep.subr.bf16.mxu0 %v7013_v36 }
  0x25   :  { %21 = vsyncpa [#allocation3], 0  ;;  %v7019_v50 = vpack.c.bf16 %v127_v46, %v126_v45  ;;  %v7021_v51 = vpack.c.bf16 %v145_v48, %v144_v47  ;;  %v128_v52 = vld [vmem:[%s8676_s1 + $0x220] sm:$0xff]  ;;  %v129_v53 = vld [vmem:[%s8676_s1 + $0x228] sm:$0xff]  ;;  %vm382_vm0 = vcmask 1040384   ;;  %vm384_vm1 = vcmask 1044480  }
  0x26   :  { %221 = vmatmul.mubr.f32.vlgmr.msra.gmra.mrb[0].mxu0 %v54_v41  ;;  %v146_v54 = vld [vmem:[%s8676_s1 + $0x2b0] sm:$0xff]  ;;  %v147_v55 = vld [vmem:[%s8676_s1 + $0x2b8] sm:$0xff]  ;;  %v7023_v56 = vpack.c.bf16 %v129_v53, %v128_v52  ;;  %v148_v60 = vld [vmem:[%s8676_s1 + $0x2c0] sm:$0xff]  ;;  %vm386_vm2 = vcmask 1045504   ;;  %vm390_vm3 = vcmask 261120   ;;  %vm394_vm4 = vcmask 254976  }
  0x27   :  { %291 = vmatmul.mubr.f32.vlgmr.msra.gmra.mrb[0].mxu1 %v56_v42  ;;  %7016 = vmatpush3.bf16.msra.mxu0 %v7015_v43  ;;  %v7025_v57 = vpack.c.bf16 %v147_v55, %v146_v54  ;;  %v130_v58 = vld [vmem:[%s8676_s1 + $0x230] sm:$0xff]  ;;  %v131_v59 = vld [vmem:[%s8676_s1 + $0x238] sm:$0xff]  ;;  %v149_v61 = vld [vmem:[%s8676_s1 + $0x2c8] sm:$0xff]  ;;  %vm7311_vm5 = vmmov 0   ;;  %vm983_vm6 = vcmask 130048   ;;  %vm1212_vm7 = vcmask 36864  }
  0x28   :  { %7018 = vmatprep.subr.bf16.mxu0 %v7017_v44  ;;  %360 = vmatprep.mubr.f32.mxu0 %v59_v49  ;;  %v7027_v62 = vpack.c.bf16 %v131_v59, %v130_v58  ;;  %v7029_v63 = vpack.c.bf16 %v149_v61, %v148_v60  ;;  %v132_v0 = vld [vmem:[%s8676_s1 + $0x240] sm:$0xff]  ;;  %v133_v1 = vld [vmem:[%s8676_s1 + $0x248] sm:$0xff]  ;;  %v150_v2 = vld [vmem:[%s8676_s1 + $0x2d0] sm:$0xff]  ;;  %vm1274_vm8 = vcmask 39936   ;;  %vm3110_vm9 = vcmask 523264   ;;  %s7314_s26 = smov [#allocation2]  }
  0x29   :  { %v151_v3 = vld [vmem:[%s8676_s1 + $0x2d8] sm:$0xff]  ;;  %v7031_v4 = vpack.c.bf16 %v133_v1, %v132_v0  ;;  %v134_v6 = vld [vmem:[%s8676_s1 + $0x250] sm:$0xff]  ;;  %v152_v8 = vld [vmem:[%s8676_s1 + $0x2e0] sm:$0xff]  ;;  %s6202_s27 = sshll.u32 %s7314_s26, 4  ;;  %vm6194_vm10 = vcmask 123904   ;;  %s6203_s27 = int_to_ptr.vmem [resolvable:$true] %s6202_s27 }
  0x2a   :  { %v7033_v5 = vpack.c.bf16 %v151_v3, %v150_v2  ;;  %v135_v7 = vld [vmem:[%s8676_s1 + $0x258] sm:$0xff]  ;;  %v153_v9 = vld [vmem:[%s8676_s1 + $0x2e8] sm:$0xff]  ;;  %v136_v12 = vld [vmem:[%s8676_s1 + $0x260] sm:$0xff]  ;;  %v419_v3 = vlaneseq  ;;  %p7291_p1 = scmp.lt.s32.totalorder %s6203_s27, %s6203_s27 }
  0x2b   :  { %7020 = vmatpush3.bf16.msra.mxu0 %v7019_v50  ;;  %v7035_v10 = vpack.c.bf16 %v135_v7, %v134_v6  ;;  %v7037_v11 = vpack.c.bf16 %v153_v9, %v152_v8  ;;  %v137_v13 = vld [vmem:[%s8676_s1 + $0x268] sm:$0xff]  ;;  %v154_v14 = vld [vmem:[%s8676_s1 + $0x2f0] sm:$0xff]  ;;  %v155_v15 = vld [vmem:[%s8676_s1 + $0x2f8] sm:$0xff] }
  0x2c   :  { %7022 = vmatprep.subr.bf16.mxu0 %v7021_v51  ;;  %v7039_v16 = vpack.c.bf16 %v137_v13, %v136_v12  ;;  %v7041_v17 = vpack.c.bf16 %v155_v15, %v154_v14  ;;  %v138_v18 = vld [vmem:[%s8676_s1 + $0x270] sm:$0xff]  ;;  %v139_v19 = vld [vmem:[%s8676_s1 + $0x278] sm:$0xff]  ;;  %v58_v21 = vld [vmem:[%s8694_s28 + $0x20] sm:$0xff]  ;;  %v7745_v7 = vshrl.u32 %v419_v3, 7 }
  0x2d   :  { %v7043_v20 = vpack.c.bf16 %v139_v19, %v138_v18  ;;  %v367_v29 = vld [vmem:[%s8677_s2 + $0x1] sm:$0xf]  ;;  %v366_v35 = vld [vmem:[%s8677_s2] sm:$0x1]  ;;  %v433_v59 = vld [vmem:[%s8678_s3 + $0x10] sm:$0xff] }
  0x2e   :  { %v370_v33 = vrot.slane %v367_v29, 4  ;;  %v377_v38 = vrot.slane %v366_v35, 3  ;;  %v434_v60 = vld [vmem:[%s8678_s3 + $0x18] sm:$0xff]  ;;  %v7748_v9 = vsub.s32 0, %v7745_v7 }
  0x2f   :  { %7024 = vmatpush3.bf16.msra.mxu0 %v7023_v56  ;;  %v431_v56 = vld [vmem:[%s8678_s3] sm:$0xff]  ;;  %v7049_v61 = vpack.c.bf16 %v434_v60, %v433_v59  ;;  %v7825_v60 = vsub.s32 4, %v7745_v7 }
  0x30   :  { %7026 = vmatprep.subr.bf16.mxu0 %v7025_v57  ;;  %v432_v57 = vld [vmem:[%s8678_s3 + $0x8] sm:$0xff] }
  0x31   :  { %v7045_v58 = vpack.c.bf16 %v432_v57, %v431_v56 }
  0x33   :  { %7028 = vmatpush3.bf16.msra.mxu0 %v7027_v62  ;;  %7046 = vmatprep.subr.bf16.mxu1 %v7045_v58  ;;  %v520_v62 = vld [vmem:[%s8679_s4] sm:$0xff] }
  0x34   :  { %7030 = vmatprep.subr.bf16.mxu0 %v7029_v63  ;;  %7048 = vmatpush3.bf16.msra.mxu1 %v7045_v58  ;;  %v521_v63 = vld [vmem:[%s8679_s4 + $0x8] sm:$0xff] }
  0x35   :  { %7050 = vmatprep.subr.bf16.mxu1 %v7049_v61  ;;  %v7053_v0 = vpack.c.bf16 %v521_v63, %v520_v62 }
  0x37   :  { %7032 = vmatpush3.bf16.msra.mxu0 %v7031_v4 }
  0x38   :  { %7034 = vmatprep.subr.bf16.mxu0 %v7033_v5  ;;  %7052 = vmatpush3.bf16.msra.mxu1 %v7049_v61 }
  0x39   :  { %7054 = vmatprep.subr.bf16.mxu1 %v7053_v0 }
  0x3b   :  { %7036 = vmatpush3.bf16.msra.mxu0 %v7035_v10  ;;  %v7753_v10 = vld [vmem:[%s8686_s11] sm:$0x3f] }
  0x3c   :  { %7038 = vmatprep.subr.bf16.mxu0 %v7037_v11  ;;  %v7756_v11 = vsub.s32 1, %v7745_v7  ;;  %v422_v12 = vrot.slane %v7753_v10, %v7748_v9 }
  0x3e   :  { %v428_v14 = vrot.slane %v7753_v10, %v7756_v11 }
  0x3f   :  { %7040 = vmatpush3.bf16.msra.mxu0 %v7039_v16 }
  0x40   :  { %7042 = vmatprep.subr.bf16.mxu0 %v7041_v17 }
  0x43   :  { %7044 = vmatpush3.bf16.msra.mxu0 %v7043_v20  ;;  %v522_v20 = vld [vmem:[%s8679_s4 + $0x10] sm:$0xff] }
  0x46   :  { %361 = vmatmul.mubr.f32.vlgmr.msra.gmra.mrb[2].mxu0 %v58_v21  ;;  %v523_v21 = vld [vmem:[%s8679_s4 + $0x18] sm:$0xff] }
  0xf9   :  { %v6392_v22 = vpop.f32.mrb[0].mxu0 }
  0xfa   :  { %v6427_v23 = vpop.f32.mrb[0].mxu1  ;;  %v6393_v24 = vpop.f32.mrb[1].mxu0 }
  0xfb   :  { %v6394_v25 = vadd.f32 %v6393_v24, %v6392_v22  ;;  %v6428_v26 = vpop.f32.mrb[1].mxu1  ;;  %v7057_v24 = vpack.c.bf16 %v523_v21, %v522_v20 }
  0xfc   :  { %v6429_v27 = vadd.f32 %v6428_v26, %v6427_v23  ;;  %v604_v26 = vld [vmem:[%s8680_s5 + $0x8] sm:$0xff] }
  0xfe   :  { %v293_v28 = vadd.f32 %v6429_v27, %v6394_v25  ;;  %v603_v25 = vld [vmem:[%s8680_s5] sm:$0xff] }
  0xff   :  { %v7061_v27 = vpack.c.bf16 %v604_v26, %v603_v25 }
 0x119   :  { %v6462_v30 = vpop.f32.mrb[2].mxu0 }
 0x11a   :  { %v6463_v31 = vpop.f32.mrb[3].mxu0 }
 0x11b   :  { %v6464_v32 = vadd.f32 %v6463_v31, %v6462_v30  ;;  %v7310_v31 = vmov 0.0  }
 0x11c   :  { %6670 = vmatprep.subr.mxu0 %v7310_v31  ;;  %6672 = vmatprep.mubr.msk.f32.mxu0 %vm7311_vm5, %v7310_v31 }
 0x11d   :  { %v363_v34 = vadd.f32 %v6464_v32, %v293_v28  ;;  %v605_v28 = vld [vmem:[%s8680_s5 + $0x10] sm:$0xff]  ;;  %v7312_v32 = vmov 1966171168  }
 0x11f   :  { %v368_v36 = vadd.f32 %v367_v29, %v363_v34  ;;  %v372_v37 = vadd.f32 %v370_v33, %v363_v34  ;;  %v606_v29 = vld [vmem:[%s8680_s5 + $0x18] sm:$0xff]  ;;  %v690_v33 = vunpack.c.l.s4 %v7312_v32  ;;  %v7805_v34 = vld [vmem:[%s8682_s7] sm:$0x3f] }
 0x120   :  { %v7065_v30 = vpack.c.bf16 %v606_v29, %v605_v28 }
 0x121   :  { %v374_v39 = vrot.slane %v368_v36, 7  ;;  %v7712_v40 = vrot.slane %v372_v37, 6  ;;  %v438_v36 = vrot.slane %v7805_v34, %v7748_v9 }
 0x123   :  { %v383_v41 = vsel %vm382_vm0, %v366_v35, %v374_v39  ;;  %v395_v45 = vsel %vm394_vm4, %v7712_v40, 0.0  ;;  %v691_v35 = vunpack.c.0.s8 %v690_v33 }
 0x124   :  { %v385_v42 = vsel %vm384_vm1, %v383_v41, %v377_v38 }
 0x125   :  { %v7717_v43 = vsel %vm386_vm2, %v385_v42, %v7712_v40  ;;  %v7810_v37 = vsub.s32 %v691_v35, %v7745_v7  ;;  %v7813_v42 = vsub.s32 2, %v7745_v7 }
 0x126   :  { %v391_v44 = vsel %vm390_vm3, %v7717_v43, 0.0 }
 0x127   :  { %392 = vadd.xlane.f32.xlu0 %v391_v44 }
 0x12b   :  { %396 = vadd.xlane.f32.xlu0 %v395_v45 }
 0x1b4   :  { %v393_v46 = vpop.xlane.xlu0 %392 }
 0x1b5   :  { %v399_v47 = vmul.f32 0.03125, %v393_v46 }
 0x1b7   :  { %v401_v48 = vsub.f32 %v7717_v43, %v399_v47 }
 0x1b8   :  { %v397_v49 = vpop.xlane.xlu0 %396 }
 0x1b9   :  { %v400_v50 = vmul.f32 0.03125, %v397_v49  ;;  %v403_v51 = vmul.f32 %v401_v48, %v401_v48  ;;  %v527_v49 = vrot.slane %v7805_v34, %v7813_v42 }
 0x1bb   :  { %v402_v52 = vsub.f32 %v7712_v40, %v400_v50  ;;  %v405_v53 = vsel %vm390_vm3, %v403_v51, 0.0 }
 0x1bc   :  { %406 = vadd.xlane.f32.xlu1 %v405_v53 }
 0x1bd   :  { %v404_v54 = vmul.f32 %v402_v52, %v402_v52 }
 0x1bf   :  { %v408_v55 = vsel %vm394_vm4, %v404_v54, 0.0 }
 0x1c0   :  { %409 = vadd.xlane.f32.xlu1 %v408_v55 }
 0x249   :  { %v407_v1 = vpop.xlane.xlu1 %406 }
 0x24a   :  { %v411_v2 = vmul.f32 0.03125, %v407_v1 }
 0x24c   :  { %v413_v4 = vadd.f32 1e-12, %v411_v2 }
 0x24d   :  { %v410_v5 = vpop.xlane.xlu1 %409 }
 0x24e   :  { %7226 = vrsqrt.f32 %v413_v4  ;;  %v412_v6 = vmul.f32 0.03125, %v410_v5 }
 0x250   :  { %v414_v8 = vadd.f32 1e-12, %v412_v6 }
 0x252   :  { %7228 = vrsqrt.f32 %v414_v8 }
 0x258   :  { %v7227_v13 = vpop.eup %7226 }
 0x259   :  { %v417_v15 = vmul.f32 %v7227_v13, %v401_v48 }
 0x25b   :  { %v423_v16 = vmul.f32 %v422_v12, %v417_v15  ;;  %v610_v15 = vrot.slane %v7805_v34, %v7825_v60 }
 0x25c   :  { %v7229_v17 = vpop.eup %7228 }
 0x25d   :  { %v7762_v18 = vadd.f32 %v428_v14, %v423_v16  ;;  %v418_v19 = vmul.f32 %v7229_v17, %v402_v52 }
 0x25f   :  { %v424_v22 = vmul.f32 %v422_v12, %v418_v19  ;;  %6635 = vmatprep.mubr.msk.f32.mxu1 %vm390_vm3, %v7762_v18 }
 0x261   :  { %v7772_v23 = vadd.f32 %v428_v14, %v424_v22 }
 0x263   :  { %6636 = vmatmul.mubr.msk.f32.vlgmr.msra.gmra.mrb[2].mxu1 %vm390_vm3, %v7772_v23 }
 0x264   :  { %7056 = vmatpush3.bf16.msra.mxu1 %v7053_v0  ;;  %6646 = vmatprep.mubr.msk.f32.mxu1 %vm390_vm3, %v7762_v18 }
 0x265   :  { %7058 = vmatprep.subr.bf16.mxu1 %v7057_v24 }
 0x268   :  { %7060 = vmatpush3.bf16.msra.mxu1 %v7057_v24 }
 0x269   :  { %7062 = vmatprep.subr.bf16.mxu1 %v7061_v27 }
 0x26b   :  { %6647 = vmatmul.mubr.msk.f32.vlgmr.msra.gmra.mrb[4].mxu1 %vm390_vm3, %v7772_v23 }
 0x26c   :  { %7064 = vmatpush3.bf16.msra.mxu1 %v7061_v27  ;;  %6657 = vmatprep.mubr.msk.f32.mxu1 %vm390_vm3, %v7762_v18 }
 0x26d   :  { %7066 = vmatprep.subr.bf16.mxu1 %v7065_v30 }
 0x270   :  { %7068 = vmatpush3.bf16.msra.mxu1 %v7065_v30 }
 0x271   :  { %6660 = vmatprep.subr.mxu1 %v7310_v31 }
 0x273   :  { %6658 = vmatmul.mubr.msk.f32.vlgmr.msra.gmra.mrb[6].mxu1 %vm390_vm3, %v7772_v23 }
 0x274   :  { %6662 = vmatprep.mubr.msk.f32.mxu1 %vm7311_vm5, %v7310_v31 }
 0x336   :  { %v6637_v38 = vpop.f32.mrb[2].mxu1 }
 0x337   :  { %v517_v39 = vadd.f32 %v6637_v38, %v438_v36  ;;  %v511_v41 = vpop.f32.mrb[3].mxu1 }
 0x338   :  { %v512_v44 = vadd.f32 %v511_v41, %v438_v36 }
 0x339   :  { %v743_v45 = vrot.slane %v517_v39, %v7810_v37 }
 0x33a   :  { %v688_v46 = vcombine.high %v512_v44, %v512_v44  ;;  %v695_v47 = vrot.slane %v512_v44, %v7810_v37 }
 0x33b   :  { %v744_v48 = vcombine.high %v743_v45, %v743_v45  ;;  %v751_v1 = vrot.slane %v743_v45, %v7810_v37 }
 0x33c   :  { %v702_v50 = vrot.slane %v688_v46, %v7810_v37  ;;  %v703_v51 = vcombine.high %v695_v47, %v695_v47  ;;  %v711_v54 = vrot.slane %v695_v47, %v7810_v37 }
 0x33d   :  { %v758_v52 = vrot.slane %v744_v48, %v7810_v37 }
 0x33e   :  { %v704_v53 = vcombine.high %v702_v50, %v702_v50  ;;  %v718_v55 = vrot.slane %v702_v50, %v7810_v37  ;;  %v725_v56 = vrot.slane %v703_v51, %v7810_v37  ;;  %v6648_v57 = vpop.f32.mrb[4].mxu1 }
 0x33f   :  { %v600_v58 = vadd.f32 %v6648_v57, %v527_v49  ;;  %v594_v59 = vpop.f32.mrb[5].mxu1  ;;  %v1080_v2 = vrot.slane %v758_v52, %v7810_v37 }
 0x340   :  { %v732_v61 = vrot.slane %v704_v53, %v7810_v37  ;;  %v734_v62 = vcombine.high %v718_v55, %v718_v55  ;;  %v905_v63 = vcombine.low %v711_v54, %v725_v56  ;;  %v6216_v0 = vcombine.high %v711_v54, %v725_v56 }
 0x341   :  { %v816_v3 = vrot.slane %v600_v58, %v7810_v37  ;;  %v595_v4 = vadd.f32 %v594_v59, %v527_v49  ;;  %v1095_v19 = vrot.slane %v1080_v2, %v7810_v37  ;;  %v927_v20 = vrot.slane %v718_v55, %v7810_v37 }
 0x342   :  { %v736_v5 = vcombine.high %v732_v61, %v732_v61  ;;  %v913_v6 = vrot.slane %v905_v63, %v7810_v37  ;;  %v920_v8 = vrot.slane %v6216_v0, %v7810_v37  ;;  %v1058_v12 = vcombine.low %v732_v61, %v734_v62 }
 0x343   :  { %v817_v13 = vcombine.high %v816_v3, %v816_v3  ;;  %v761_v14 = vcombine.high %v595_v4, %v595_v4  ;;  %v768_v17 = vrot.slane %v595_v4, %v7810_v37  ;;  %v942_v41 = vrot.slane %v927_v20, %v7810_v37 }
 0x344   :  { %v1059_v16 = vcombine.low %v736_v5, %v751_v1  ;;  %v928_v22 = vcombine.low %v913_v6, %v920_v8  ;;  %v1066_v24 = vrot.slane %v1058_v12, %v7810_v37  ;;  %v824_v44 = vrot.slane %v816_v3, %v7810_v37 }
 0x345   :  { %v775_v21 = vrot.slane %v761_v14, %v7810_v37  ;;  %v776_v26 = vcombine.high %v768_v17, %v768_v17  ;;  %v831_v28 = vrot.slane %v817_v13, %v7810_v37  ;;  %v784_v36 = vrot.slane %v768_v17, %v7810_v37 }
 0x346   :  { %v1073_v25 = vrot.slane %v1059_v16, %v7810_v37  ;;  %v6659_v27 = vpop.f32.mrb[6].mxu1  ;;  %v935_v51 = vrot.slane %v928_v22, %v7810_v37 }
 0x347   :  { %v777_v29 = vcombine.high %v775_v21, %v775_v21  ;;  %v791_v30 = vrot.slane %v775_v21, %v7810_v37  ;;  %v683_v32 = vadd.f32 %v6659_v27, %v610_v15  ;;  %v677_v33 = vpop.f32.mrb[7].mxu1  ;;  %v798_v38 = vrot.slane %v776_v26, %v7810_v37 }
 0x348   :  { %v1081_v35 = vcombine.low %v1066_v24, %v1073_v25  ;;  %v678_v39 = vadd.f32 %v677_v33, %v610_v15  ;;  %v1119_v55 = vrot.slane %v831_v28, %v7810_v37 }
 0x349   :  { %v805_v45 = vrot.slane %v777_v29, %v7810_v37  ;;  %v807_v46 = vcombine.high %v791_v30, %v791_v30  ;;  %v944_v47 = vcombine.low %v784_v36, %v798_v38  ;;  %v6217_v48 = vcombine.high %v784_v36, %v798_v38 }
 0x34a   :  { %v889_v49 = vrot.slane %v683_v32, %v7810_v37  ;;  %v834_v50 = vcombine.high %v678_v39, %v678_v39  ;;  %v841_v54 = vrot.slane %v678_v39, %v7810_v37  ;;  %v966_v58 = vrot.slane %v791_v30, %v7810_v37 }
 0x34b   :  { %v809_v52 = vcombine.high %v805_v45, %v805_v45  ;;  %v1097_v53 = vcombine.low %v805_v45, %v807_v46  ;;  %v952_v56 = vrot.slane %v944_v47, %v7810_v37  ;;  %v959_v57 = vrot.slane %v6217_v48, %v7810_v37 }
 0x34c   :  { %v890_v61 = vcombine.high %v889_v49, %v889_v49  ;;  %v848_v62 = vrot.slane %v834_v50, %v7810_v37  ;;  %v849_v63 = vcombine.high %v841_v54, %v841_v54  ;;  %v857_v2 = vrot.slane %v841_v54, %v7810_v37 }
 0x34d   :  { %v1098_v59 = vcombine.low %v809_v52, %v824_v44  ;;  %v967_v0 = vcombine.low %v952_v56, %v959_v57  ;;  %v1105_v1 = vrot.slane %v1097_v53, %v7810_v37  ;;  %v1088_v3 = vrot.slane %v1081_v35, %v7810_v37 }
 0x34e   :  { %v850_v5 = vcombine.high %v848_v62, %v848_v62  ;;  %v864_v6 = vrot.slane %v848_v62, %v7810_v37  ;;  %v871_v8 = vrot.slane %v849_v63, %v7810_v37  ;;  %v1134_v12 = vrot.slane %v1119_v55, %v7810_v37 }
 0x34f   :  { %v1112_v4 = vrot.slane %v1098_v59, %v7810_v37  ;;  %v974_v13 = vrot.slane %v967_v0, %v7810_v37  ;;  %v981_v14 = vrot.slane %v966_v58, %v7810_v37  ;;  %v1096_v15 = vcombine.low %v1088_v3, %v1095_v19 }
 0x350   :  { %v878_v17 = vrot.slane %v850_v5, %v7810_v37  ;;  %v880_v20 = vcombine.high %v864_v6, %v864_v6  ;;  %v1235_v21 = vcombine.low %v857_v2, %v871_v8  ;;  %v897_v22 = vrot.slane %v889_v49, %v7810_v37 }
 0x351   :  { %v1120_v16 = vcombine.low %v1105_v1, %v1112_v4  ;;  %v904_v24 = vrot.slane %v890_v61, %v7810_v37  ;;  %v6222_v25 = vcombine.high %v857_v2, %v871_v8  ;;  %v982_v26 = vcombine.low %v974_v13, %v981_v14  ;;  %v6227_v8 = vld [vmem:[%s8678_s3 + $0x20] sm:$0xff] }
 0x352   :  { %v882_v27 = vcombine.high %v878_v17, %v878_v17  ;;  %v1243_v28 = vrot.slane %v1235_v21, %v7810_v37  ;;  %v1350_v29 = vcombine.low %v878_v17, %v880_v20  ;;  %v1257_v19 = vrot.slane %v864_v6, %v7810_v37  ;;  %v6233_v14 = vld [vmem:[%s8679_s4 + $0x20] sm:$0xff]  ;;  %v6229_v21 = vld [vmem:[%s8678_s3 + $0x30] sm:$0xff] }
 0x353   :  { %v1127_v30 = vrot.slane %v1120_v16, %v7810_v37  ;;  %v1250_v32 = vrot.slane %v6222_v25, %v7810_v37  ;;  %6661 = vmatpush3.xpose.msk.msra.mxu1 %vm983_vm6, %v982_v26  ;;  %v943_v35 = vcombine.low %v935_v51, %v942_v41  ;;  %v1372_v39 = vrot.slane %v904_v24, %v7810_v37 }
 0x354   :  { %v1351_v33 = vcombine.low %v882_v27, %v897_v22  ;;  %6665 = vmatprep.subr.mxu1 %v7310_v31  ;;  %v1358_v44 = vrot.slane %v1350_v29, %v7810_v37  ;;  %v1272_v47 = vrot.slane %v1257_v19, %v7810_v37  ;;  %v6230_v22 = vld [vmem:[%s8678_s3 + $0x38] sm:$0xff]  ;;  %v6235_v27 = vld [vmem:[%s8679_s4 + $0x30] sm:$0xff]  ;;  %v6239_v29 = vld [vmem:[%s8680_s5 + $0x20] sm:$0xff] }
 0x355   :  { %v1135_v36 = vcombine.low %v1127_v30, %v1134_v12  ;;  %v1258_v38 = vcombine.low %v1243_v28, %v1250_v32  ;;  %v1387_v49 = vrot.slane %v1372_v39, %v7810_v37  ;;  %v6228_v12 = vld [vmem:[%s8678_s3 + $0x28] sm:$0xff]  ;;  %v7073_v26 = vpack.c.bf16 %v6230_v22, %v6229_v21  ;;  %v6236_v28 = vld [vmem:[%s8679_s4 + $0x38] sm:$0xff] }
 0x356   :  { %v1365_v45 = vrot.slane %v1351_v33, %v7810_v37  ;;  %6663 = vmatmul.mubr.msk.f32.vlgmr.msra.gmra.mrb[8].mxu1 %vm983_vm6, %v943_v35  ;;  %v7069_v13 = vpack.c.bf16 %v6228_v12, %v6227_v8  ;;  %v6240_v30 = vld [vmem:[%s8680_s5 + $0x28] sm:$0xff]  ;;  %v7081_v33 = vpack.c.bf16 %v6236_v28, %v6235_v27 }
 0x357   :  { %v1265_v46 = vrot.slane %v1258_v38, %v7810_v37  ;;  %6666 = vmatpush3.xpose.msk.msra.mxu1 %vm983_vm6, %v1135_v36  ;;  %6667 = vmatprep.mubr.msk.f32.mxu1 %vm7311_vm5, %v7310_v31  ;;  %v7085_v35 = vpack.c.bf16 %v6240_v30, %v6239_v29  ;;  %v6241_v36 = vld [vmem:[%s8680_s5 + $0x30] sm:$0xff]  ;;  %v6242_v38 = vld [vmem:[%s8680_s5 + $0x38] sm:$0xff] }
 0x358   :  { %v1373_v41 = vcombine.low %v1358_v44, %v1365_v45  ;;  %6675 = vmatprep.subr.mxu1 %v7310_v31  ;;  %v7089_v39 = vpack.c.bf16 %v6242_v38, %v6241_v36 }
 0x359   :  { %v1273_v48 = vcombine.low %v1265_v46, %v1272_v47 }
 0x35a   :  { %6668 = vmatmul.mubr.msk.f32.vlgmr.msra.gmra.mrb[10].mxu1 %vm983_vm6, %v1096_v15  ;;  %v1380_v50 = vrot.slane %v1373_v41, %v7810_v37  ;;  %v6234_v15 = vld [vmem:[%s8679_s4 + $0x28] sm:$0xff] }
 0x35b   :  { %6671 = vmatpush3.msk.msra.mxu0 %vm384_vm1, %v1273_v48  ;;  %6677 = vmatprep.mubr.msk.f32.mxu1 %vm7311_vm5, %v7310_v31  ;;  %v7077_v16 = vpack.c.bf16 %v6234_v15, %v6233_v14 }
 0x35c   :  { %v1388_v51 = vcombine.low %v1380_v50, %v1387_v49  ;;  %7070 = vmatprep.subr.bf16.mxu0 %v7069_v13 }
 0x35e   :  { %6676 = vmatpush3.msk.msra.mxu1 %vm384_vm1, %v1388_v51 }
 0x35f   :  { %7078 = vmatprep.subr.bf16.mxu1 %v7077_v16 }
 0x429   :  { %v1054_v52 = vpop.f32.mrb[8].mxu1 }
 0x42a   :  { %v1210_v53 = vmul.f32 0.25, %v1054_v52  ;;  %v6664_v54 = vpop.f32.mrb[9].mxu1  ;;  %v7960_v52 = vsub.s32 3, %v7745_v7 }
 0x42c   :  { %v1213_v55 = vsel %vm1212_vm7, %v1210_v53, -inf }
 0x42d   :  { %1214 = vmax.xlane.f32.xlu1 %v1213_v55  ;;  %v1206_v56 = vpop.f32.mrb[10].mxu1 }
 0x42e   :  { %v1211_v57 = vmul.f32 0.25, %v1206_v56  ;;  %v6669_v58 = vpop.f32.mrb[11].mxu1 }
 0x430   :  { %v1216_v59 = vsel %vm1212_vm7, %v1211_v57, -inf }
 0x431   :  { %1217 = vmax.xlane.f32.xlu0 %v1216_v59 }
 0x4ba   :  { %v1215_v61 = vpop.xlane.xlu1 %1214 }
 0x4bb   :  { %v1219_v62 = vsub.f32 %v1210_v53, %v1215_v61  ;;  %v1554_v53 = vrot.slane %v7805_v34, %v7756_v11 }
 0x4bd   :  { %v1221_v63 = vmul.f32 1.442695, %v1219_v62 }
 0x4be   :  { %v1218_v0 = vpop.xlane.xlu0 %1217 }
 0x4bf   :  { %7230 = vpow2.f32 %v1221_v63  ;;  %v1220_v1 = vsub.f32 %v1211_v57, %v1218_v0  ;;  %v1638_v63 = vrot.slane %v7805_v34, %v7960_v52 }
 0x4c1   :  { %v1223_v2 = vmul.f32 1.442695, %v1220_v1 }
 0x4c3   :  { %7232 = vpow2.f32 %v1223_v2 }
 0x4c9   :  { %v7231_v3 = vpop.eup %7230 }
 0x4ca   :  { %v1225_v4 = vsel %vm1212_vm7, %v7231_v3, 0.0 }
 0x4cb   :  { %1226 = vadd.xlane.f32.xlu1 %v1225_v4 }
 0x4cd   :  { %v7233_v5 = vpop.eup %7232 }
 0x4ce   :  { %v1228_v6 = vsel %vm1212_vm7, %v7233_v5, 0.0 }
 0x4cf   :  { %1229 = vadd.xlane.f32.xlu0 %v1228_v6 }
 0x558   :  { %v1227_v17 = vpop.xlane.xlu1 %1226 }
 0x559   :  { %7234 = vrcp.f32 %v1227_v17  ;;  %v7977_v17 = vsub.s32 5, %v7745_v7 }
 0x55c   :  { %v1230_v20 = vpop.xlane.xlu0 %1229 }
 0x55d   :  { %7236 = vrcp.f32 %v1230_v20 }
 0x563   :  { %v7235_v24 = vpop.eup %7234 }
 0x564   :  { %v1233_v25 = vmul.f32 %v7235_v24, %v7231_v3 }
 0x566   :  { %6673 = vmatmul.mubr.msk.f32.vlgmr.msra.gmra.mrb[4].mxu0 %vm1274_vm8, %v1233_v25 }
 0x567   :  { %v7237_v32 = vpop.eup %7236  ;;  %7072 = vmatpush3.bf16.msra.mxu0 %v7069_v13  ;;  %6688 = vmatprep.mubr.msk.f32.mxu0 %vm390_vm3, %v7762_v18 }
 0x568   :  { %v1234_v19 = vmul.f32 %v7237_v32, %v7233_v5  ;;  %7074 = vmatprep.subr.bf16.mxu0 %v7073_v26 }
 0x56a   :  { %6678 = vmatmul.mubr.msk.f32.vlgmr.msra.gmra.mrb[12].mxu1 %vm1274_vm8, %v1234_v19 }
 0x56b   :  { %7076 = vmatpush3.bf16.msra.mxu0 %v7073_v26  ;;  %7080 = vmatpush3.bf16.msra.mxu1 %v7077_v16 }
 0x56c   :  { %6699 = vmatprep.mubr.msk.f32.mxu1 %vm390_vm3, %v7762_v18  ;;  %7082 = vmatprep.subr.bf16.mxu1 %v7081_v33 }
 0x56d   :  { %7086 = vmatprep.subr.bf16.mxu0 %v7085_v35 }
 0x56e   :  { %6689 = vmatmul.mubr.msk.f32.vlgmr.msra.gmra.mrb[6].mxu0 %vm390_vm3, %v7772_v23 }
 0x56f   :  { %7084 = vmatpush3.bf16.msra.mxu1 %v7081_v33  ;;  %7088 = vmatpush3.bf16.msra.mxu0 %v7085_v35 }
 0x570   :  { %6710 = vmatprep.mubr.msk.f32.mxu0 %vm390_vm3, %v7762_v18  ;;  %7090 = vmatprep.subr.bf16.mxu0 %v7089_v39 }
 0x571   :  { %6713 = vmatprep.subr.mxu1 %v7310_v31 }
 0x572   :  { %6700 = vmatmul.mubr.msk.f32.vlgmr.msra.gmra.mrb[14].mxu1 %vm390_vm3, %v7772_v23 }
 0x573   :  { %7092 = vmatpush3.bf16.msra.mxu0 %v7089_v39  ;;  %6715 = vmatprep.mubr.msk.f32.mxu1 %vm7311_vm5, %v7310_v31 }
 0x574   :  { %6723 = vmatprep.subr.mxu0 %v7310_v31 }
 0x576   :  { %6711 = vmatmul.mubr.msk.f32.vlgmr.msra.gmra.mrb[8].mxu0 %vm390_vm3, %v7772_v23 }
 0x577   :  { %6725 = vmatprep.mubr.msk.f32.mxu0 %vm7311_vm5, %v7310_v31 }
 0x639   :  { %v1346_v44 = vpop.f32.mrb[4].mxu0 }
 0x63a   :  { %v1466_v18 = vcombine.high %v1346_v44, %v1346_v44  ;;  %v1473_v45 = vrot.slane %v1346_v44, %v7810_v37  ;;  %v6674_v46 = vpop.f32.mrb[5].mxu0  ;;  %v1722_v44 = vrot.slane %v7805_v34, %v7977_v17 }
 0x63c   :  { %v1481_v47 = vcombine.high %v1473_v45, %v1473_v45  ;;  %v1480_v41 = vrot.slane %v1466_v18, %v7810_v37  ;;  %v1488_v49 = vrot.slane %v1473_v45, %v7810_v37 }
 0x63d   :  { %v7953_v48 = vpop.f32.mrb[12].mxu1 }
 0x63e   :  { %v1502_v50 = vrot.slane %v1481_v47, %v7810_v37  ;;  %v1512_v23 = vrot.slane %v7953_v48, %v7810_v37  ;;  %v6679_v51 = vpop.f32.mrb[13].mxu1  ;;  %v1495_v57 = vrot.slane %v1480_v41, %v7810_v37 }
 0x640   :  { %v2799_v54 = vcombine.low %v1488_v49, %v1502_v50  ;;  %v6261_v55 = vcombine.high %v1488_v49, %v1502_v50  ;;  %v1520_v56 = vcombine.high %v1512_v23, %v1512_v23  ;;  %v1527_v58 = vrot.slane %v1512_v23, %v7810_v37 }
 0x641   :  { %v6690_v59 = vpop.f32.mrb[6].mxu0 }
 0x642   :  { %v7967_v61 = vrot.slane %v1520_v56, %v7810_v37  ;;  %v1621_v62 = vpop.f32.mrb[7].mxu0  ;;  %v1542_v0 = vcombine.high %v1527_v58, %v1527_v58  ;;  %v2801_v1 = vcombine.low %v1495_v57, %v1527_v58  ;;  %v1627_v2 = vadd.f32 %v6690_v59, %v1554_v53 }
 0x643   :  { %v1622_v3 = vadd.f32 %v1621_v62, %v1554_v53  ;;  %v2809_v4 = vrot.slane %v2799_v54, %v7810_v37  ;;  %v2816_v5 = vrot.slane %v6261_v55, %v7810_v37 }
 0x644   :  { %v2802_v6 = vcombine.low %v7967_v61, %v1542_v0  ;;  %v1855_v8 = vrot.slane %v1627_v2, %v7810_v37  ;;  %v2823_v20 = vrot.slane %v2801_v1, %v7810_v37 }
 0x645   :  { %v1800_v12 = vcombine.high %v1622_v3, %v1622_v3  ;;  %v6701_v13 = vpop.f32.mrb[14].mxu1  ;;  %v1807_v14 = vrot.slane %v1622_v3, %v7810_v37  ;;  %v2831_v25 = vcombine.low %v2809_v4, %v2816_v5 }
 0x646   :  { %v1711_v15 = vadd.f32 %v6701_v13, %v1638_v63  ;;  %v1705_v16 = vpop.f32.mrb[15].mxu1  ;;  %v2830_v21 = vrot.slane %v2802_v6, %v7810_v37  ;;  %v1856_v22 = vcombine.high %v1855_v8, %v1855_v8  ;;  %v1863_v41 = vrot.slane %v1855_v8, %v7810_v37 }
 0x647   :  { %v1814_v24 = vrot.slane %v1800_v12, %v7810_v37  ;;  %v1815_v26 = vcombine.high %v1807_v14, %v1807_v14  ;;  %v1823_v19 = vrot.slane %v1807_v14, %v7810_v37  ;;  %v1706_v47 = vadd.f32 %v1705_v16, %v1638_v63 }
 0x648   :  { %v1928_v27 = vrot.slane %v1711_v15, %v7810_v37  ;;  %v7983_v28 = vcombine.low %v2823_v20, %v2830_v21  ;;  %v1870_v29 = vrot.slane %v1856_v22, %v7810_v37  ;;  %v7995_v23 = vrot.slane %v2831_v25, %v7810_v37 }
 0x649   :  { %v1816_v30 = vcombine.high %v1814_v24, %v1814_v24  ;;  %v1830_v32 = vrot.slane %v1814_v24, %v7810_v37  ;;  %v6712_v7 = vpop.f32.mrb[8].mxu0  ;;  %v1837_v33 = vrot.slane %v1815_v26, %v7810_v37  ;;  %v1873_v55 = vcombine.high %v1706_v47, %v1706_v47 }
 0x64a   :  { %v1789_v35 = vpop.f32.mrb[9].mxu0  ;;  %v1929_v39 = vcombine.high %v1928_v27, %v1928_v27  ;;  %v2191_v18 = vrot.slane %v1870_v29, %v7810_v37  ;;  %v1936_v54 = vrot.slane %v1928_v27, %v7810_v37  ;;  %v1880_v57 = vrot.slane %v1706_v47, %v7810_v37 }
 0x64b   :  { %v1844_v36 = vrot.slane %v1816_v30, %v7810_v37  ;;  %v1846_v38 = vcombine.high %v1830_v32, %v1830_v32  ;;  %v2017_v45 = vcombine.low %v1823_v19, %v1837_v33  ;;  %v6245_v46 = vcombine.high %v1823_v19, %v1837_v33 }
 0x64c   :  { %v2039_v53 = vrot.slane %v1830_v32, %v7810_v37  ;;  %v1795_v58 = vadd.f32 %v6712_v7, %v1722_v44  ;;  %v2206_v59 = vrot.slane %v2191_v18, %v7810_v37  ;;  %v1943_v62 = vrot.slane %v1929_v39, %v7810_v37 }
 0x64d   :  { %v1848_v49 = vcombine.high %v1844_v36, %v1844_v36  ;;  %v2169_v50 = vcombine.low %v1844_v36, %v1846_v38  ;;  %v2025_v51 = vrot.slane %v2017_v45, %v7810_v37  ;;  %v2032_v34 = vrot.slane %v6245_v46, %v7810_v37 }
 0x64e   :  { %v1887_v63 = vrot.slane %v1873_v55, %v7810_v37  ;;  %v1790_v0 = vadd.f32 %v1789_v35, %v1722_v44  ;;  %v1888_v3 = vcombine.high %v1880_v57, %v1880_v57  ;;  %v2001_v4 = vrot.slane %v1795_v58, %v7810_v37 }
 0x64f   :  { %v2170_v56 = vcombine.low %v1848_v49, %v1863_v41  ;;  %v2177_v1 = vrot.slane %v2169_v50, %v7810_v37  ;;  %v8009_v5 = vrot.slane %v2039_v53, %v7810_v37  ;;  %v2040_v13 = vcombine.low %v2025_v51, %v2032_v34 }
 0x650   :  { %v1889_v6 = vcombine.high %v1887_v63, %v1887_v63  ;;  %v1903_v8 = vrot.slane %v1887_v63, %v7810_v37  ;;  %v1946_v12 = vcombine.high %v1790_v0, %v1790_v0  ;;  %v1896_v15 = vrot.slane %v1880_v57, %v7810_v37 }
 0x651   :  { %v2184_v2 = vrot.slane %v2170_v56, %v7810_v37  ;;  %v1910_v16 = vrot.slane %v1888_v3, %v7810_v37  ;;  %v2002_v22 = vcombine.high %v2001_v4, %v2001_v4  ;;  %v1953_v24 = vrot.slane %v1790_v0, %v7810_v37 }
 0x652   :  { %v1917_v20 = vrot.slane %v1889_v6, %v7810_v37  ;;  %v1919_v21 = vcombine.high %v1903_v8, %v1903_v8  ;;  %v2230_v25 = vrot.slane %v1943_v62, %v7810_v37  ;;  %v1960_v29 = vrot.slane %v1946_v12, %v7810_v37 }
 0x653   :  { %v2192_v14 = vcombine.low %v2177_v1, %v2184_v2  ;;  %v2056_v26 = vcombine.low %v1896_v15, %v1910_v16  ;;  %v6246_v27 = vcombine.high %v1896_v15, %v1910_v16  ;;  %v2078_v32 = vrot.slane %v1903_v8, %v7810_v37 }
 0x654   :  { %v1921_v30 = vcombine.high %v1917_v20, %v1917_v20  ;;  %v2208_v7 = vcombine.low %v1917_v20, %v1919_v21  ;;  %v1961_v19 = vcombine.high %v1953_v24, %v1953_v24  ;;  %v2047_v33 = vrot.slane %v2040_v13, %v7810_v37 }
 0x655   :  { %v2064_v35 = vrot.slane %v2056_v26, %v7810_v37  ;;  %v2071_v36 = vrot.slane %v6246_v27, %v7810_v37  ;;  %v1962_v38 = vcombine.high %v1960_v29, %v1960_v29  ;;  %v2009_v44 = vrot.slane %v2001_v4, %v7810_v37 }
 0x656   :  { %v2209_v39 = vcombine.low %v1921_v30, %v1936_v54  ;;  %v2016_v18 = vrot.slane %v2002_v22, %v7810_v37  ;;  %v1976_v45 = vrot.slane %v1960_v29, %v7810_v37  ;;  %v1969_v47 = vrot.slane %v1953_v24, %v7810_v37 }
 0x657   :  { %v2079_v46 = vcombine.low %v2064_v35, %v2071_v36  ;;  %v1983_v41 = vrot.slane %v1961_v19, %v7810_v37  ;;  %v1990_v49 = vrot.slane %v1962_v38, %v7810_v37  ;;  %v2093_v50 = vrot.slane %v2078_v32, %v7810_v37 }
 0x658   :  { %v2216_v51 = vrot.slane %v2208_v7, %v7810_v37  ;;  %v2223_v53 = vrot.slane %v2209_v39, %v7810_v37  ;;  %v1992_v54 = vcombine.high %v1976_v45, %v1976_v45  ;;  %v2367_v62 = vrot.slane %v1976_v45, %v7810_v37 }
 0x659   :  { %v2086_v55 = vrot.slane %v2079_v46, %v7810_v37  ;;  %v1994_v34 = vcombine.high %v1990_v49, %v1990_v49  ;;  %v2345_v56 = vcombine.low %v1969_v47, %v1983_v41  ;;  %v6251_v57 = vcombine.high %v1969_v47, %v1983_v41 }
 0x65a   :  { %v2231_v58 = vcombine.low %v2216_v51, %v2223_v53  ;;  %v2459_v63 = vcombine.low %v1990_v49, %v1992_v54  ;;  %v2199_v0 = vrot.slane %v2192_v14, %v7810_v37  ;;  %v2245_v6 = vrot.slane %v2230_v25, %v7810_v37 }
 0x65b   :  { %v2353_v1 = vrot.slane %v2345_v56, %v7810_v37  ;;  %v2360_v2 = vrot.slane %v6251_v57, %v7810_v37  ;;  %v2460_v3 = vcombine.low %v1994_v34, %v2009_v44  ;;  %v2094_v4 = vcombine.low %v2086_v55, %v2093_v50  ;;  %v6256_v57 = vld [vmem:[%s8681_s6 + $0x10] sm:$0xff] }
 0x65c   :  { %v2238_v8 = vrot.slane %v2231_v58, %v7810_v37  ;;  %v2207_v12 = vcombine.low %v2199_v0, %v2206_v59  ;;  %v2846_v13 = vrot.slane %v7983_v28, %v7810_v37  ;;  %v2481_v15 = vrot.slane %v2016_v18, %v7810_v37  ;;  %v6257_v58 = vld [vmem:[%s8681_s6 + $0x18] sm:$0xff]  ;;  %v1545_v0 = vld [vmem:[%s8681_s6 + $0x8] sm:$0xff] }
 0x65d   :  { %v2368_v16 = vcombine.low %v2353_v1, %v2360_v2  ;;  %v2467_v20 = vrot.slane %v2459_v63, %v7810_v37  ;;  %v2474_v14 = vrot.slane %v2460_v3, %v7810_v37  ;;  %6714 = vmatpush3.xpose.msk.msra.mxu1 %vm983_vm6, %v2094_v4  ;;  %v2055_v21 = vcombine.low %v2047_v33, %v8009_v5  ;;  %v1544_v63 = vld [vmem:[%s8681_s6] sm:$0xff] }
 0x65e   :  { %6718 = vmatprep.subr.mxu1 %v7310_v31  ;;  %v2246_v22 = vcombine.low %v2238_v8, %v2245_v6  ;;  %v8047_v24 = vcombine.low %v7995_v23, %v2846_v13  ;;  %v2382_v28 = vrot.slane %v2367_v62, %v7810_v37  ;;  %v2496_v26 = vrot.slane %v2481_v15, %v7810_v37 }
 0x65f   :  { %v2375_v59 = vrot.slane %v2368_v16, %v7810_v37  ;;  %v2482_v25 = vcombine.low %v2467_v20, %v2474_v14  ;;  %v7093_v62 = vpack.c.bf16 %v6257_v58, %v6256_v57  ;;  %v7097_v1 = vpack.c.bf16 %v1545_v0, %v1544_v63 }
 0x660   :  { %6716 = vmatmul.mubr.msk.f32.vlgmr.msra.gmra.mrb[16].mxu1 %vm983_vm6, %v2055_v21 }
 0x661   :  { %6719 = vmatpush3.xpose.msk.msra.mxu1 %vm983_vm6, %v2246_v22  ;;  %v2383_v27 = vcombine.low %v2375_v59, %v2382_v28  ;;  %6720 = vmatprep.mubr.msk.f32.mxu1 %vm7311_vm5, %v7310_v31  ;;  %v2489_v5 = vrot.slane %v2482_v25, %v7810_v37 }
 0x662   :  { %6728 = vmatprep.subr.mxu1 %v7310_v31 }
 0x663   :  { %6724 = vmatpush3.msk.msra.mxu0 %vm384_vm1, %v2383_v27  ;;  %v2497_v23 = vcombine.low %v2489_v5, %v2496_v26 }
 0x664   :  { %6721 = vmatmul.mubr.msk.f32.vlgmr.msra.gmra.mrb[18].mxu1 %vm983_vm6, %v2207_v12  ;;  %7094 = vmatprep.subr.bf16.mxu0 %v7093_v62 }
 0x665   :  { %6729 = vmatpush3.msk.msra.mxu1 %vm384_vm1, %v2497_v23  ;;  %6730 = vmatprep.mubr.msk.f32.mxu1 %vm7311_vm5, %v7310_v31 }
 0x733   :  { %v2165_v29 = vpop.f32.mrb[16].mxu1 }
 0x734   :  { %v2321_v30 = vmul.f32 0.25, %v2165_v29  ;;  %v6717_v32 = vpop.f32.mrb[17].mxu1 }
 0x736   :  { %v2323_v7 = vsel %vm1212_vm7, %v2321_v30, -inf }
 0x737   :  { %2324 = vmax.xlane.f32.xlu0 %v2323_v7  ;;  %v2317_v19 = vpop.f32.mrb[18].mxu1  ;;  %v1505_v7 = vcombine.high %v7953_v48, %v7953_v48 }
 0x738   :  { %v2322_v33 = vmul.f32 0.25, %v2317_v19  ;;  %v6722_v35 = vpop.f32.mrb[19].mxu1 }
 0x73a   :  { %v2326_v36 = vsel %vm1212_vm7, %v2322_v33, -inf }
 0x73b   :  { %2327 = vmax.xlane.f32.xlu1 %v2326_v36 }
 0x7c4   :  { %v2325_v38 = vpop.xlane.xlu0 %2324 }
 0x7c5   :  { %v2329_v39 = vsub.f32 %v2321_v30, %v2325_v38 }
 0x7c7   :  { %v2331_v44 = vmul.f32 1.442695, %v2329_v39 }
 0x7c8   :  { %v2328_v18 = vpop.xlane.xlu1 %2327 }
 0x7c9   :  { %7238 = vpow2.f32 %v2331_v44  ;;  %v2330_v45 = vsub.f32 %v2322_v33, %v2328_v18  ;;  %v1519_v18 = vrot.slane %v1505_v7, %v7810_v37 }
 0x7cb   :  { %v2333_v46 = vmul.f32 1.442695, %v2330_v45 }
 0x7cd   :  { %7240 = vpow2.f32 %v2333_v46  ;;  %v1543_v46 = vcombine.high %v7967_v61, %v7967_v61 }
 0x7d3   :  { %v7239_v47 = vpop.eup %7238 }
 0x7d4   :  { %v2335_v41 = vsel %vm1212_vm7, %v7239_v47, 0.0 }
 0x7d5   :  { %2336 = vadd.xlane.f32.xlu0 %v2335_v41 }
 0x7d7   :  { %v7241_v49 = vpop.eup %7240 }
 0x7d8   :  { %v2338_v50 = vsel %vm1212_vm7, %v7241_v49, 0.0 }
 0x7d9   :  { %2339 = vadd.xlane.f32.xlu1 %v2338_v50 }
 0x862   :  { %v2337_v51 = vpop.xlane.xlu0 %2336 }
 0x863   :  { %7242 = vrcp.f32 %v2337_v51 }
 0x866   :  { %v2340_v53 = vpop.xlane.xlu1 %2339 }
 0x867   :  { %7244 = vrcp.f32 %v2340_v53 }
 0x86d   :  { %v7243_v54 = vpop.eup %7242 }
 0x86e   :  { %v2343_v55 = vmul.f32 %v7243_v54, %v7239_v47 }
 0x870   :  { %6726 = vmatmul.mubr.msk.f32.vlgmr.msra.gmra.mrb[10].mxu0 %vm1274_vm8, %v2343_v55  ;;  %v2947_v55 = vrot.slane %v7753_v10, %v7813_v42 }
 0x871   :  { %v7245_v34 = vpop.eup %7244  ;;  %7096 = vmatpush3.bf16.msra.mxu0 %v7093_v62 }
 0x872   :  { %v2344_v56 = vmul.f32 %v7245_v34, %v7241_v49  ;;  %7098 = vmatprep.subr.bf16.mxu0 %v7097_v1  ;;  %v1534_v49 = vrot.slane %v1519_v18, %v7810_v37 }
 0x874   :  { %6731 = vmatmul.mubr.msk.f32.vlgmr.msra.gmra.mrb[20].mxu1 %vm1274_vm8, %v2344_v56  ;;  %v2848_v51 = vcombine.low %v1543_v46, %v1534_v49  ;;  %v3101_v46 = vld [vmem:[%s8685_s10 + $0x18] sm:$0xff] }
 0x876   :  { %v2855_v61 = vrot.slane %v2848_v51, %v7810_v37  ;;  %v3105_v51 = vld [vmem:[%s8685_s10 + $0x38] sm:$0xff] }
 0x878   :  { %v2862_v54 = vrot.slane %v2855_v61, %v7810_v37  ;;  %v6264_v61 = vld [vmem:[%s8684_s9] ss:$0 sm:$0xff] }
 0x943   :  { %v2455_v2 = vpop.f32.mrb[10].mxu0 }
 0x944   :  { %v2575_v3 = vcombine.high %v2455_v2, %v2455_v2  ;;  %v2582_v4 = vrot.slane %v2455_v2, %v7810_v37  ;;  %v6727_v6 = vpop.f32.mrb[11].mxu0 }
 0x946   :  { %v2590_v8 = vcombine.high %v2582_v4, %v2582_v4  ;;  %v2589_v12 = vrot.slane %v2575_v3, %v7810_v37  ;;  %v2597_v15 = vrot.slane %v2582_v4, %v7810_v37 }
 0x947   :  { %v2569_v13 = vpop.f32.mrb[20].mxu1 }
 0x948   :  { %v2611_v16 = vrot.slane %v2590_v8, %v7810_v37  ;;  %v2614_v20 = vcombine.high %v2569_v13, %v2569_v13  ;;  %v2621_v14 = vrot.slane %v2569_v13, %v7810_v37  ;;  %v6732_v21 = vpop.f32.mrb[21].mxu1  ;;  %v2604_v26 = vrot.slane %v2589_v12, %v7810_v37  ;;  %v2988_v13 = vld [vmem:[%s8683_s8] sm:$0xff] }
 0x94a   :  { %v2656_v22 = vcombine.low %v2597_v15, %v2611_v16  ;;  %v6258_v59 = vcombine.high %v2597_v15, %v2611_v16  ;;  %v2628_v28 = vrot.slane %v2614_v20, %v7810_v37  ;;  %v2629_v25 = vcombine.high %v2621_v14, %v2621_v14  ;;  %v2989_v15 = vld [vmem:[%s8683_s8 + $0x8] sm:$0xff]  ;;  %v2990_v16 = vld [vmem:[%s8683_s8 + $0x10] sm:$0xff] }
 0x94b   :  { %v2636_v27 = vrot.slane %v2621_v14, %v7810_v37  ;;  %v7101_v20 = vpack.c.bf16 %v2989_v15, %v2988_v13  ;;  %v2991_v14 = vld [vmem:[%s8683_s8 + $0x18] sm:$0xff] }
 0x94c   :  { %v2650_v5 = vrot.slane %v2629_v25, %v7810_v37  ;;  %v2666_v23 = vrot.slane %v2656_v22, %v7810_v37  ;;  %v2673_v29 = vrot.slane %v6258_v59, %v7810_v37  ;;  %v2643_v19 = vrot.slane %v2628_v28, %v7810_v37 }
 0x94d   :  { %v2651_v30 = vcombine.high %v2636_v27, %v2636_v27  ;;  %v2658_v32 = vcombine.low %v2604_v26, %v2636_v27  ;;  %v7105_v21 = vpack.c.bf16 %v2991_v14, %v2990_v16  ;;  %7102 = vmatprep.subr.bf16.mxu1 %v7101_v20 }
 0x94e   :  { %v2652_v33 = vcombine.high %v2650_v5, %v2650_v5  ;;  %v2688_v38 = vcombine.low %v2666_v23, %v2673_v29  ;;  %7104 = vmatpush3.bf16.msra.mxu1 %v7101_v20 }
 0x94f   :  { %v2659_v35 = vcombine.low %v2650_v5, %v2651_v30  ;;  %v2680_v39 = vrot.slane %v2658_v32, %v7810_v37  ;;  %7106 = vmatprep.subr.bf16.mxu1 %v7105_v21  ;;  %v7284_v5 = vld [vmem:[%s8686_s11] sm:$0x3f] }
 0x950   :  { %v2705_v36 = vcombine.low %v2652_v33, %v2643_v19  ;;  %v2696_v48 = vrot.slane %v2688_v38, %v7810_v37  ;;  %v2979_v23 = vrot.slane %v7284_v5, %v7960_v52  ;;  %v2985_v19 = vrot.slane %v7284_v5, %v7825_v60 }
 0x951   :  { %v2687_v44 = vrot.slane %v2659_v35, %v7810_v37  ;;  %v3109_v14 = vrot.slane %v7284_v5, %v7977_v17 }
 0x952   :  { %v2712_v47 = vrot.slane %v2705_v36, %v7810_v37  ;;  %7108 = vmatpush3.bf16.msra.mxu1 %v7105_v21 }
 0x953   :  { %v2689_v45 = vcombine.low %v2680_v39, %v2687_v44  ;;  %v3098_v39 = vld [vmem:[%s8685_s10] sm:$0xff]  ;;  %v3099_v44 = vld [vmem:[%s8685_s10 + $0x8] sm:$0xff] }
 0x954   :  { %v2719_v53 = vrot.slane %v2712_v47, %v7810_v37  ;;  %v7109_v18 = vpack.c.bf16 %v3099_v44, %v3098_v39  ;;  %v3102_v47 = vld [vmem:[%s8685_s10 + $0x20] sm:$0xff] }
 0x955   :  { %v2703_v41 = vrot.slane %v2689_v45, %v7810_v37  ;;  %v3100_v45 = vld [vmem:[%s8685_s10 + $0x10] sm:$0xff]  ;;  %v6283_v39 = vld [vmem:[%s8680_s5 + $0x40] sm:$0xff] }
 0x957   :  { %v2704_v50 = vcombine.low %v2696_v48, %v2703_v41  ;;  %v7113_v48 = vpack.c.bf16 %v3101_v46, %v3100_v45  ;;  %v3103_v41 = vld [vmem:[%s8685_s10 + $0x28] sm:$0xff]  ;;  %v6273_v45 = vld [vmem:[%s8678_s3 + $0x50] sm:$0xff]  ;;  %v6274_v46 = vld [vmem:[%s8678_s3 + $0x58] sm:$0xff] }
 0x958   :  { %v7117_v49 = vpack.c.bf16 %v3103_v41, %v3102_v47  ;;  %v6285_v41 = vld [vmem:[%s8680_s5 + $0x50] sm:$0xff] }
 0x959   :  { %6737 = vmatprep.mubr.msk.f32.mxu0 %vm983_vm6, %v2704_v50  ;;  %v3104_v50 = vld [vmem:[%s8685_s10 + $0x30] sm:$0xff] }
 0x95a   :  { %6738 = vmatmul.mubr.msk.f32.vlgmr.msra.gmra.mrb[12].mxu0 %vm983_vm6, %v2719_v53  ;;  %v7121_v53 = vpack.c.bf16 %v3105_v51, %v3104_v50  ;;  %v6277_v50 = vld [vmem:[%s8679_s4 + $0x40] sm:$0xff] }
 0x95b   :  { %7100 = vmatpush3.bf16.msra.mxu0 %v7097_v1  ;;  %6744 = vmatprep.mubr.msk.f32.mxu0 %vm983_vm6, %v8047_v24 }
 0x95c   :  { %7110 = vmatprep.subr.bf16.mxu0 %v7109_v18 }
 0x962   :  { %6745 = vmatmul.mubr.msk.f32.vlgmr.msra.gmra.mrb[12].mxu0 %vm983_vm6, %v2862_v54 }
 0x963   :  { %7112 = vmatpush3.bf16.msra.mxu0 %v7109_v18  ;;  %v6284_v18 = vld [vmem:[%s8680_s5 + $0x48] sm:$0xff] }
 0x964   :  { %7114 = vmatprep.subr.bf16.mxu0 %v7113_v48  ;;  %v7141_v47 = vpack.c.bf16 %v6284_v18, %v6283_v39 }
 0x967   :  { %7116 = vmatpush3.bf16.msra.mxu0 %v7113_v48  ;;  %v7129_v48 = vpack.c.bf16 %v6274_v46, %v6273_v45 }
 0x968   :  { %7118 = vmatprep.subr.bf16.mxu0 %v7117_v49 }
 0x96b   :  { %7120 = vmatpush3.bf16.msra.mxu0 %v7117_v49  ;;  %v6286_v49 = vld [vmem:[%s8680_s5 + $0x58] sm:$0xff] }
 0x96c   :  { %7122 = vmatprep.subr.bf16.mxu0 %v7121_v53  ;;  %v7145_v51 = vpack.c.bf16 %v6286_v49, %v6285_v41 }
 0x96f   :  { %7124 = vmatpush3.bf16.msra.mxu0 %v7121_v53  ;;  %v6278_v53 = vld [vmem:[%s8679_s4 + $0x48] sm:$0xff] }
 0x970   :  { %7142 = vmatprep.subr.bf16.mxu0 %v7141_v47 }
 0xa35   :  { %v6746_v34 = vpop.f32.mrb[12].mxu0 }
 0xa36   :  { %v2943_v56 = vadd.f32 %v6746_v34, %v7712_v40  ;;  %v2933_v57 = vpop.f32.mrb[13].mxu0 }
 0xa37   :  { %v2942_v58 = vadd.f32 %v2933_v57, %v7717_v43 }
 0xa38   :  { %v8116_v62 = vadd.f32 %v2947_v55, %v2943_v56 }
 0xa39   :  { %v8118_v63 = vadd.f32 %v2947_v55, %v2942_v58 }
 0xa3a   :  { %v2953_v24 = vsel %vm394_vm4, %v8116_v62, 0.0 }
 0xa3b   :  { %2954 = vadd.xlane.f32.xlu1 %v2953_v24  ;;  %v2950_v0 = vsel %vm390_vm3, %v8118_v63, 0.0 }
 0xa3c   :  { %2951 = vadd.xlane.f32.xlu0 %v2950_v0 }
 0xac8   :  { %v2955_v1 = vpop.xlane.xlu1 %2954 }
 0xac9   :  { %v2957_v10 = vmul.f32 0.03125, %v2955_v1  ;;  %v2952_v2 = vpop.xlane.xlu0 %2951 }
 0xaca   :  { %v2956_v3 = vmul.f32 0.03125, %v2952_v2 }
 0xacb   :  { %v2959_v40 = vsub.f32 %v8116_v62, %v2957_v10 }
 0xacc   :  { %v2958_v43 = vsub.f32 %v8118_v63, %v2956_v3 }
 0xacd   :  { %v2961_v4 = vmul.f32 %v2959_v40, %v2959_v40 }
 0xace   :  { %v2960_v6 = vmul.f32 %v2958_v43, %v2958_v43 }
 0xacf   :  { %v2965_v8 = vsel %vm394_vm4, %v2961_v4, 0.0 }
 0xad0   :  { %2966 = vadd.xlane.f32.xlu1 %v2965_v8  ;;  %v2962_v12 = vsel %vm390_vm3, %v2960_v6, 0.0 }
 0xad1   :  { %2963 = vadd.xlane.f32.xlu0 %v2962_v12 }
 0xb5d   :  { %v2967_v22 = vpop.xlane.xlu1 %2966 }
 0xb5e   :  { %v2969_v59 = vmul.f32 0.03125, %v2967_v22  ;;  %v2964_v28 = vpop.xlane.xlu0 %2963 }
 0xb5f   :  { %v2968_v25 = vmul.f32 0.03125, %v2964_v28 }
 0xb60   :  { %v2971_v26 = vadd.f32 1e-12, %v2969_v59 }
 0xb61   :  { %v2970_v27 = vadd.f32 1e-12, %v2968_v25 }
 0xb62   :  { %7246 = vrsqrt.f32 %v2971_v26 }
 0xb63   :  { %7248 = vrsqrt.f32 %v2970_v27 }
 0xb6c   :  { %v7247_v29 = vpop.eup %7246 }
 0xb6d   :  { %v7249_v30 = vpop.eup %7248  ;;  %v2975_v32 = vmul.f32 %v7247_v29, %v2959_v40 }
 0xb6e   :  { %v2974_v7 = vmul.f32 %v7249_v30, %v2958_v43 }
 0xb6f   :  { %v2981_v33 = vmul.f32 %v2979_v23, %v2975_v32 }
 0xb70   :  { %v2980_v35 = vmul.f32 %v2979_v23, %v2974_v7 }
 0xb71   :  { %v2987_v38 = vadd.f32 %v2985_v19, %v2981_v33 }
 0xb72   :  { %v2986_v36 = vadd.f32 %v2985_v19, %v2980_v35 }
 0xb74   :  { %6755 = vmatprep.mubr.msk.f32.mxu1 %vm390_vm3, %v2986_v36  ;;  %v6271_v36 = vld [vmem:[%s8678_s3 + $0x40] sm:$0xff] }
 0xb75   :  { %6756 = vmatmul.mubr.msk.f32.vlgmr.msra.gmra.mrb[22].mxu1 %vm390_vm3, %v2987_v38  ;;  %v6272_v38 = vld [vmem:[%s8678_s3 + $0x48] sm:$0xff] }
 0xb76   :  { %v7125_v44 = vpack.c.bf16 %v6272_v38, %v6271_v36 }
 0xb78   :  { %7126 = vmatprep.subr.bf16.mxu1 %v7125_v44 }
 0xb79   :  { %7128 = vmatpush3.bf16.msra.mxu1 %v7125_v44 }
 0xb7a   :  { %7130 = vmatprep.subr.bf16.mxu1 %v7129_v48 }
 0xb7d   :  { %7132 = vmatpush3.bf16.msra.mxu1 %v7129_v48 }
 0xc48   :  { %v6757_v54 = vpop.f32.mrb[22].mxu1 }
 0xc49   :  { %v3077_v55 = vadd.f32 %v6757_v54, %v6264_v61  ;;  %v3071_v34 = vpop.f32.mrb[23].mxu1 }
 0xc4a   :  { %v3072_v56 = vadd.f32 %v6264_v61, %v3071_v34  ;;  %v7133_v61 = vpack.c.bf16 %v6278_v53, %v6277_v50 }
 0xc4b   :  { %v3081_v57 = vmul.f32 %v3077_v55, %v3077_v55 }
 0xc4c   :  { %v3080_v58 = vmul.f32 %v3072_v56, %v3072_v56  ;;  %7134 = vmatprep.subr.bf16.mxu1 %v7133_v61 }
 0xc4d   :  { %v3083_v24 = vmul.f32 %v3081_v57, %v3077_v55 }
 0xc4e   :  { %v3082_v0 = vmul.f32 %v3080_v58, %v3072_v56 }
 0xc4f   :  { %v3085_v1 = vmul.f32 0.044715, %v3083_v24  ;;  %v8225_v24 = vld [vmem:[%s8686_s11 + $0x8] sm:$0x3f] }
 0xc50   :  { %v3084_v10 = vmul.f32 0.044715, %v3082_v0  ;;  %v3227_v0 = vrot.slane %v8225_v24, %v7748_v9 }
 0xc51   :  { %v3087_v2 = vadd.f32 %v3085_v1, %v3077_v55 }
 0xc52   :  { %v3086_v3 = vadd.f32 %v3084_v10, %v3072_v56 }
 0xc53   :  { %v3089_v40 = vmul.f32 0.7978846, %v3087_v2 }
 0xc54   :  { %v3088_v43 = vmul.f32 0.7978846, %v3086_v3  ;;  %v3233_v3 = vrot.slane %v8225_v24, %v7756_v11 }
 0xc55   :  { %7250 = vtanh.f32 %v3089_v40 }
 0xc56   :  { %7252 = vtanh.f32 %v3088_v43 }
 0xc5f   :  { %v7251_v4 = vpop.eup %7250 }
 0xc60   :  { %v7253_v6 = vpop.eup %7252  ;;  %v3093_v8 = vadd.f32 1.0, %v7251_v4 }
 0xc61   :  { %v3092_v12 = vadd.f32 1.0, %v7253_v6  ;;  %v6279_v6 = vld [vmem:[%s8679_s4 + $0x50] sm:$0xff] }
 0xc62   :  { %v3095_v13 = vmul.f32 0.5, %v3093_v8  ;;  %v6280_v8 = vld [vmem:[%s8679_s4 + $0x58] sm:$0xff] }
 0xc63   :  { %v3094_v15 = vmul.f32 0.5, %v3092_v12 }
 0xc64   :  { %v3097_v20 = vmul.f32 %v3095_v13, %v3077_v55 }
 0xc65   :  { %v3096_v16 = vmul.f32 %v3094_v15, %v3072_v56  ;;  %v7137_v15 = vpack.c.bf16 %v6280_v8, %v6279_v6 }
 0xc67   :  { %6774 = vmatprep.mubr.msk.f32.mxu0 %vm3110_vm9, %v3096_v16  ;;  %v8261_v16 = vld [vmem:[%s8682_s7 + $0x8] sm:$0x3f] }
 0xc68   :  { %6775 = vmatmul.mubr.msk.f32.vlgmr.msra.gmra.mrb[14].mxu0 %vm3110_vm9, %v3097_v20  ;;  %v3244_v20 = vrot.slane %v8261_v16, %v7748_v9 }
 0xc69   :  { %7144 = vmatpush3.bf16.msra.mxu0 %v7141_v47 }
 0xc6a   :  { %7146 = vmatprep.subr.bf16.mxu0 %v7145_v51 }
 0xc6d   :  { %7148 = vmatpush3.bf16.msra.mxu0 %v7145_v51 }
 0xc6e   :  { %6820 = vmatprep.subr.mxu0 %v7310_v31 }
 0xd3b   :  { %v6776_v21 = vpop.f32.mrb[14].mxu0 }
 0xd3c   :  { %v3189_v22 = vadd.f32 %v6776_v21, %v3109_v14  ;;  %v3183_v59 = vpop.f32.mrb[15].mxu0 }
 0xd3d   :  { %v3184_v28 = vadd.f32 %v3183_v59, %v3109_v14  ;;  %v3418_v14 = vrot.slane %v8261_v16, %v7825_v60 }
 0xd3e   :  { %v8178_v25 = vadd.f32 %v3189_v22, %v8116_v62 }
 0xd3f   :  { %v8181_v26 = vadd.f32 %v3184_v28, %v8118_v63 }
 0xd40   :  { %v3201_v27 = vsel %vm394_vm4, %v8178_v25, 0.0 }
 0xd41   :  { %3202 = vadd.xlane.f32.xlu1 %v3201_v27  ;;  %v3198_v23 = vsel %vm390_vm3, %v8181_v26, 0.0 }
 0xd42   :  { %3199 = vadd.xlane.f32.xlu0 %v3198_v23 }
 0xdce   :  { %v3203_v29 = vpop.xlane.xlu1 %3202 }
 0xdcf   :  { %v3205_v5 = vmul.f32 0.03125, %v3203_v29  ;;  %v3200_v30 = vpop.xlane.xlu0 %3199 }
 0xdd0   :  { %v3204_v32 = vmul.f32 0.03125, %v3200_v30 }
 0xdd1   :  { %v3207_v7 = vsub.f32 %v8178_v25, %v3205_v5 }
 0xdd2   :  { %v3206_v62 = vsub.f32 %v8181_v26, %v3204_v32 }
 0xdd3   :  { %v3209_v19 = vmul.f32 %v3207_v7, %v3207_v7 }
 0xdd4   :  { %v3208_v33 = vmul.f32 %v3206_v62, %v3206_v62 }
 0xdd5   :  { %v3213_v63 = vsel %vm394_vm4, %v3209_v19, 0.0 }
 0xdd6   :  { %3214 = vadd.xlane.f32.xlu1 %v3213_v63  ;;  %v3210_v35 = vsel %vm390_vm3, %v3208_v33, 0.0 }
 0xdd7   :  { %3211 = vadd.xlane.f32.xlu0 %v3210_v35 }
 0xe63   :  { %v3215_v54 = vpop.xlane.xlu1 %3214 }
 0xe64   :  { %v3217_v55 = vmul.f32 0.03125, %v3215_v54  ;;  %v3212_v34 = vpop.xlane.xlu0 %3211 }
 0xe65   :  { %v3216_v56 = vmul.f32 0.03125, %v3212_v34  ;;  %v3334_v34 = vrot.slane %v8261_v16, %v7813_v42 }
 0xe66   :  { %v3219_v57 = vadd.f32 1e-12, %v3217_v55 }
 0xe67   :  { %v3218_v58 = vadd.f32 1e-12, %v3216_v56 }
 0xe68   :  { %7254 = vrsqrt.f32 %v3219_v57 }
 0xe69   :  { %7256 = vrsqrt.f32 %v3218_v58 }
 0xe72   :  { %v7255_v1 = vpop.eup %7254 }
 0xe73   :  { %v7257_v10 = vpop.eup %7256  ;;  %v3223_v2 = vmul.f32 %v7255_v1, %v3207_v7 }
 0xe74   :  { %v3222_v40 = vmul.f32 %v7257_v10, %v3206_v62 }
 0xe75   :  { %v3229_v43 = vmul.f32 %v3227_v0, %v3223_v2 }
 0xe76   :  { %v3228_v4 = vmul.f32 %v3227_v0, %v3222_v40 }
 0xe77   :  { %v8239_v13 = vadd.f32 %v3233_v3, %v3229_v43 }
 0xe78   :  { %v8237_v12 = vadd.f32 %v3233_v3, %v3228_v4 }
 0xe7a   :  { %6785 = vmatprep.mubr.msk.f32.mxu1 %vm390_vm3, %v8237_v12  ;;  %6807 = vmatprep.mubr.msk.f32.mxu0 %vm390_vm3, %v8237_v12 }
 0xe7b   :  { %6786 = vmatmul.mubr.msk.f32.vlgmr.msra.gmra.mrb[24].mxu1 %vm390_vm3, %v8239_v13  ;;  %6808 = vmatmul.mubr.msk.f32.vlgmr.msra.gmra.mrb[16].mxu0 %vm390_vm3, %v8239_v13 }
 0xe7c   :  { %7136 = vmatpush3.bf16.msra.mxu1 %v7133_v61  ;;  %6796 = vmatprep.mubr.msk.f32.mxu1 %vm390_vm3, %v8237_v12 }
 0xe7d   :  { %7138 = vmatprep.subr.bf16.mxu1 %v7137_v15  ;;  %6822 = vmatprep.mubr.msk.f32.mxu0 %vm7311_vm5, %v7310_v31 }
 0xe80   :  { %7140 = vmatpush3.bf16.msra.mxu1 %v7137_v15 }
 0xe81   :  { %6810 = vmatprep.subr.mxu1 %v7310_v31 }
 0xe83   :  { %6797 = vmatmul.mubr.msk.f32.vlgmr.msra.gmra.mrb[26].mxu1 %vm390_vm3, %v8239_v13 }
 0xe84   :  { %6812 = vmatprep.mubr.msk.f32.mxu1 %vm7311_vm5, %v7310_v31 }
 0xf4e   :  { %v6787_v21 = vpop.f32.mrb[24].mxu1  ;;  %v6809_v22 = vpop.f32.mrb[16].mxu0 }
 0xf4f   :  { %v3323_v59 = vadd.f32 %v6787_v21, %v3244_v20  ;;  %v3491_v28 = vadd.f32 %v6809_v22, %v3418_v14  ;;  %v3317_v27 = vpop.f32.mrb[25].mxu1  ;;  %v3485_v23 = vpop.f32.mrb[17].mxu0 }
 0xf50   :  { %v3318_v29 = vadd.f32 %v3317_v27, %v3244_v20  ;;  %v3486_v5 = vadd.f32 %v3485_v23, %v3418_v14 }
 0xf51   :  { %v3551_v30 = vrot.slane %v3323_v59, %v7810_v37  ;;  %v3697_v19 = vrot.slane %v3491_v28, %v7810_v37 }
 0xf52   :  { %v3496_v32 = vcombine.high %v3318_v29, %v3318_v29  ;;  %v3642_v7 = vcombine.high %v3486_v5, %v3486_v5  ;;  %v3649_v62 = vrot.slane %v3486_v5, %v7810_v37  ;;  %v3503_v63 = vrot.slane %v3318_v29, %v7810_v37 }
 0xf53   :  { %v3552_v33 = vcombine.high %v3551_v30, %v3551_v30  ;;  %v3698_v46 = vcombine.high %v3697_v19, %v3697_v19  ;;  %v3559_v61 = vrot.slane %v3551_v30, %v7810_v37  ;;  %v3705_v56 = vrot.slane %v3697_v19, %v7810_v37 }
 0xf54   :  { %v3510_v35 = vrot.slane %v3496_v32, %v7810_v37  ;;  %v3656_v36 = vrot.slane %v3642_v7, %v7810_v37  ;;  %v3657_v38 = vcombine.high %v3649_v62, %v3649_v62  ;;  %v3511_v50 = vcombine.high %v3503_v63, %v3503_v63 }
 0xf55   :  { %v3566_v49 = vrot.slane %v3552_v33, %v7810_v37  ;;  %v3665_v54 = vrot.slane %v3649_v62, %v7810_v37  ;;  %v3519_v57 = vrot.slane %v3503_v63, %v7810_v37  ;;  %v3712_v1 = vrot.slane %v3698_v46, %v7810_v37 }
 0xf56   :  { %v3512_v39 = vcombine.high %v3510_v35, %v3510_v35  ;;  %v8274_v44 = vrot.slane %v3510_v35, %v7810_v37  ;;  %v3658_v18 = vcombine.high %v3656_v36, %v3656_v36  ;;  %v6798_v45 = vpop.f32.mrb[26].mxu1  ;;  %v3672_v47 = vrot.slane %v3656_v36, %v7810_v37 }
 0xf57   :  { %v3679_v48 = vrot.slane %v3657_v38, %v7810_v37  ;;  %v3401_v41 = vpop.f32.mrb[27].mxu1  ;;  %v3887_v40 = vrot.slane %v3566_v49, %v7810_v37  ;;  %v3533_v43 = vrot.slane %v3511_v50, %v7810_v37  ;;  %v3407_v28 = vadd.f32 %v6798_v45, %v3334_v34 }
 0xf58   :  { %v3540_v51 = vrot.slane %v3512_v39, %v7810_v37  ;;  %v3542_v53 = vcombine.high %v8274_v44, %v8274_v44  ;;  %v3686_v55 = vrot.slane %v3658_v18, %v7810_v37  ;;  %v3688_v10 = vcombine.high %v3672_v47, %v3672_v47 }
 0xf59   :  { %v4041_v3 = vcombine.low %v3665_v54, %v3679_v48  ;;  %v6295_v6 = vcombine.high %v3665_v54, %v3679_v48  ;;  %v4063_v59 = vrot.slane %v3672_v47, %v7810_v37  ;;  %v4177_v27 = vrot.slane %v3712_v1, %v7810_v37 }
 0xf5a   :  { %v3544_v58 = vcombine.high %v3540_v51, %v3540_v51  ;;  %v3865_v0 = vcombine.low %v3540_v51, %v3542_v53  ;;  %v3690_v2 = vcombine.high %v3686_v55, %v3686_v55  ;;  %v4155_v20 = vcombine.low %v3686_v55, %v3688_v10 }
 0xf5b   :  { %v4049_v15 = vrot.slane %v4041_v3, %v7810_v37  ;;  %v4056_v22 = vrot.slane %v6295_v6, %v7810_v37  ;;  %v3402_v5 = vadd.f32 %v3401_v41, %v3334_v34  ;;  %v3713_v30 = vcombine.low %v3519_v57, %v3533_v43 }
 0xf5c   :  { %v3866_v4 = vcombine.low %v3544_v58, %v3559_v61  ;;  %v3873_v8 = vrot.slane %v3865_v0, %v7810_v37  ;;  %v4156_v14 = vcombine.low %v3690_v2, %v3705_v56  ;;  %v4163_v23 = vrot.slane %v4155_v20, %v7810_v37 }
 0xf5d   :  { %v4064_v7 = vcombine.low %v4049_v15, %v4056_v22  ;;  %v3624_v62 = vrot.slane %v3407_v28, %v7810_v37  ;;  %v6289_v19 = vcombine.high %v3519_v57, %v3533_v43  ;;  %v3569_v63 = vcombine.high %v3402_v5, %v3402_v5 }
 0xf5e   :  { %v3880_v21 = vrot.slane %v3866_v4, %v7810_v37  ;;  %v4170_v29 = vrot.slane %v4156_v14, %v7810_v37  ;;  %v3576_v35 = vrot.slane %v3402_v5, %v7810_v37  ;;  %v3902_v36 = vrot.slane %v3887_v40, %v7810_v37 }
 0xf5f   :  { %v4071_v38 = vrot.slane %v4064_v7, %v7810_v37  ;;  %v4078_v39 = vrot.slane %v4063_v59, %v7810_v37  ;;  %v4192_v45 = vrot.slane %v4177_v27, %v7810_v37  ;;  %v3583_v46 = vrot.slane %v3569_v63, %v7810_v37 }
 0xf60   :  { %v3888_v32 = vcombine.low %v3873_v8, %v3880_v21  ;;  %v4178_v33 = vcombine.low %v4163_v23, %v4170_v29  ;;  %v3584_v47 = vcombine.high %v3576_v35, %v3576_v35  ;;  %v3625_v41 = vcombine.high %v3624_v62, %v3624_v62 }
 0xf61   :  { %v3592_v49 = vrot.slane %v3576_v35, %v7810_v37  ;;  %v4079_v50 = vcombine.low %v4071_v38, %v4078_v39  ;;  %v3585_v53 = vcombine.high %v3583_v46, %v3583_v46  ;;  %v3599_v61 = vrot.slane %v3583_v46, %v7810_v37 }
 0xf62   :  { %v3895_v18 = vrot.slane %v3888_v32, %v7810_v37  ;;  %v4185_v48 = vrot.slane %v4178_v33, %v7810_v37  ;;  %v3606_v54 = vrot.slane %v3584_v47, %v7810_v37  ;;  %v3721_v34 = vrot.slane %v3713_v30, %v7810_v37 }
 0xf63   :  { %v3728_v56 = vrot.slane %v6289_v19, %v7810_v37  ;;  %6821 = vmatpush3.msk.msra.mxu0 %vm384_vm1, %v4079_v50  ;;  %v3613_v57 = vrot.slane %v3585_v53, %v7810_v37  ;;  %v3615_v58 = vcombine.high %v3599_v61, %v3599_v61  ;;  %v3632_v10 = vrot.slane %v3624_v62, %v7810_v37 }
 0xf64   :  { %v3903_v51 = vcombine.low %v3895_v18, %v3902_v36  ;;  %v4193_v55 = vcombine.low %v4185_v48, %v4192_v45  ;;  %v3752_v0 = vcombine.low %v3592_v49, %v3606_v54  ;;  %v6290_v1 = vcombine.high %v3592_v49, %v3606_v54  ;;  %v6302_v54 = vld [vmem:[%s8678_s3 + $0x60] sm:$0xff] }
 0xf65   :  { %v3639_v2 = vrot.slane %v3625_v41, %v7810_v37  ;;  %v3774_v3 = vrot.slane %v3599_v61, %v7810_v37  ;;  %v3617_v40 = vcombine.high %v3613_v57, %v3613_v57  ;;  %v3904_v6 = vcombine.low %v3613_v57, %v3615_v58  ;;  %v6309_v57 = vld [vmem:[%s8679_s4 + $0x68] sm:$0xff] }
 0xf66   :  { %v3760_v43 = vrot.slane %v3752_v0, %v7810_v37  ;;  %v3767_v4 = vrot.slane %v6290_v1, %v7810_v37  ;;  %v3736_v8 = vcombine.low %v3721_v34, %v3728_v56  ;;  %v3735_v14 = vrot.slane %v8274_v44, %v7810_v37  ;;  %v6308_v56 = vld [vmem:[%s8679_s4 + $0x60] sm:$0xff] }
 0xf67   :  { %v3905_v20 = vcombine.low %v3617_v40, %v3632_v10  ;;  %v3926_v21 = vrot.slane %v3639_v2, %v7810_v37  ;;  %v3789_v59 = vrot.slane %v3774_v3, %v7810_v37  ;;  %v3912_v28 = vrot.slane %v3904_v6, %v7810_v37  ;;  %v6304_v10 = vld [vmem:[%s8678_s3 + $0x70] sm:$0xff]  ;;  %v6305_v2 = vld [vmem:[%s8678_s3 + $0x78] sm:$0xff] }
 0xf68   :  { %v3775_v15 = vcombine.low %v3760_v43, %v3767_v4  ;;  %v3743_v23 = vrot.slane %v3736_v8, %v7810_v37  ;;  %v3750_v30 = vrot.slane %v3735_v14, %v7810_v37  ;;  %v7157_v58 = vpack.c.bf16 %v6309_v57, %v6308_v56  ;;  %v6310_v4 = vld [vmem:[%s8679_s4 + $0x70] sm:$0xff]  ;;  %v6311_v6 = vld [vmem:[%s8679_s4 + $0x78] sm:$0xff]  ;;  %v6314_v8 = vld [vmem:[%s8680_s5 + $0x60] sm:$0xff] }
 0xf69   :  { %v3919_v27 = vrot.slane %v3905_v20, %v7810_v37  ;;  %v3941_v32 = vrot.slane %v3926_v21, %v7810_v37  ;;  %v7153_v43 = vpack.c.bf16 %v6305_v2, %v6304_v10  ;;  %v7161_v21 = vpack.c.bf16 %v6311_v6, %v6310_v4 }
 0xf6a   :  { %v3782_v22 = vrot.slane %v3775_v15, %v7810_v37  ;;  %v3751_v7 = vcombine.low %v3743_v23, %v3750_v30  ;;  %v6315_v15 = vld [vmem:[%s8680_s5 + $0x68] sm:$0xff] }
 0xf6b   :  { %v3927_v29 = vcombine.low %v3912_v28, %v3919_v27  ;;  %v6317_v28 = vld [vmem:[%s8680_s5 + $0x78] sm:$0xff] }
 0xf6c   :  { %v3790_v5 = vcombine.low %v3782_v22, %v3789_v59  ;;  %v7165_v22 = vpack.c.bf16 %v6315_v15, %v6314_v8  ;;  %v6316_v59 = vld [vmem:[%s8680_s5 + $0x70] sm:$0xff] }
 0xf6d   :  { %v3934_v44 = vrot.slane %v3927_v29, %v7810_v37  ;;  %v7169_v27 = vpack.c.bf16 %v6317_v28, %v6316_v59 }
 0xf6e   :  { %6811 = vmatpush3.xpose.msk.msra.mxu1 %vm983_vm6, %v3790_v5 }
 0xf6f   :  { %6815 = vmatprep.subr.mxu1 %v7310_v31  ;;  %v3942_v62 = vcombine.low %v3934_v44, %v3941_v32 }
 0xf71   :  { %6813 = vmatmul.mubr.msk.f32.vlgmr.msra.gmra.mrb[28].mxu1 %vm983_vm6, %v3751_v7 }
 0xf72   :  { %6816 = vmatpush3.xpose.msk.msra.mxu1 %vm983_vm6, %v3942_v62  ;;  %6817 = vmatprep.mubr.msk.f32.mxu1 %vm7311_vm5, %v7310_v31 }
 0xf73   :  { %6825 = vmatprep.subr.mxu1 %v7310_v31 }
 0xf75   :  { %6818 = vmatmul.mubr.msk.f32.vlgmr.msra.gmra.mrb[30].mxu1 %vm983_vm6, %v3903_v51 }
 0xf76   :  { %6826 = vmatpush3.msk.msra.mxu1 %vm384_vm1, %v4193_v55  ;;  %6827 = vmatprep.mubr.msk.f32.mxu1 %vm7311_vm5, %v7310_v31  ;;  %v6303_v55 = vld [vmem:[%s8678_s3 + $0x68] sm:$0xff] }
 0xf77   :  { %v7149_v34 = vpack.c.bf16 %v6303_v55, %v6302_v54  ;;  %7158 = vmatprep.subr.bf16.mxu1 %v7157_v58 }
 0xf79   :  { %7150 = vmatprep.subr.bf16.mxu0 %v7149_v34 }
0x1044   :  { %v3861_v19 = vpop.f32.mrb[28].mxu1 }
0x1045   :  { %v4017_v33 = vmul.f32 0.25, %v3861_v19  ;;  %v6814_v63 = vpop.f32.mrb[29].mxu1 }
0x1047   :  { %v4019_v35 = vsel %vm1212_vm7, %v4017_v33, -inf }
0x1048   :  { %4020 = vmax.xlane.f32.xlu1 %v4019_v35  ;;  %v4013_v36 = vpop.f32.mrb[30].mxu1 }
0x1049   :  { %v4018_v38 = vmul.f32 0.25, %v4013_v36  ;;  %v6819_v39 = vpop.f32.mrb[31].mxu1 }
0x104b   :  { %v4022_v18 = vsel %vm1212_vm7, %v4018_v38, -inf }
0x104c   :  { %4023 = vmax.xlane.f32.xlu0 %v4022_v18 }
0x10d5   :  { %v4021_v45 = vpop.xlane.xlu1 %4020 }
0x10d6   :  { %v4025_v46 = vsub.f32 %v4017_v33, %v4021_v45  ;;  %v4360_v33 = vrot.slane %v8261_v16, %v7756_v11 }
0x10d8   :  { %v4027_v47 = vmul.f32 1.442695, %v4025_v46 }
0x10d9   :  { %v4024_v48 = vpop.xlane.xlu0 %4023 }
0x10da   :  { %7258 = vpow2.f32 %v4027_v47  ;;  %v4026_v41 = vsub.f32 %v4018_v38, %v4024_v48  ;;  %v4444_v47 = vrot.slane %v8261_v16, %v7960_v52 }
0x10dc   :  { %v4029_v49 = vmul.f32 1.442695, %v4026_v41 }
0x10de   :  { %7260 = vpow2.f32 %v4029_v49 }
0x10e4   :  { %v7259_v50 = vpop.eup %7258 }
0x10e5   :  { %v4031_v51 = vsel %vm1212_vm7, %v7259_v50, 0.0 }
0x10e6   :  { %4032 = vadd.xlane.f32.xlu1 %v4031_v51 }
0x10e8   :  { %v7261_v53 = vpop.eup %7260 }
0x10e9   :  { %v4034_v61 = vsel %vm1212_vm7, %v7261_v53, 0.0 }
0x10ea   :  { %4035 = vadd.xlane.f32.xlu0 %v4034_v61 }
0x1173   :  { %v4033_v0 = vpop.xlane.xlu1 %4032 }
0x1174   :  { %7262 = vrcp.f32 %v4033_v0 }
0x1177   :  { %v4036_v1 = vpop.xlane.xlu0 %4035 }
0x1178   :  { %7264 = vrcp.f32 %v4036_v1 }
0x117e   :  { %v7263_v3 = vpop.eup %7262 }
0x117f   :  { %v4039_v40 = vmul.f32 %v7263_v3, %v7259_v50 }
0x1181   :  { %6823 = vmatmul.mubr.msk.f32.vlgmr.msra.gmra.mrb[18].mxu0 %vm1274_vm8, %v4039_v40 }
0x1182   :  { %v7265_v20 = vpop.eup %7264  ;;  %7152 = vmatpush3.bf16.msra.mxu0 %v7149_v34  ;;  %6838 = vmatprep.mubr.msk.f32.mxu0 %vm390_vm3, %v8237_v12 }
0x1183   :  { %v4040_v14 = vmul.f32 %v7265_v20, %v7261_v53  ;;  %7154 = vmatprep.subr.bf16.mxu0 %v7153_v43 }
0x1185   :  { %6828 = vmatmul.mubr.msk.f32.vlgmr.msra.gmra.mrb[32].mxu1 %vm1274_vm8, %v4040_v14 }
0x1186   :  { %7156 = vmatpush3.bf16.msra.mxu0 %v7153_v43  ;;  %7160 = vmatpush3.bf16.msra.mxu1 %v7157_v58 }
0x1187   :  { %6849 = vmatprep.mubr.msk.f32.mxu1 %vm390_vm3, %v8237_v12  ;;  %7162 = vmatprep.subr.bf16.mxu1 %v7161_v21 }
0x1188   :  { %7166 = vmatprep.subr.bf16.mxu0 %v7165_v22 }
0x1189   :  { %6839 = vmatmul.mubr.msk.f32.vlgmr.msra.gmra.mrb[20].mxu0 %vm390_vm3, %v8239_v13 }
0x118a   :  { %7164 = vmatpush3.bf16.msra.mxu1 %v7161_v21  ;;  %7168 = vmatpush3.bf16.msra.mxu0 %v7165_v22 }
0x118b   :  { %6860 = vmatprep.mubr.msk.f32.mxu0 %vm390_vm3, %v8237_v12  ;;  %7170 = vmatprep.subr.bf16.mxu0 %v7169_v27 }
0x118c   :  { %6863 = vmatprep.subr.mxu1 %v7310_v31 }
0x118d   :  { %6850 = vmatmul.mubr.msk.f32.vlgmr.msra.gmra.mrb[34].mxu1 %vm390_vm3, %v8239_v13 }
0x118e   :  { %7172 = vmatpush3.bf16.msra.mxu0 %v7169_v27  ;;  %6865 = vmatprep.mubr.msk.f32.mxu1 %vm7311_vm5, %v7310_v31 }
0x118f   :  { %6873 = vmatprep.subr.mxu0 %v7310_v31 }
0x1191   :  { %6861 = vmatmul.mubr.msk.f32.vlgmr.msra.gmra.mrb[22].mxu0 %vm390_vm3, %v8239_v13 }
0x1192   :  { %6875 = vmatprep.mubr.msk.f32.mxu0 %vm7311_vm5, %v7310_v31 }
0x1254   :  { %v4151_v23 = vpop.f32.mrb[18].mxu0 }
0x1255   :  { %v4271_v12 = vcombine.high %v4151_v23, %v4151_v23  ;;  %v4278_v29 = vrot.slane %v4151_v23, %v7810_v37  ;;  %v6824_v5 = vpop.f32.mrb[19].mxu0  ;;  %v4528_v23 = vrot.slane %v8261_v16, %v7977_v17 }
0x1257   :  { %v4286_v30 = vcombine.high %v4278_v29, %v4278_v29  ;;  %v4285_v32 = vrot.slane %v4271_v12, %v7810_v37  ;;  %v4293_v7 = vrot.slane %v4278_v29, %v7810_v37 }
0x1258   :  { %v8405_v44 = vpop.f32.mrb[32].mxu1 }
0x1259   :  { %v4307_v62 = vrot.slane %v4286_v30, %v7810_v37  ;;  %v4317_v13 = vrot.slane %v8405_v44, %v7810_v37  ;;  %v6829_v19 = vpop.f32.mrb[33].mxu1  ;;  %v4300_v38 = vrot.slane %v4285_v32, %v7810_v37 }
0x125b   :  { %v5605_v63 = vcombine.low %v4293_v7, %v4307_v62  ;;  %v6336_v35 = vcombine.high %v4293_v7, %v4307_v62  ;;  %v4325_v36 = vcombine.high %v4317_v13, %v4317_v13  ;;  %v4332_v39 = vrot.slane %v4317_v13, %v7810_v37 }
0x125c   :  { %v6840_v18 = vpop.f32.mrb[20].mxu0 }
0x125d   :  { %v8416_v45 = vrot.slane %v4325_v36, %v7810_v37  ;;  %v4427_v46 = vpop.f32.mrb[21].mxu0  ;;  %v4347_v48 = vcombine.high %v4332_v39, %v4332_v39  ;;  %v5607_v41 = vcombine.low %v4300_v38, %v4332_v39  ;;  %v4433_v49 = vadd.f32 %v6840_v18, %v4360_v33 }
0x125e   :  { %v4428_v50 = vadd.f32 %v4427_v46, %v4360_v33  ;;  %v5615_v51 = vrot.slane %v5605_v63, %v7810_v37  ;;  %v5622_v53 = vrot.slane %v6336_v35, %v7810_v37 }
0x125f   :  { %v5608_v61 = vcombine.low %v8416_v45, %v4347_v48  ;;  %v4661_v54 = vrot.slane %v4433_v49, %v7810_v37  ;;  %v5629_v0 = vrot.slane %v5607_v41, %v7810_v37 }
0x1260   :  { %v4606_v55 = vcombine.high %v4428_v50, %v4428_v50  ;;  %v6851_v34 = vpop.f32.mrb[34].mxu1  ;;  %v4613_v56 = vrot.slane %v4428_v50, %v7810_v37  ;;  %v5637_v3 = vcombine.low %v5615_v51, %v5622_v53 }
0x1261   :  { %v4517_v57 = vadd.f32 %v6851_v34, %v4444_v47  ;;  %v4511_v58 = vpop.f32.mrb[35].mxu1  ;;  %v5636_v1 = vrot.slane %v5608_v61, %v7810_v37  ;;  %v4662_v10 = vcombine.high %v4661_v54, %v4661_v54  ;;  %v4669_v32 = vrot.slane %v4661_v54, %v7810_v37 }
0x1262   :  { %v4620_v2 = vrot.slane %v4606_v55, %v7810_v37  ;;  %v4621_v40 = vcombine.high %v4613_v56, %v4613_v56  ;;  %v4629_v14 = vrot.slane %v4613_v56, %v7810_v37  ;;  %v4512_v30 = vadd.f32 %v4511_v58, %v4444_v47 }
0x1263   :  { %v4734_v43 = vrot.slane %v4517_v57, %v7810_v37  ;;  %v8429_v4 = vcombine.low %v5629_v0, %v5636_v1  ;;  %v4676_v6 = vrot.slane %v4662_v10, %v7810_v37  ;;  %v8441_v13 = vrot.slane %v5637_v3, %v7810_v37 }
0x1264   :  { %v4622_v8 = vcombine.high %v4620_v2, %v4620_v2  ;;  %v4636_v15 = vrot.slane %v4620_v2, %v7810_v37  ;;  %v6862_v20 = vpop.f32.mrb[22].mxu0  ;;  %v4643_v21 = vrot.slane %v4621_v40, %v7810_v37  ;;  %v4679_v35 = vcombine.high %v4512_v30, %v4512_v30 }
0x1265   :  { %v4595_v22 = vpop.f32.mrb[23].mxu0  ;;  %v4735_v27 = vcombine.high %v4734_v43, %v4734_v43  ;;  %v4997_v12 = vrot.slane %v4676_v6, %v7810_v37  ;;  %v4742_v63 = vrot.slane %v4734_v43, %v7810_v37  ;;  %v4686_v38 = vrot.slane %v4512_v30, %v7810_v37 }
0x1266   :  { %v4650_v59 = vrot.slane %v4622_v8, %v7810_v37  ;;  %v4652_v28 = vcombine.high %v4636_v15, %v4636_v15  ;;  %v4823_v29 = vcombine.low %v4629_v14, %v4643_v21  ;;  %v6320_v5 = vcombine.high %v4629_v14, %v4643_v21 }
0x1267   :  { %v4845_v33 = vrot.slane %v4636_v15, %v7810_v37  ;;  %v4601_v39 = vadd.f32 %v6862_v20, %v4528_v23  ;;  %v5012_v18 = vrot.slane %v4997_v12, %v7810_v37  ;;  %v4749_v46 = vrot.slane %v4735_v27, %v7810_v37 }
0x1268   :  { %v4654_v7 = vcombine.high %v4650_v59, %v4650_v59  ;;  %v4975_v62 = vcombine.low %v4650_v59, %v4652_v28  ;;  %v4831_v19 = vrot.slane %v4823_v29, %v7810_v37  ;;  %v4838_v16 = vrot.slane %v6320_v5, %v7810_v37 }
0x1269   :  { %v4693_v47 = vrot.slane %v4679_v35, %v7810_v37  ;;  %v4596_v48 = vadd.f32 %v4595_v22, %v4528_v23  ;;  %v4694_v50 = vcombine.high %v4686_v38, %v4686_v38  ;;  %v4807_v51 = vrot.slane %v4601_v39, %v7810_v37 }
0x126a   :  { %v4976_v36 = vcombine.low %v4654_v7, %v4669_v32  ;;  %v4983_v41 = vrot.slane %v4975_v62, %v7810_v37  ;;  %v8455_v53 = vrot.slane %v4845_v33, %v7810_v37  ;;  %v4846_v34 = vcombine.low %v4831_v19, %v4838_v16 }
0x126b   :  { %v4695_v61 = vcombine.high %v4693_v47, %v4693_v47  ;;  %v4709_v54 = vrot.slane %v4693_v47, %v7810_v37  ;;  %v4752_v55 = vcombine.high %v4596_v48, %v4596_v48  ;;  %v4702_v57 = vrot.slane %v4686_v38, %v7810_v37 }
0x126c   :  { %v4990_v49 = vrot.slane %v4976_v36, %v7810_v37  ;;  %v4716_v58 = vrot.slane %v4694_v50, %v7810_v37  ;;  %v4808_v10 = vcombine.high %v4807_v51, %v4807_v51  ;;  %v4759_v2 = vrot.slane %v4596_v48, %v7810_v37 }
0x126d   :  { %v4723_v0 = vrot.slane %v4695_v61, %v7810_v37  ;;  %v4725_v1 = vcombine.high %v4709_v54, %v4709_v54  ;;  %v5036_v3 = vrot.slane %v4749_v46, %v7810_v37  ;;  %v4766_v6 = vrot.slane %v4752_v55, %v7810_v37 }
0x126e   :  { %v4998_v56 = vcombine.low %v4983_v41, %v4990_v49  ;;  %v4862_v40 = vcombine.low %v4702_v57, %v4716_v58  ;;  %v6321_v43 = vcombine.high %v4702_v57, %v4716_v58  ;;  %v4884_v15 = vrot.slane %v4709_v54, %v7810_v37 }
0x126f   :  { %v4727_v8 = vcombine.high %v4723_v0, %v4723_v0  ;;  %v5014_v20 = vcombine.low %v4723_v0, %v4725_v1  ;;  %v4767_v14 = vcombine.high %v4759_v2, %v4759_v2  ;;  %v4853_v21 = vrot.slane %v4846_v34, %v7810_v37 }
0x1270   :  { %v4870_v22 = vrot.slane %v4862_v40, %v7810_v37  ;;  %v4877_v59 = vrot.slane %v6321_v43, %v7810_v37  ;;  %v4768_v28 = vcombine.high %v4766_v6, %v4766_v6  ;;  %v4815_v23 = vrot.slane %v4807_v51, %v7810_v37 }
0x1271   :  { %v5015_v27 = vcombine.low %v4727_v8, %v4742_v63  ;;  %v4822_v12 = vrot.slane %v4808_v10, %v7810_v37  ;;  %v4782_v29 = vrot.slane %v4766_v6, %v7810_v37  ;;  %v4775_v30 = vrot.slane %v4759_v2, %v7810_v37 }
0x1272   :  { %v4885_v5 = vcombine.low %v4870_v22, %v4877_v59  ;;  %v4789_v32 = vrot.slane %v4767_v14, %v7810_v37  ;;  %v4796_v7 = vrot.slane %v4768_v28, %v7810_v37  ;;  %v4899_v62 = vrot.slane %v4884_v15, %v7810_v37 }
0x1273   :  { %v5022_v19 = vrot.slane %v5014_v20, %v7810_v37  ;;  %v5029_v33 = vrot.slane %v5015_v27, %v7810_v37  ;;  %v4798_v63 = vcombine.high %v4782_v29, %v4782_v29  ;;  %v5173_v46 = vrot.slane %v4782_v29, %v7810_v37 }
0x1274   :  { %v4892_v35 = vrot.slane %v4885_v5, %v7810_v37  ;;  %v4800_v16 = vcombine.high %v4796_v7, %v4796_v7  ;;  %v5151_v36 = vcombine.low %v4775_v30, %v4789_v32  ;;  %v6326_v38 = vcombine.high %v4775_v30, %v4789_v32 }
0x1275   :  { %v5037_v39 = vcombine.low %v5022_v19, %v5029_v33  ;;  %v5265_v47 = vcombine.low %v4796_v7, %v4798_v63  ;;  %v5005_v48 = vrot.slane %v4998_v56, %v7810_v37  ;;  %v5051_v61 = vrot.slane %v5036_v3, %v7810_v37 }
0x1276   :  { %v5159_v41 = vrot.slane %v5151_v36, %v7810_v37  ;;  %v5166_v49 = vrot.slane %v6326_v38, %v7810_v37  ;;  %v5266_v50 = vcombine.low %v4800_v16, %v4815_v23  ;;  %v4900_v51 = vcombine.low %v4892_v35, %v4899_v62  ;;  %v6331_v38 = vld [vmem:[%s8681_s6 + $0x30] sm:$0xff] }
0x1277   :  { %v5044_v54 = vrot.slane %v5037_v39, %v7810_v37  ;;  %v5013_v55 = vcombine.low %v5005_v48, %v5012_v18  ;;  %v5652_v34 = vrot.slane %v8429_v4, %v7810_v37  ;;  %v5287_v57 = vrot.slane %v4822_v12, %v7810_v37  ;;  %v6332_v39 = vld [vmem:[%s8681_s6 + $0x38] sm:$0xff]  ;;  %v6301_v48 = vld [vmem:[%s8681_s6 + $0x28] sm:$0xff] }
0x1278   :  { %v5174_v58 = vcombine.low %v5159_v41, %v5166_v49  ;;  %v5273_v0 = vrot.slane %v5265_v47, %v7810_v37  ;;  %v5280_v56 = vrot.slane %v5266_v50, %v7810_v37  ;;  %6864 = vmatpush3.xpose.msk.msra.mxu1 %vm983_vm6, %v4900_v51  ;;  %v4861_v1 = vcombine.low %v4853_v21, %v8455_v53  ;;  %v6300_v47 = vld [vmem:[%s8681_s6 + $0x20] sm:$0xff] }
0x1279   :  { %6868 = vmatprep.subr.mxu1 %v7310_v31  ;;  %v5052_v10 = vcombine.low %v5044_v54, %v5051_v61  ;;  %v8493_v2 = vcombine.low %v8441_v13, %v5652_v34  ;;  %v5188_v4 = vrot.slane %v5173_v46, %v7810_v37  ;;  %v5302_v40 = vrot.slane %v5287_v57, %v7810_v37 }
0x127a   :  { %v5181_v18 = vrot.slane %v5174_v58, %v7810_v37  ;;  %v5288_v3 = vcombine.low %v5273_v0, %v5280_v56  ;;  %v7173_v46 = vpack.c.bf16 %v6332_v39, %v6331_v38  ;;  %v7177_v41 = vpack.c.bf16 %v6301_v48, %v6300_v47 }
0x127b   :  { %6866 = vmatmul.mubr.msk.f32.vlgmr.msra.gmra.mrb[36].mxu1 %vm983_vm6, %v4861_v1 }
0x127c   :  { %6869 = vmatpush3.xpose.msk.msra.mxu1 %vm983_vm6, %v5052_v10  ;;  %v5189_v43 = vcombine.low %v5181_v18, %v5188_v4  ;;  %6870 = vmatprep.mubr.msk.f32.mxu1 %vm7311_vm5, %v7310_v31  ;;  %v5295_v53 = vrot.slane %v5288_v3, %v7810_v37 }
0x127d   :  { %6878 = vmatprep.subr.mxu1 %v7310_v31 }
0x127e   :  { %6874 = vmatpush3.msk.msra.mxu0 %vm384_vm1, %v5189_v43  ;;  %v5303_v13 = vcombine.low %v5295_v53, %v5302_v40 }
0x127f   :  { %6871 = vmatmul.mubr.msk.f32.vlgmr.msra.gmra.mrb[38].mxu1 %vm983_vm6, %v5013_v55  ;;  %7174 = vmatprep.subr.bf16.mxu0 %v7173_v46 }
0x1280   :  { %6879 = vmatpush3.msk.msra.mxu1 %vm384_vm1, %v5303_v13  ;;  %6880 = vmatprep.mubr.msk.f32.mxu1 %vm7311_vm5, %v7310_v31 }
0x134e   :  { %v4971_v6 = vpop.f32.mrb[36].mxu1 }
0x134f   :  { %v5127_v8 = vmul.f32 0.25, %v4971_v6  ;;  %v6867_v15 = vpop.f32.mrb[37].mxu1 }
0x1351   :  { %v5129_v20 = vsel %vm1212_vm7, %v5127_v8, -inf }
0x1352   :  { %5130 = vmax.xlane.f32.xlu0 %v5129_v20  ;;  %v5123_v14 = vpop.f32.mrb[38].mxu1  ;;  %v4310_v20 = vcombine.high %v8405_v44, %v8405_v44 }
0x1353   :  { %v5128_v21 = vmul.f32 0.25, %v5123_v14  ;;  %v6872_v22 = vpop.f32.mrb[39].mxu1 }
0x1355   :  { %v5132_v59 = vsel %vm1212_vm7, %v5128_v21, -inf }
0x1356   :  { %5133 = vmax.xlane.f32.xlu1 %v5132_v59 }
0x13df   :  { %v5131_v28 = vpop.xlane.xlu0 %5130 }
0x13e0   :  { %v5135_v27 = vsub.f32 %v5127_v8, %v5131_v28 }
0x13e2   :  { %v5137_v23 = vmul.f32 1.442695, %v5135_v27 }
0x13e3   :  { %v5134_v12 = vpop.xlane.xlu1 %5133 }
0x13e4   :  { %7266 = vpow2.f32 %v5137_v23  ;;  %v5136_v29 = vsub.f32 %v5128_v21, %v5134_v12  ;;  %v4324_v12 = vrot.slane %v4310_v20, %v7810_v37  ;;  %v7285_v20 = vld [vmem:[%s8686_s11 + $0x8] sm:$0x3f] }
0x13e6   :  { %v5139_v5 = vmul.f32 1.442695, %v5136_v29 }
0x13e8   :  { %7268 = vpow2.f32 %v5139_v5  ;;  %v4348_v5 = vcombine.high %v8416_v45, %v8416_v45 }
0x13ee   :  { %v7267_v30 = vpop.eup %7266 }
0x13ef   :  { %v5141_v32 = vsel %vm1212_vm7, %v7267_v30, 0.0 }
0x13f0   :  { %5142 = vadd.xlane.f32.xlu0 %v5141_v32 }
0x13f2   :  { %v7269_v7 = vpop.eup %7268 }
0x13f3   :  { %v5144_v62 = vsel %vm1212_vm7, %v7269_v7, 0.0 }
0x13f4   :  { %5145 = vadd.xlane.f32.xlu1 %v5144_v62 }
0x147d   :  { %v5143_v19 = vpop.xlane.xlu0 %5142 }
0x147e   :  { %7270 = vrcp.f32 %v5143_v19 }
0x1481   :  { %v5146_v33 = vpop.xlane.xlu1 %5145 }
0x1482   :  { %7272 = vrcp.f32 %v5146_v33 }
0x1488   :  { %v7271_v63 = vpop.eup %7270 }
0x1489   :  { %v5149_v35 = vmul.f32 %v7271_v63, %v7267_v30 }
0x148b   :  { %6876 = vmatmul.mubr.msk.f32.vlgmr.msra.gmra.mrb[24].mxu0 %vm1274_vm8, %v5149_v35  ;;  %v5753_v35 = vrot.slane %v8225_v24, %v7813_v42 }
0x148c   :  { %v7273_v16 = vpop.eup %7272  ;;  %7176 = vmatpush3.bf16.msra.mxu0 %v7173_v46 }
0x148d   :  { %v5150_v36 = vmul.f32 %v7273_v16, %v7269_v7  ;;  %7178 = vmatprep.subr.bf16.mxu0 %v7177_v41  ;;  %v4339_v7 = vrot.slane %v4324_v12, %v7810_v37  ;;  %v6351_v12 = vld [vmem:[%s8685_s10 + $0x60] sm:$0xff] }
0x148f   :  { %6881 = vmatmul.mubr.msk.f32.vlgmr.msra.gmra.mrb[40].mxu1 %vm1274_vm8, %v5150_v36  ;;  %v5654_v19 = vcombine.low %v4348_v5, %v4339_v7  ;;  %v6352_v5 = vld [vmem:[%s8685_s10 + $0x68] sm:$0xff] }
0x1491   :  { %v5661_v45 = vrot.slane %v5654_v19, %v7810_v37 }
0x1493   :  { %v5668_v63 = vrot.slane %v5661_v45, %v7810_v37 }
0x155e   :  { %v5261_v49 = vpop.f32.mrb[24].mxu0 }
0x155f   :  { %v5381_v50 = vcombine.high %v5261_v49, %v5261_v49  ;;  %v5388_v51 = vrot.slane %v5261_v49, %v7810_v37  ;;  %v6877_v61 = vpop.f32.mrb[25].mxu0 }
0x1561   :  { %v5396_v54 = vcombine.high %v5388_v51, %v5388_v51  ;;  %v5395_v55 = vrot.slane %v5381_v50, %v7810_v37  ;;  %v5403_v57 = vrot.slane %v5388_v51, %v7810_v37 }
0x1562   :  { %v5375_v34 = vpop.f32.mrb[40].mxu1 }
0x1563   :  { %v5417_v58 = vrot.slane %v5396_v54, %v7810_v37  ;;  %v5420_v0 = vcombine.high %v5375_v34, %v5375_v34  ;;  %v5427_v56 = vrot.slane %v5375_v34, %v7810_v37  ;;  %v6882_v1 = vpop.f32.mrb[41].mxu1  ;;  %v5410_v40 = vrot.slane %v5395_v55, %v7810_v37  ;;  %v6339_v34 = vld [vmem:[%s8683_s8 + $0x20] sm:$0xff] }
0x1565   :  { %v5462_v10 = vcombine.low %v5403_v57, %v5417_v58  ;;  %v6333_v18 = vcombine.high %v5403_v57, %v5417_v58  ;;  %v5434_v4 = vrot.slane %v5420_v0, %v7810_v37  ;;  %v5435_v3 = vcombine.high %v5427_v56, %v5427_v56  ;;  %v6340_v57 = vld [vmem:[%s8683_s8 + $0x28] sm:$0xff]  ;;  %v6341_v58 = vld [vmem:[%s8683_s8 + $0x30] sm:$0xff] }
0x1566   :  { %v5442_v43 = vrot.slane %v5427_v56, %v7810_v37  ;;  %v7181_v0 = vpack.c.bf16 %v6340_v57, %v6339_v34  ;;  %v6342_v56 = vld [vmem:[%s8683_s8 + $0x38] sm:$0xff]  ;;  %v5918_v34 = vrot.slane %v7285_v20, %v7977_v17  ;;  %v6028_v17 = vld [vmem:[%s8687_s12] sm:$0xff] }
0x1567   :  { %v5456_v53 = vrot.slane %v5435_v3, %v7810_v37  ;;  %v5472_v13 = vrot.slane %v5462_v10, %v7810_v37  ;;  %v5479_v6 = vrot.slane %v6333_v18, %v7810_v37  ;;  %v5449_v14 = vrot.slane %v5434_v4, %v7810_v37 }
0x1568   :  { %v5457_v8 = vcombine.high %v5442_v43, %v5442_v43  ;;  %v5464_v15 = vcombine.low %v5410_v40, %v5442_v43  ;;  %v7185_v1 = vpack.c.bf16 %v6342_v56, %v6341_v58  ;;  %7182 = vmatprep.subr.bf16.mxu1 %v7181_v0 }
0x1569   :  { %v5458_v21 = vcombine.high %v5456_v53, %v5456_v53  ;;  %v5494_v28 = vcombine.low %v5472_v13, %v5479_v6  ;;  %7184 = vmatpush3.bf16.msra.mxu1 %v7181_v0 }
0x156a   :  { %v5465_v22 = vcombine.low %v5456_v53, %v5457_v8  ;;  %v5486_v27 = vrot.slane %v5464_v15, %v7810_v37  ;;  %7186 = vmatprep.subr.bf16.mxu1 %v7185_v1  ;;  %v5785_v53 = vrot.slane %v8225_v24, %v7960_v52  ;;  %v6347_v52 = vld [vmem:[%s8685_s10 + $0x40] sm:$0xff]  ;;  %v6348_v24 = vld [vmem:[%s8685_s10 + $0x48] sm:$0xff] }
0x156b   :  { %v5511_v59 = vcombine.low %v5458_v21, %v5449_v14  ;;  %v5502_v44 = vrot.slane %v5494_v28, %v7810_v37  ;;  %v5791_v14 = vrot.slane %v7285_v20, %v7825_v60  ;;  %v7189_v60 = vpack.c.bf16 %v6348_v24, %v6347_v52 }
0x156c   :  { %v5493_v23 = vrot.slane %v5465_v22, %v7810_v37 }
0x156d   :  { %v5518_v30 = vrot.slane %v5511_v59, %v7810_v37  ;;  %7188 = vmatpush3.bf16.msra.mxu1 %v7185_v1 }
0x156e   :  { %v5495_v29 = vcombine.low %v5486_v27, %v5493_v23  ;;  %v6349_v27 = vld [vmem:[%s8685_s10 + $0x50] sm:$0xff]  ;;  %v6350_v23 = vld [vmem:[%s8685_s10 + $0x58] sm:$0xff] }
0x156f   :  { %v5525_v33 = vrot.slane %v5518_v30, %v7810_v37  ;;  %v7197_v30 = vpack.c.bf16 %v6352_v5, %v6351_v12 }
0x1570   :  { %v5509_v32 = vrot.slane %v5495_v29, %v7810_v37  ;;  %v7193_v29 = vpack.c.bf16 %v6350_v23, %v6349_v27  ;;  %v6110_v27 = vld [vmem:[%s8688_s13] sm:$0xff]  ;;  %v6111_v23 = vld [vmem:[%s8688_s13 + $0x8] sm:$0xff] }
0x1572   :  { %v5510_v62 = vcombine.low %v5502_v44, %v5509_v32  ;;  %v6353_v44 = vld [vmem:[%s8685_s10 + $0x70] sm:$0xff]  ;;  %v6354_v32 = vld [vmem:[%s8685_s10 + $0x78] sm:$0xff] }
0x1573   :  { %v7201_v7 = vpack.c.bf16 %v6354_v32, %v6353_v44 }
0x1574   :  { %6887 = vmatprep.mubr.msk.f32.mxu0 %vm983_vm6, %v5510_v62  ;;  %v6344_v62 = vld [vmem:[%s8684_s9 + $0x1] ss:$0 sm:$0xff] }
0x1575   :  { %6888 = vmatmul.mubr.msk.f32.vlgmr.msra.gmra.mrb[26].mxu0 %vm983_vm6, %v5525_v33 }
0x1576   :  { %7180 = vmatpush3.bf16.msra.mxu0 %v7177_v41  ;;  %6894 = vmatprep.mubr.msk.f32.mxu0 %vm983_vm6, %v8493_v2 }
0x1577   :  { %7190 = vmatprep.subr.bf16.mxu0 %v7189_v60 }
0x157d   :  { %6895 = vmatmul.mubr.msk.f32.vlgmr.msra.gmra.mrb[26].mxu0 %vm983_vm6, %v5668_v63 }
0x157e   :  { %7192 = vmatpush3.bf16.msra.mxu0 %v7189_v60 }
0x157f   :  { %7194 = vmatprep.subr.bf16.mxu0 %v7193_v29 }
0x1582   :  { %7196 = vmatpush3.bf16.msra.mxu0 %v7193_v29  ;;  %v7212_v29 = vpack.c.bf16 %v6111_v23, %v6110_v27 }
0x1583   :  { %7198 = vmatprep.subr.bf16.mxu0 %v7197_v30 }
0x1586   :  { %7200 = vmatpush3.bf16.msra.mxu0 %v7197_v30 }
0x1587   :  { %7202 = vmatprep.subr.bf16.mxu0 %v7201_v7 }
0x158a   :  { %7204 = vmatpush3.bf16.msra.mxu0 %v7201_v7 }
0x1650   :  { %v6896_v16 = vpop.f32.mrb[26].mxu0 }
0x1651   :  { %v5749_v36 = vadd.f32 %v6896_v16, %v8178_v25  ;;  %v5739_v38 = vpop.f32.mrb[27].mxu0 }
0x1652   :  { %v5748_v39 = vadd.f32 %v5739_v38, %v8181_v26 }
0x1653   :  { %v5755_v46 = vadd.f32 %v5753_v35, %v5749_v36 }
0x1654   :  { %v8562_v47 = vadd.f32 %v5753_v35, %v5748_v39 }
0x1655   :  { %v5759_v2 = vsel %vm394_vm4, %v5755_v46, 0.0 }
0x1656   :  { %5760 = vadd.xlane.f32.xlu1 %v5759_v2  ;;  %v5756_v37 = vsel %vm390_vm3, %v8562_v47, 0.0 }
0x1657   :  { %5757 = vadd.xlane.f32.xlu0 %v5756_v37 }
0x16e3   :  { %v5761_v48 = vpop.xlane.xlu1 %5760 }
0x16e4   :  { %v5763_v41 = vmul.f32 0.03125, %v5761_v48  ;;  %v5758_v49 = vpop.xlane.xlu0 %5757 }
0x16e5   :  { %v5762_v50 = vmul.f32 0.03125, %v5758_v49 }
0x16e6   :  { %v5765_v51 = vsub.f32 %v5755_v46, %v5763_v41 }
0x16e7   :  { %v5764_v25 = vsub.f32 %v8562_v47, %v5762_v50 }
0x16e8   :  { %v5767_v61 = vmul.f32 %v5765_v51, %v5765_v51 }
0x16e9   :  { %v5766_v54 = vmul.f32 %v5764_v25, %v5764_v25 }
0x16ea   :  { %v5771_v26 = vsel %vm394_vm4, %v5767_v61, 0.0 }
0x16eb   :  { %5772 = vadd.xlane.f32.xlu1 %v5771_v26  ;;  %v5768_v55 = vsel %vm390_vm3, %v5766_v54, 0.0 }
0x16ec   :  { %5769 = vadd.xlane.f32.xlu0 %v5768_v55 }
0x1778   :  { %v5773_v10 = vpop.xlane.xlu1 %5772 }
0x1779   :  { %v5775_v18 = vmul.f32 0.03125, %v5773_v10  ;;  %v5770_v4 = vpop.xlane.xlu0 %5769 }
0x177a   :  { %v5774_v3 = vmul.f32 0.03125, %v5770_v4 }
0x177b   :  { %v5777_v40 = vadd.f32 1e-12, %v5775_v18 }
0x177c   :  { %v5776_v43 = vadd.f32 1e-12, %v5774_v3 }
0x177d   :  { %7274 = vrsqrt.f32 %v5777_v40 }
0x177e   :  { %7276 = vrsqrt.f32 %v5776_v43 }
0x1787   :  { %v7275_v13 = vpop.eup %7274 }
0x1788   :  { %v7277_v6 = vpop.eup %7276  ;;  %v5781_v8 = vmul.f32 %v7275_v13, %v5765_v51  ;;  %v6030_v13 = vld [vmem:[%s8687_s12 + $0x10] sm:$0xff] }
0x1789   :  { %v5780_v15 = vmul.f32 %v7277_v6, %v5764_v25  ;;  %v7313_v6 = vmov 0.0|0.0  }
0x178a   :  { %v5787_v21 = vmul.f32 %v5785_v53, %v5781_v8  ;;  %7205 = vmatprep.subr.bf16.mxu1 %v7313_v6 }
0x178b   :  { %v5786_v22 = vmul.f32 %v5785_v53, %v5780_v15  ;;  %v6031_v15 = vld [vmem:[%s8687_s12 + $0x18] sm:$0xff] }
0x178c   :  { %v5793_v28 = vadd.f32 %v5791_v14, %v5787_v21  ;;  %v7209_v20 = vpack.c.bf16 %v6031_v15, %v6030_v13 }
0x178d   :  { %v5792_v59 = vadd.f32 %v5791_v14, %v5786_v22 }
0x178f   :  { %6905 = vmatprep.mubr.msk.f32.mxu1 %vm390_vm3, %v5792_v59  ;;  %v6000_v59 = vld [vmem:[%s8689_s14] sm:$0x7] }
0x1790   :  { %6906 = vmatmul.mubr.msk.f32.vlgmr.msra.gmra.mrb[42].mxu1 %vm390_vm3, %v5793_v28  ;;  %v6021_v28 = vrot.slane %v6000_v59, %v7748_v9  ;;  %v6026_v60 = vrot.slane %v6000_v59, %v7756_v11  ;;  %v6112_v9 = vld [vmem:[%s8688_s13 + $0x10] sm:$0xff]  ;;  %v6113_v11 = vld [vmem:[%s8688_s13 + $0x18] sm:$0xff]  ;;  %v6035_v44 = vrot.slane %v6000_v59, %v7813_v42  ;;  %s7286_s13 = scalar_lea.vmem %s6203_s27, 32 }
0x1791   :  { %6935 = vmatprep.mubr.msk.f32.mxu1 %vm7311_vm5, %v7310_v31  ;;  %v7215_v30 = vpack.c.bf16 %v6113_v11, %v6112_v9  ;;  %p7287_p0 = scmp.ne.s32.totalorder %s6203_s27, %s7286_s13  ;;  %p7292_p2 = scmp.lt.s32.totalorder %s7286_s13, %s7286_s13 }
0x1793   :  { %p7293_p3 = por %p7292_p2, %p7291_p1 }
0x1795   :  { %p7294_p4 = pnand %p7293_p3, %p7287_p0 }
0x1863   :  { %v6907_v19 = vpop.f32.mrb[42].mxu1 }
0x1864   :  { %v5885_v33 = vadd.f32 %v6907_v19, %v6344_v62  ;;  %v5879_v45 = vpop.f32.mrb[43].mxu1 }
0x1865   :  { %v5880_v63 = vadd.f32 %v6344_v62, %v5879_v45 }
0x1866   :  { %v5889_v35 = vmul.f32 %v5885_v33, %v5885_v33 }
0x1867   :  { %v5888_v16 = vmul.f32 %v5880_v63, %v5880_v63 }
0x1868   :  { %v5891_v36 = vmul.f32 %v5889_v35, %v5885_v33 }
0x1869   :  { %v5890_v38 = vmul.f32 %v5888_v16, %v5880_v63 }
0x186a   :  { %v5893_v39 = vmul.f32 0.044715, %v5891_v36 }
0x186b   :  { %v5892_v46 = vmul.f32 0.044715, %v5890_v38 }
0x186c   :  { %v5895_v2 = vadd.f32 %v5893_v39, %v5885_v33 }
0x186d   :  { %v5894_v37 = vadd.f32 %v5892_v46, %v5880_v63 }
0x186e   :  { %v5897_v48 = vmul.f32 0.7978846, %v5895_v2 }
0x186f   :  { %v5896_v41 = vmul.f32 0.7978846, %v5894_v37 }
0x1870   :  { %7278 = vtanh.f32 %v5897_v48 }
0x1871   :  { %7280 = vtanh.f32 %v5896_v41 }
0x187a   :  { %v7279_v49 = vpop.eup %7278 }
0x187b   :  { %v7281_v50 = vpop.eup %7280  ;;  %v5901_v51 = vadd.f32 1.0, %v7279_v49 }
0x187c   :  { %v5900_v25 = vadd.f32 1.0, %v7281_v50 }
0x187d   :  { %v5903_v61 = vmul.f32 0.5, %v5901_v51 }
0x187e   :  { %v5902_v54 = vmul.f32 0.5, %v5900_v25 }
0x187f   :  { %v5905_v55 = vmul.f32 %v5903_v61, %v5885_v33 }
0x1880   :  { %v5904_v26 = vmul.f32 %v5902_v54, %v5880_v63 }
0x1882   :  { %6924 = vmatprep.mubr.msk.f32.mxu0 %vm3110_vm9, %v5904_v26 }
0x1883   :  { %6925 = vmatmul.mubr.msk.f32.vlgmr.msra.gmra.mrb[28].mxu0 %vm3110_vm9, %v5905_v55 }
0x1956   :  { %v6926_v57 = vpop.f32.mrb[28].mxu0 }
0x1957   :  { %v5991_v58 = vpop.f32.mrb[29].mxu0 }
0x1958   :  { %v5992_v0 = vadd.f32 %v5991_v58, %v5918_v34 }
0x195a   :  { %v5999_v56 = vadd.f32 %v5992_v0, %v8562_v47  ;;  %v6029_v47 = vld [vmem:[%s8687_s12 + $0x8] sm:$0xff] }
0x195b   :  { %v7206_v8 = vpack.c.bf16 %v6029_v47, %v6028_v17 }
0x195c   :  { %v6002_v1 = vrot.slane %v5999_v56, 4 }
0x195d   :  { %7207 = vmatpush3.bf16.msra.mxu1 %v7206_v8 }
0x195e   :  { %v6004_v10 = vsel %vm382_vm0, %v5999_v56, %v6002_v1  ;;  %7208 = vmatprep.subr.bf16.mxu1 %v7313_v6 }
0x195f   :  { %v6005_v18 = vsel %vm394_vm4, %v6004_v10, 0.0 }
0x1960   :  { %6006 = vadd.xlane.f32.xlu0 %v6005_v18 }
0x1961   :  { %7210 = vmatpush3.bf16.msra.mxu1 %v7209_v20 }
0x1962   :  { %7211 = vmatprep.subr.bf16.mxu1 %v7313_v6 }
0x19ed   :  { %v6007_v4 = vpop.xlane.xlu0 %6006 }
0x19ee   :  { %v6008_v3 = vmul.f32 0.03125, %v6007_v4 }
0x19f0   :  { %v6009_v40 = vsub.f32 %v6004_v10, %v6008_v3 }
0x19f2   :  { %v6010_v43 = vmul.f32 %v6009_v40, %v6009_v40 }
0x19f4   :  { %v6011_v53 = vsel %vm394_vm4, %v6010_v43, 0.0 }
0x19f5   :  { %6012 = vadd.xlane.f32.xlu1 %v6011_v53 }
0x1a82   :  { %v6013_v14 = vpop.xlane.xlu1 %6012 }
0x1a83   :  { %v6014_v21 = vmul.f32 0.03125, %v6013_v14 }
0x1a85   :  { %v6015_v22 = vadd.f32 1e-12, %v6014_v21 }
0x1a87   :  { %7282 = vrsqrt.f32 %v6015_v22 }
0x1a91   :  { %v7283_v52 = vpop.eup %7282 }
0x1a92   :  { %v6017_v24 = vmul.f32 %v7283_v52, %v6009_v40 }
0x1a94   :  { %v6022_v12 = vmul.f32 %v6021_v28, %v6017_v24 }
0x1a96   :  { %v6027_v5 = vadd.f32 %v6026_v60, %v6022_v12 }
0x1a98   :  { %6936 = vmatmul.mubr.msk.f32.vlgmr.msra.gmra.mrb[44].mxu1 %vm390_vm3, %v6027_v5 }
0x1a99   :  { %7213 = vmatpush3.bf16.msra.mxu1 %v7212_v29  ;;  %6946 = vmatprep.mubr.msk.f32.mxu1 %vm7311_vm5, %v7310_v31  ;;  %v6358_v31 = vld [vmem:[%s8690_s15] ss:$0 sm:$0xff] }
0x1a9a   :  { %7214 = vmatprep.subr.bf16.mxu1 %v7313_v6 }
0x1a9d   :  { %7216 = vmatpush3.bf16.msra.mxu1 %v7215_v30 }
0x1b6b   :  { %v6105_v32 = vpop.f32.mrb[44].mxu1 }
0x1b6c   :  { %v6106_v7 = vadd.f32 %v6105_v32, %v6035_v44  ;;  %v6937_v62 = vpop.f32.mrb[45].mxu1 }
0x1b6e   :  { %v6109_v19 = vmax.f32 %v6106_v7, 0.0 }
0x1b70   :  { %6947 = vmatmul.mubr.msk.f32.vlgmr.msra.gmra.mrb[46].mxu1 %vm390_vm3, %v6109_v19 }
0x1c43   :  { %v6190_v33 = vpop.f32.mrb[46].mxu1 }
0x1c44   :  { %v6191_v45 = vadd.f32 %v6358_v31, %v6190_v33  ;;  %v6948_v63 = vpop.f32.mrb[47].mxu1 }
0x1c46   :  { %6195 = vst.msk [vmem:[#allocation2] sm:$0x3] %vm6194_vm10, %v6191_v45 }
0x1c47   :  { %7297 = shalt.err (!%p7294_p4)
}
0x1c48   :  { %s7298_s6 = scalar_lea.hbm %s8691_s16, 32 }
0x1c49   :  { %p7299_p5 = scmp.ne.s32.totalorder %s8691_s16, %s7298_s6  ;;  %p7302_p6 = scmp.lt.u32.totalorder %s7298_s6, %s8691_s16 }
0x1c4b   :  { %p7304_p7 = pnand %p7302_p6, %p7299_p5 }
0x1c4d   :  { %7307 = shalt.err (!%p7304_p7)
}
0x1c4e   :  { %6205 = dma.vmem_to_hbm [thread:$0]  %s6203_s27, 32, %s8691_s16, [#allocation3]  }
0x1c4f   :  { %7308 = dma.done.wait [#allocation3], 32  }
0x1c50   :  { %7309 = vsyncadd [#allocation3], 4294967264 }
0x1c51   :  { %6209 = vsyncpa [#allocation3], 1 }

</bundles_post_ra>
